<compile_context>
chip_gen: v5e
topology: v5e:2x2
jax: 0.10.0
libtpu: 0.0.40
codegen_flags: <defaults>
</compile_context>

<pallas_src>
import math

import numpy as np
import jax
import jax.numpy as jnp
from jax import lax
from jax.experimental import pallas as pl
from jax.experimental.pallas import tpu as pltpu

H_DIM = 32      # h_dim
S_DIM = 16      # s_dim
N_LAYERS = 2    # n_layers (bidirectional=True)
B = 4           # batch
T = 8           # max sequence length


def _gru_step(h, gi, whh, bhn, H):
    """One GRU update for one direction.

    gi already holds x @ W_ih + b_ih (+ b_hh for r, z).  whh is the gate-fused (H, 3H)
    recurrent weight -> ONE MXU push on the serial chain; r and z share one sigmoid.
    """
    gh = jnp.dot(h, whh, preferred_element_type=jnp.float32)          # (B, 3H)
    rz = jax.nn.sigmoid(gi[:, :2 * H] + gh[:, :2 * H])                # one EUP push for r|z
    r = rz[:, :H]
    z = rz[:, H:]
    n = jnp.tanh(gi[:, 2 * H:] + r * (gh[:, 2 * H:] + bhn))
    return n + z * (h - n)                                            # == (1-z)*n + z*h


def _run_layer(gi_scr, whh_ref, bhn_ref, mask_ref, T_, Bb, H, out_scr=None):
    """Fused fwd/bwd recurrence, fully unrolled (T_ is a compile-time constant).

    gi_scr: VMEM scratch (2, T*B, 3H) holding the precomputed input projections.
    out_scr: optional VMEM scratch (2, T*B, H) receiving per-step outputs (layer 0).
    """
    whh_f = whh_ref[0]          # hoisted: loaded once, kept in vregs across the loop
    whh_b = whh_ref[1]
    bhn_f = bhn_ref[0]
    bhn_b = bhn_ref[1]

    h0 = jnp.zeros((Bb, H), jnp.float32)
    hf, hb = h0, h0
    for i in range(T_):
        tf = i
        tb = T_ - 1 - i
        gi_f = gi_scr[0, pl.ds(tf * Bb, Bb), :]        # (B, 3H) static-offset vld
        gi_b = gi_scr[1, pl.ds(tb * Bb, Bb), :]
        hf_new = _gru_step(hf, gi_f, whh_f, bhn_f, H)
        hb_new = _gru_step(hb, gi_b, whh_b, bhn_b, H)
        mf = mask_ref[tf]                              # (B, 1)
        mb = mask_ref[tb]
        hf = hf + mf * (hf_new - hf)                   # update only where t < len
        hb = hb + mb * (hb_new - hb)
        if out_scr is not None:                        # stage layer-0 outputs in VMEM
            out_scr[0, pl.ds(tf * Bb, Bb), :] = hf
            out_scr[1, pl.ds(tb * Bb, Bb), :] = hb
    return hf, hb


def rnn_encoder_kernel(
    v2d_ref, mask_ref,
    wih0_ref, bi0_ref, whh0_ref, bhn0_ref,
    wih1_ref, bi1_ref, whh1_ref, bhn1_ref,
    whead_ref, bhead_ref,
    hidden_out, mu_out, var_out,
    gi0_scr, gi1_scr, x1_scr,
):
    T_, Bb, _ = mask_ref.shape
    H = x1_scr.shape[-1]
    S = mu_out.shape[-1]

    # ---- layer 0: hoisted input projection, staged into VMEM scratch ----------------
    v2d = v2d_ref[...]                                                  # (T*B, H)
    for d in range(2):                                                  # fwd, bwd
        gi0_scr[d, :, :] = (
            jnp.dot(v2d, wih0_ref[d], preferred_element_type=jnp.float32) + bi0_ref[d])

    h0f, h0b = _run_layer(gi0_scr, whh0_ref, bhn0_ref, mask_ref, T_, Bb, H,
                          out_scr=x1_scr)

    # ---- layer 1: hoisted input projection from staged layer-0 outputs --------------
    x1f = x1_scr[0]                                                     # (T*B, H)
    x1b = x1_scr[1]
    for d in range(2):
        gi1_scr[d, :, :] = (
            jnp.dot(x1f, wih1_ref[d, 0], preferred_element_type=jnp.float32)
            + jnp.dot(x1b, wih1_ref[d, 1], preferred_element_type=jnp.float32)
            + bi1_ref[d])

    h1f, h1b = _run_layer(gi1_scr, whh1_ref, bhn1_ref, mask_ref, T_, Bb, H,
                          out_scr=None)

    # hidden.transpose(0,1).view(B, -1) -> per-row [l0_fwd | l0_bwd | l1_fwd | l1_bwd]
    hidden = jnp.concatenate([h0f, h0b, h1f, h1b], axis=-1)             # (B, 4H), lane-dense
    hidden_out[...] = hidden

    # fused mu/var head: one (B,4H)@(4H,2S) dot, then split
    head = jnp.dot(hidden, whead_ref[...],
                   preferred_element_type=jnp.float32) + bhead_ref[...]
    mu_out[...] = head[:, :S]
    pre = head[:, S:]
    softplus = jnp.maximum(pre, 0.0) + jnp.log1p(jnp.exp(-jnp.abs(pre)))
    var_out[...] = 1e-6 + softplus


def init_params(key, h_dim=H_DIM, s_dim=S_DIM):
    """Deterministic params with PyTorch-default uniform ranges (GRU / Linear),
    stored in the native PyTorch layout (3H, in) / (3H,)."""
    keys = iter(jax.random.split(key, 32))
    kg = 1.0 / math.sqrt(h_dim)

    def u(shape, bound):
        return jax.random.uniform(next(keys), shape, jnp.float32, -bound, bound)

    params = {}
    for layer in range(N_LAYERS):
        in_dim = h_dim if layer == 0 else 2 * h_dim
        for d in ("f", "b"):
            params[f"wih{layer}{d}"] = u((3 * h_dim, in_dim), kg)   # (3H, in)
            params[f"whh{layer}{d}"] = u((3 * h_dim, h_dim), kg)    # (3H, H)
            params[f"bih{layer}{d}"] = u((3 * h_dim,), kg)
            params[f"bhh{layer}{d}"] = u((3 * h_dim,), kg)
    kl = 1.0 / math.sqrt(h_dim * N_LAYERS * 2)
    params["wmu"] = u((s_dim, h_dim * N_LAYERS * 2), kl)
    params["bmu"] = u((s_dim,), kl)
    params["wvar"] = u((s_dim, h_dim * N_LAYERS * 2), kl)
    params["bvar"] = u((s_dim,), kl)
    return params


def prepare_kernel_params(params, h_dim=H_DIM):
    """One-time weight re-layout (outside the per-call path):
       * transpose every GRU weight to (in, 3H) with gates fused along the output dim,
       * split layer-1 W_ih by input half (fwd/bwd of the concatenated layer-0 output),
       * fold b_ih (+ b_hh for r, z) into one precomputed-projection bias,
       * fuse the mu/var head weights into a single (4H, 2S) matrix."""
    H = h_dim

    def w_t(w):                 # (3H, in) -> (in, 3H), columns stay [r|z|n]
        return jnp.transpose(w)

    def fold_bias(bih, bhh):    # (3H,),(3H,) -> (1,3H): b_ih for all gates + b_hh for r,z
        return jnp.concatenate([bih[:2 * H] + bhh[:2 * H], bih[2 * H:]]).reshape(1, 3 * H)

    prepped = {}
    for layer in range(N_LAYERS):
        wf = w_t(params[f"wih{layer}f"])
        wb = w_t(params[f"wih{layer}b"])
        if layer == 0:
            prepped["wih0"] = jnp.stack([wf, wb], axis=0)                       # (2, H, 3H)
        else:
            # layer-1 input is concat([fwd, bwd]); split each direction's W_ih by half
            prepped["wih1"] = jnp.stack(
                [jnp.stack([wf[:H], wf[H:]], axis=0),
                 jnp.stack([wb[:H], wb[H:]], axis=0)], axis=0)                  # (2, 2, H, 3H)
        prepped[f"bi{layer}"] = jnp.stack(
            [fold_bias(params[f"bih{layer}f"], params[f"bhh{layer}f"]),
             fold_bias(params[f"bih{layer}b"], params[f"bhh{layer}b"])], axis=0)  # (2, 1, 3H)
        prepped[f"whh{layer}"] = jnp.stack(
            [w_t(params[f"whh{layer}f"]), w_t(params[f"whh{layer}b"])], axis=0)   # (2, H, 3H)
        prepped[f"bhn{layer}"] = jnp.stack(
            [params[f"bhh{layer}f"][2 * H:].reshape(1, H),
             params[f"bhh{layer}b"][2 * H:].reshape(1, H)], axis=0)               # (2, 1, H)

    prepped["whead"] = jnp.concatenate(
        [jnp.transpose(params["wmu"]), jnp.transpose(params["wvar"])], axis=1)    # (4H, 2S)
    prepped["bhead"] = jnp.concatenate([params["bmu"], params["bvar"]]).reshape(1, -1)
    return prepped


def rnn_encoder_forward(prepped, k, v, v_len):
    """JAX/Pallas equivalent of RNNEncoder.forward(k, v, v_len). `k` is unused (as in torch)."""
    del k
    B_, T_, H = v.shape
    s_dim = prepped["bhead"].shape[1] // 2

    # time-major, flattened so row index = t*B + b
    v2d = jnp.transpose(v, (1, 0, 2)).reshape(T_ * B_, H).astype(jnp.float32)
    lens = v_len.astype(jnp.int32)
    # tiny (T, B, 1) validity mask; t < v_len[b]. (Rows with v_len == 0 yield a zero
    # hidden state; torch's pack_padded_sequence would raise instead.)
    mask = (lax.broadcasted_iota(jnp.int32, (T_, B_), 0) < lens[None, :]).astype(jnp.float32)
    mask = mask[:, :, None]

    args = [
        v2d, mask,
        prepped["wih0"], prepped["bi0"], prepped["whh0"], prepped["bhn0"],
        prepped["wih1"], prepped["bi1"], prepped["whh1"], prepped["bhn1"],
        prepped["whead"], prepped["bhead"],
    ]

    vmem = pl.BlockSpec(memory_space=pltpu.MemorySpace.VMEM)
    out_shapes = (
        jax.ShapeDtypeStruct((B_, 2 * N_LAYERS * H), jnp.float32),   # hidden
        jax.ShapeDtypeStruct((B_, s_dim), jnp.float32),              # mu
        jax.ShapeDtypeStruct((B_, s_dim), jnp.float32),              # var
    )
    scratch = [
        pltpu.VMEM((2, T_ * B_, 3 * H), jnp.float32),   # layer-0 gi (dir, time-major rows)
        pltpu.VMEM((2, T_ * B_, 3 * H), jnp.float32),   # layer-1 gi
        pltpu.VMEM((2, T_ * B_, H), jnp.float32),       # layer-0 per-step outputs
    ]
    # Advisory cost so XLA schedules neighbors around this latency-bound call.
    cost = pl.CostEstimate(flops=1_200_000, transcendentals=13_000, bytes_accessed=160_000)

    hidden, mu, var = pl.pallas_call(
        rnn_encoder_kernel,
        out_shape=out_shapes,
        in_specs=[vmem] * len(args),
        out_specs=(vmem, vmem, vmem),
        scratch_shapes=scratch,
        cost_estimate=cost,
    )(*args)
    return hidden, mu, var


def reference_forward(params, v, v_len):
    """Plain-JAX reference of the same math (for a self-check)."""
    B_, T_, H = v.shape
    lens = v_len.astype(jnp.int32)

    def cell(x, h, wih, whh, bih, bhh):
        gi = x @ wih.T + bih
        gh = h @ whh.T + bhh
        ir, iz, i_n = jnp.split(gi, 3, axis=-1)
        hr, hz, h_n = jnp.split(gh, 3, axis=-1)
        r = jax.nn.sigmoid(ir + hr)
        z = jax.nn.sigmoid(iz + hz)
        n = jnp.tanh(i_n + r * h_n)
        return (1 - z) * n + z * h

    def run_dir(inp, layer, d, reverse):
        h = jnp.zeros((B_, H), jnp.float32)
        wih, whh = params[f"wih{layer}{d}"], params[f"whh{layer}{d}"]
        bih, bhh = params[f"bih{layer}{d}"], params[f"bhh{layer}{d}"]
        outs = [None] * T_
        order = range(T_ - 1, -1, -1) if reverse else range(T_)
        for t in order:
            h_new = cell(inp[t], h, wih, whh, bih, bhh)
            h = jnp.where((t < lens)[:, None], h_new, h)
            outs[t] = h
        return jnp.stack(outs, 0), h

    v_tm = jnp.transpose(v, (1, 0, 2))
    out0f, h0f = run_dir(v_tm, 0, "f", False)
    out0b, h0b = run_dir(v_tm, 0, "b", True)
    inp1 = jnp.concatenate([out0f, out0b], axis=-1)
    _, h1f = run_dir(inp1, 1, "f", False)
    _, h1b = run_dir(inp1, 1, "b", True)
    hidden = jnp.concatenate([h0f, h0b, h1f, h1b], axis=-1)
    mu = hidden @ params["wmu"].T + params["bmu"]
    var = 1e-6 + jax.nn.softplus(hidden @ params["wvar"].T + params["bvar"])
    return hidden, mu, var


if __name__ == "__main__":
    key = jax.random.PRNGKey(0)
    pkey, vkey = jax.random.split(key)

    params = init_params(pkey)
    prepped = prepare_kernel_params(params)                     # one-time weight re-layout

    v = jax.random.normal(vkey, (B, T, H_DIM), jnp.float32)     # batch_first [B, T, H]
    v_len = jnp.array([T, 5, 3, 1], dtype=jnp.int32)            # per-sequence valid lengths
    assert int(v_len.min()) >= 1   # torch pack_padded_sequence rejects zero-length rows
    k = None                                                    # unused by the torch forward

    fwd = jax.jit(rnn_encoder_forward)
    hidden, mu, var = fwd(prepped, k, v, v_len)
    jax.block_until_ready((hidden, mu, var))

    # Reference in (near-)f32 matmul precision; tolerance tightened 5x vs. the previous
    # 1e-2 (kept at 2e-3 to stay robust to a worst-case single-pass-bf16 MXU rounding).
    with jax.default_matmul_precision("float32"):
        h_ref, mu_ref, var_ref = reference_forward(params, v, v_len)

    assert hidden.shape == (B, H_DIM * N_LAYERS * 2)
    assert mu.shape == (B, S_DIM) and var.shape == (B, S_DIM)
    tol = dict(atol=2e-3, rtol=2e-3)
    assert np.allclose(np.asarray(hidden), np.asarray(h_ref), **tol)
    assert np.allclose(np.asarray(mu), np.asarray(mu_ref), **tol)
    assert np.allclose(np.asarray(var), np.asarray(var_ref), **tol)
    assert bool(jnp.all(var > 0))

    print("KERNEL_OK")
</pallas_src>

<mosaic_0001>
module attributes {stable_mosaic.version = 11 : i64} {
  func.func @rnn_encoder_kernel(%arg0: memref<32x32xf32, #tpu.memory_space<vmem>>, %arg1: memref<8x4x1xf32, #tpu.memory_space<vmem>>, %arg2: memref<2x32x96xf32, #tpu.memory_space<vmem>>, %arg3: memref<2x1x96xf32, #tpu.memory_space<vmem>>, %arg4: memref<2x32x96xf32, #tpu.memory_space<vmem>>, %arg5: memref<2x1x32xf32, #tpu.memory_space<vmem>>, %arg6: memref<2x2x32x96xf32, #tpu.memory_space<vmem>>, %arg7: memref<2x1x96xf32, #tpu.memory_space<vmem>>, %arg8: memref<2x32x96xf32, #tpu.memory_space<vmem>>, %arg9: memref<2x1x32xf32, #tpu.memory_space<vmem>>, %arg10: memref<128x32xf32, #tpu.memory_space<vmem>>, %arg11: memref<1x32xf32, #tpu.memory_space<vmem>>, %arg12: memref<4x128xf32, #tpu.memory_space<vmem>>, %arg13: memref<4x16xf32, #tpu.memory_space<vmem>>, %arg14: memref<4x16xf32, #tpu.memory_space<vmem>>, %arg15: memref<2x32x96xf32, #tpu.memory_space<vmem>>, %arg16: memref<2x32x96xf32, #tpu.memory_space<vmem>>, %arg17: memref<2x32x32xf32, #tpu.memory_space<vmem>>) attributes {dimension_semantics = [], scalar_prefetch = 0 : i64, scratch_operands = 3 : i64, tpu.core_type = #tpu.core_type<tc>} {
    %c0 = arith.constant 0 : index
    %c0_0 = arith.constant 0 : index
    %0 = vector.load %arg0[%c0, %c0_0] : memref<32x32xf32, #tpu.memory_space<vmem>>, vector<32x32xf32>
    %c0_1 = arith.constant 0 : index
    %c0_2 = arith.constant 0 : index
    %c0_3 = arith.constant 0 : index
    %1 = vector.load %arg2[%c0_1, %c0_2, %c0_3] : memref<2x32x96xf32, #tpu.memory_space<vmem>>, vector<1x32x96xf32>
    %2 = vector.shape_cast %1 : vector<1x32x96xf32> to vector<32x96xf32>
    %cst = arith.constant dense<0.000000e+00> : vector<32x96xf32>
    %3 = tpu.matmul %0, %2, %cst {dimension_numbers = #tpu.dot_dimension_numbers<[1], [0], [0], [1], [0, 0, 1, 1], [], []>} : vector<32x32xf32>, vector<32x96xf32>, vector<32x96xf32> -> vector<32x96xf32>
    %c0_4 = arith.constant 0 : index
    %c0_5 = arith.constant 0 : index
    %c0_6 = arith.constant 0 : index
    %4 = vector.load %arg3[%c0_4, %c0_5, %c0_6] : memref<2x1x96xf32, #tpu.memory_space<vmem>>, vector<1x1x96xf32>
    %5 = vector.shape_cast %4 : vector<1x1x96xf32> to vector<1x96xf32>
    %6 = vector.broadcast %5 : vector<1x96xf32> to vector<32x96xf32>
    %7 = arith.addf %3, %6 : vector<32x96xf32>
    %c0_7 = arith.constant 0 : index
    %c0_8 = arith.constant 0 : index
    %c0_9 = arith.constant 0 : index
    %8 = vector.load %arg15[%c0_7, %c0_8, %c0_9] : memref<2x32x96xf32, #tpu.memory_space<vmem>>, vector<1x32x96xf32>
    %9 = vector.shape_cast %8 : vector<1x32x96xf32> to vector<32x96xf32>
    %10 = vector.shape_cast %7 : vector<32x96xf32> to vector<1x32x96xf32>
    tpu.vector_store %arg15[%c0_7, %c0_8, %c0_9], %10 {strides = array<i32>} : memref<2x32x96xf32, #tpu.memory_space<vmem>>, vector<1x32x96xf32>,
    %c1 = arith.constant 1 : index
    %c0_10 = arith.constant 0 : index
    %c0_11 = arith.constant 0 : index
    %11 = vector.load %arg2[%c1, %c0_10, %c0_11] : memref<2x32x96xf32, #tpu.memory_space<vmem>>, vector<1x32x96xf32>
    %12 = vector.shape_cast %11 : vector<1x32x96xf32> to vector<32x96xf32>
    %cst_12 = arith.constant dense<0.000000e+00> : vector<32x96xf32>
    %13 = tpu.matmul %0, %12, %cst_12 {dimension_numbers = #tpu.dot_dimension_numbers<[1], [0], [0], [1], [0, 0, 1, 1], [], []>} : vector<32x32xf32>, vector<32x96xf32>, vector<32x96xf32> -> vector<32x96xf32>
    %c1_13 = arith.constant 1 : index
    %c0_14 = arith.constant 0 : index
    %c0_15 = arith.constant 0 : index
    %14 = vector.load %arg3[%c1_13, %c0_14, %c0_15] : memref<2x1x96xf32, #tpu.memory_space<vmem>>, vector<1x1x96xf32>
    %15 = vector.shape_cast %14 : vector<1x1x96xf32> to vector<1x96xf32>
    %16 = vector.broadcast %15 : vector<1x96xf32> to vector<32x96xf32>
    %17 = arith.addf %13, %16 : vector<32x96xf32>
    %c1_16 = arith.constant 1 : index
    %c0_17 = arith.constant 0 : index
    %c0_18 = arith.constant 0 : index
    %18 = vector.load %arg15[%c1_16, %c0_17, %c0_18] : memref<2x32x96xf32, #tpu.memory_space<vmem>>, vector<1x32x96xf32>
    %19 = vector.shape_cast %18 : vector<1x32x96xf32> to vector<32x96xf32>
    %20 = vector.shape_cast %17 : vector<32x96xf32> to vector<1x32x96xf32>
    tpu.vector_store %arg15[%c1_16, %c0_17, %c0_18], %20 {strides = array<i32>} : memref<2x32x96xf32, #tpu.memory_space<vmem>>, vector<1x32x96xf32>,
    %c0_19 = arith.constant 0 : index
    %c0_20 = arith.constant 0 : index
    %c0_21 = arith.constant 0 : index
    %21 = vector.load %arg4[%c0_19, %c0_20, %c0_21] : memref<2x32x96xf32, #tpu.memory_space<vmem>>, vector<1x32x96xf32>
    %22 = vector.shape_cast %21 : vector<1x32x96xf32> to vector<32x96xf32>
    %c1_22 = arith.constant 1 : index
    %c0_23 = arith.constant 0 : index
    %c0_24 = arith.constant 0 : index
    %23 = vector.load %arg4[%c1_22, %c0_23, %c0_24] : memref<2x32x96xf32, #tpu.memory_space<vmem>>, vector<1x32x96xf32>
    %24 = vector.shape_cast %23 : vector<1x32x96xf32> to vector<32x96xf32>
    %c0_25 = arith.constant 0 : index
    %c0_26 = arith.constant 0 : index
    %c0_27 = arith.constant 0 : index
    %25 = vector.load %arg5[%c0_25, %c0_26, %c0_27] : memref<2x1x32xf32, #tpu.memory_space<vmem>>, vector<1x1x32xf32>
    %26 = vector.shape_cast %25 : vector<1x1x32xf32> to vector<1x32xf32>
    %c1_28 = arith.constant 1 : index
    %c0_29 = arith.constant 0 : index
    %c0_30 = arith.constant 0 : index
    %27 = vector.load %arg5[%c1_28, %c0_29, %c0_30] : memref<2x1x32xf32, #tpu.memory_space<vmem>>, vector<1x1x32xf32>
    %28 = vector.shape_cast %27 : vector<1x1x32xf32> to vector<1x32xf32>
    %cst_31 = arith.constant 0.000000e+00 : f32
    %29 = vector.broadcast %cst_31 : f32 to vector<4x32xf32>
    %c0_32 = arith.constant 0 : index
    %c0_33 = arith.constant 0 : index
    %c0_34 = arith.constant 0 : index
    %30 = vector.load %arg15[%c0_32, %c0_33, %c0_34] : memref<2x32x96xf32, #tpu.memory_space<vmem>>, vector<1x4x96xf32>
    %31 = vector.shape_cast %30 : vector<1x4x96xf32> to vector<4x96xf32>
    %c1_35 = arith.constant 1 : index
    %c28 = arith.constant 28 : index
    %c0_36 = arith.constant 0 : index
    %32 = vector.load %arg15[%c1_35, %c28, %c0_36] : memref<2x32x96xf32, #tpu.memory_space<vmem>>, vector<1x4x96xf32>
    %33 = vector.shape_cast %32 : vector<1x4x96xf32> to vector<4x96xf32>
    %cst_37 = arith.constant dense<0.000000e+00> : vector<4x96xf32>
    %34 = tpu.matmul %29, %22, %cst_37 {dimension_numbers = #tpu.dot_dimension_numbers<[1], [0], [0], [1], [0, 0, 1, 1], [], []>} : vector<4x32xf32>, vector<32x96xf32>, vector<4x96xf32> -> vector<4x96xf32>
    %35 = vector.extract_strided_slice %31 {offsets = [0, 0], sizes = [4, 64], strides = [1, 1]} : vector<4x96xf32> to vector<4x64xf32>
    %36 = vector.extract_strided_slice %34 {offsets = [0, 0], sizes = [4, 64], strides = [1, 1]} : vector<4x96xf32> to vector<4x64xf32>
    %37 = arith.addf %35, %36 : vector<4x64xf32>
    %38 = arith.negf %37 : vector<4x64xf32>
    %39 = math.exp %38 : vector<4x64xf32>
    %cst_38 = arith.constant 1.000000e+00 : f32
    %40 = vector.broadcast %cst_38 : f32 to vector<4x64xf32>
    %41 = arith.addf %40, %39 : vector<4x64xf32>
    %42 = arith.divf %40, %41 : vector<4x64xf32>
    %43 = vector.extract_strided_slice %42 {offsets = [0, 0], sizes = [4, 32], strides = [1, 1]} : vector<4x64xf32> to vector<4x32xf32>
    %44 = vector.extract_strided_slice %42 {offsets = [0, 32], sizes = [4, 32], strides = [1, 1]} : vector<4x64xf32> to vector<4x32xf32>
    %45 = vector.extract_strided_slice %31 {offsets = [0, 64], sizes = [4, 32], strides = [1, 1]} : vector<4x96xf32> to vector<4x32xf32>
    %46 = vector.extract_strided_slice %34 {offsets = [0, 64], sizes = [4, 32], strides = [1, 1]} : vector<4x96xf32> to vector<4x32xf32>
    %47 = vector.broadcast %26 : vector<1x32xf32> to vector<4x32xf32>
    %48 = arith.addf %46, %47 : vector<4x32xf32>
    %49 = arith.mulf %43, %48 : vector<4x32xf32>
    %50 = arith.addf %45, %49 : vector<4x32xf32>
    %51 = math.tanh %50 : vector<4x32xf32>
    %52 = arith.subf %29, %51 : vector<4x32xf32>
    %53 = arith.mulf %44, %52 : vector<4x32xf32>
    %54 = arith.addf %51, %53 : vector<4x32xf32>
    %cst_39 = arith.constant dense<0.000000e+00> : vector<4x96xf32>
    %55 = tpu.matmul %29, %24, %cst_39 {dimension_numbers = #tpu.dot_dimension_numbers<[1], [0], [0], [1], [0, 0, 1, 1], [], []>} : vector<4x32xf32>, vector<32x96xf32>, vector<4x96xf32> -> vector<4x96xf32>
    %56 = vector.extract_strided_slice %33 {offsets = [0, 0], sizes = [4, 64], strides = [1, 1]} : vector<4x96xf32> to vector<4x64xf32>
    %57 = vector.extract_strided_slice %55 {offsets = [0, 0], sizes = [4, 64], strides = [1, 1]} : vector<4x96xf32> to vector<4x64xf32>
    %58 = arith.addf %56, %57 : vector<4x64xf32>
    %59 = arith.negf %58 : vector<4x64xf32>
    %60 = math.exp %59 : vector<4x64xf32>
    %cst_40 = arith.constant 1.000000e+00 : f32
    %61 = vector.broadcast %cst_40 : f32 to vector<4x64xf32>
    %62 = arith.addf %61, %60 : vector<4x64xf32>
    %63 = arith.divf %61, %62 : vector<4x64xf32>
    %64 = vector.extract_strided_slice %63 {offsets = [0, 0], sizes = [4, 32], strides = [1, 1]} : vector<4x64xf32> to vector<4x32xf32>
    %65 = vector.extract_strided_slice %63 {offsets = [0, 32], sizes = [4, 32], strides = [1, 1]} : vector<4x64xf32> to vector<4x32xf32>
    %66 = vector.extract_strided_slice %33 {offsets = [0, 64], sizes = [4, 32], strides = [1, 1]} : vector<4x96xf32> to vector<4x32xf32>
    %67 = vector.extract_strided_slice %55 {offsets = [0, 64], sizes = [4, 32], strides = [1, 1]} : vector<4x96xf32> to vector<4x32xf32>
    %68 = vector.broadcast %28 : vector<1x32xf32> to vector<4x32xf32>
    %69 = arith.addf %67, %68 : vector<4x32xf32>
    %70 = arith.mulf %64, %69 : vector<4x32xf32>
    %71 = arith.addf %66, %70 : vector<4x32xf32>
    %72 = math.tanh %71 : vector<4x32xf32>
    %73 = arith.subf %29, %72 : vector<4x32xf32>
    %74 = arith.mulf %65, %73 : vector<4x32xf32>
    %75 = arith.addf %72, %74 : vector<4x32xf32>
    %c0_41 = arith.constant 0 : index
    %c0_42 = arith.constant 0 : index
    %c0_43 = arith.constant 0 : index
    %76 = vector.load %arg1[%c0_41, %c0_42, %c0_43] : memref<8x4x1xf32, #tpu.memory_space<vmem>>, vector<1x4x1xf32>
    %77 = vector.shape_cast %76 : vector<1x4x1xf32> to vector<4x1xf32>
    %c7 = arith.constant 7 : index
    %c0_44 = arith.constant 0 : index
    %c0_45 = arith.constant 0 : index
    %78 = vector.load %arg1[%c7, %c0_44, %c0_45] : memref<8x4x1xf32, #tpu.memory_space<vmem>>, vector<1x4x1xf32>
    %79 = vector.shape_cast %78 : vector<1x4x1xf32> to vector<4x1xf32>
    %80 = arith.subf %54, %29 : vector<4x32xf32>
    %81 = vector.broadcast %77 : vector<4x1xf32> to vector<4x32xf32>
    %82 = arith.mulf %81, %80 : vector<4x32xf32>
    %83 = arith.addf %29, %82 : vector<4x32xf32>
    %84 = arith.subf %75, %29 : vector<4x32xf32>
    %85 = vector.broadcast %79 : vector<4x1xf32> to vector<4x32xf32>
    %86 = arith.mulf %85, %84 : vector<4x32xf32>
    %87 = arith.addf %29, %86 : vector<4x32xf32>
    %c0_46 = arith.constant 0 : index
    %c0_47 = arith.constant 0 : index
    %c0_48 = arith.constant 0 : index
    %88 = vector.load %arg17[%c0_46, %c0_47, %c0_48] : memref<2x32x32xf32, #tpu.memory_space<vmem>>, vector<1x4x32xf32>
    %89 = vector.shape_cast %88 : vector<1x4x32xf32> to vector<4x32xf32>
    %90 = vector.shape_cast %83 : vector<4x32xf32> to vector<1x4x32xf32>
    tpu.vector_store %arg17[%c0_46, %c0_47, %c0_48], %90 {strides = array<i32>} : memref<2x32x32xf32, #tpu.memory_space<vmem>>, vector<1x4x32xf32>,
    %c1_49 = arith.constant 1 : index
    %c28_50 = arith.constant 28 : index
    %c0_51 = arith.constant 0 : index
    %91 = vector.load %arg17[%c1_49, %c28_50, %c0_51] : memref<2x32x32xf32, #tpu.memory_space<vmem>>, vector<1x4x32xf32>
    %92 = vector.shape_cast %91 : vector<1x4x32xf32> to vector<4x32xf32>
    %93 = vector.shape_cast %87 : vector<4x32xf32> to vector<1x4x32xf32>
    tpu.vector_store %arg17[%c1_49, %c28_50, %c0_51], %93 {strides = array<i32>} : memref<2x32x32xf32, #tpu.memory_space<vmem>>, vector<1x4x32xf32>,
    %c0_52 = arith.constant 0 : index
    %c4 = arith.constant 4 : index
    %c0_53 = arith.constant 0 : index
    %94 = vector.load %arg15[%c0_52, %c4, %c0_53] : memref<2x32x96xf32, #tpu.memory_space<vmem>>, vector<1x4x96xf32>
    %95 = vector.shape_cast %94 : vector<1x4x96xf32> to vector<4x96xf32>
    %c1_54 = arith.constant 1 : index
    %c24 = arith.constant 24 : index
    %c0_55 = arith.constant 0 : index
    %96 = vector.load %arg15[%c1_54, %c24, %c0_55] : memref<2x32x96xf32, #tpu.memory_space<vmem>>, vector<1x4x96xf32>
    %97 = vector.shape_cast %96 : vector<1x4x96xf32> to vector<4x96xf32>
    %cst_56 = arith.constant dense<0.000000e+00> : vector<4x96xf32>
    %98 = tpu.matmul %83, %22, %cst_56 {dimension_numbers = #tpu.dot_dimension_numbers<[1], [0], [0], [1], [0, 0, 1, 1], [], []>} : vector<4x32xf32>, vector<32x96xf32>, vector<4x96xf32> -> vector<4x96xf32>
    %99 = vector.extract_strided_slice %95 {offsets = [0, 0], sizes = [4, 64], strides = [1, 1]} : vector<4x96xf32> to vector<4x64xf32>
    %100 = vector.extract_strided_slice %98 {offsets = [0, 0], sizes = [4, 64], strides = [1, 1]} : vector<4x96xf32> to vector<4x64xf32>
    %101 = arith.addf %99, %100 : vector<4x64xf32>
    %102 = arith.negf %101 : vector<4x64xf32>
    %103 = math.exp %102 : vector<4x64xf32>
    %cst_57 = arith.constant 1.000000e+00 : f32
    %104 = vector.broadcast %cst_57 : f32 to vector<4x64xf32>
    %105 = arith.addf %104, %103 : vector<4x64xf32>
    %106 = arith.divf %104, %105 : vector<4x64xf32>
    %107 = vector.extract_strided_slice %106 {offsets = [0, 0], sizes = [4, 32], strides = [1, 1]} : vector<4x64xf32> to vector<4x32xf32>
    %108 = vector.extract_strided_slice %106 {offsets = [0, 32], sizes = [4, 32], strides = [1, 1]} : vector<4x64xf32> to vector<4x32xf32>
    %109 = vector.extract_strided_slice %95 {offsets = [0, 64], sizes = [4, 32], strides = [1, 1]} : vector<4x96xf32> to vector<4x32xf32>
    %110 = vector.extract_strided_slice %98 {offsets = [0, 64], sizes = [4, 32], strides = [1, 1]} : vector<4x96xf32> to vector<4x32xf32>
    %111 = vector.broadcast %26 : vector<1x32xf32> to vector<4x32xf32>
    %112 = arith.addf %110, %111 : vector<4x32xf32>
    %113 = arith.mulf %107, %112 : vector<4x32xf32>
    %114 = arith.addf %109, %113 : vector<4x32xf32>
    %115 = math.tanh %114 : vector<4x32xf32>
    %116 = arith.subf %83, %115 : vector<4x32xf32>
    %117 = arith.mulf %108, %116 : vector<4x32xf32>
    %118 = arith.addf %115, %117 : vector<4x32xf32>
    %cst_58 = arith.constant dense<0.000000e+00> : vector<4x96xf32>
    %119 = tpu.matmul %87, %24, %cst_58 {dimension_numbers = #tpu.dot_dimension_numbers<[1], [0], [0], [1], [0, 0, 1, 1], [], []>} : vector<4x32xf32>, vector<32x96xf32>, vector<4x96xf32> -> vector<4x96xf32>
    %120 = vector.extract_strided_slice %97 {offsets = [0, 0], sizes = [4, 64], strides = [1, 1]} : vector<4x96xf32> to vector<4x64xf32>
    %121 = vector.extract_strided_slice %119 {offsets = [0, 0], sizes = [4, 64], strides = [1, 1]} : vector<4x96xf32> to vector<4x64xf32>
    %122 = arith.addf %120, %121 : vector<4x64xf32>
    %123 = arith.negf %122 : vector<4x64xf32>
    %124 = math.exp %123 : vector<4x64xf32>
    %cst_59 = arith.constant 1.000000e+00 : f32
    %125 = vector.broadcast %cst_59 : f32 to vector<4x64xf32>
    %126 = arith.addf %125, %124 : vector<4x64xf32>
    %127 = arith.divf %125, %126 : vector<4x64xf32>
    %128 = vector.extract_strided_slice %127 {offsets = [0, 0], sizes = [4, 32], strides = [1, 1]} : vector<4x64xf32> to vector<4x32xf32>
    %129 = vector.extract_strided_slice %127 {offsets = [0, 32], sizes = [4, 32], strides = [1, 1]} : vector<4x64xf32> to vector<4x32xf32>
    %130 = vector.extract_strided_slice %97 {offsets = [0, 64], sizes = [4, 32], strides = [1, 1]} : vector<4x96xf32> to vector<4x32xf32>
    %131 = vector.extract_strided_slice %119 {offsets = [0, 64], sizes = [4, 32], strides = [1, 1]} : vector<4x96xf32> to vector<4x32xf32>
    %132 = vector.broadcast %28 : vector<1x32xf32> to vector<4x32xf32>
    %133 = arith.addf %131, %132 : vector<4x32xf32>
    %134 = arith.mulf %128, %133 : vector<4x32xf32>
    %135 = arith.addf %130, %134 : vector<4x32xf32>
    %136 = math.tanh %135 : vector<4x32xf32>
    %137 = arith.subf %87, %136 : vector<4x32xf32>
    %138 = arith.mulf %129, %137 : vector<4x32xf32>
    %139 = arith.addf %136, %138 : vector<4x32xf32>
    %c1_60 = arith.constant 1 : index
    %c0_61 = arith.constant 0 : index
    %c0_62 = arith.constant 0 : index
    %140 = vector.load %arg1[%c1_60, %c0_61, %c0_62] : memref<8x4x1xf32, #tpu.memory_space<vmem>>, vector<1x4x1xf32>
    %141 = vector.shape_cast %140 : vector<1x4x1xf32> to vector<4x1xf32>
    %c6 = arith.constant 6 : index
    %c0_63 = arith.constant 0 : index
    %c0_64 = arith.constant 0 : index
    %142 = vector.load %arg1[%c6, %c0_63, %c0_64] : memref<8x4x1xf32, #tpu.memory_space<vmem>>, vector<1x4x1xf32>
    %143 = vector.shape_cast %142 : vector<1x4x1xf32> to vector<4x1xf32>
    %144 = arith.subf %118, %83 : vector<4x32xf32>
    %145 = vector.broadcast %141 : vector<4x1xf32> to vector<4x32xf32>
    %146 = arith.mulf %145, %144 : vector<4x32xf32>
    %147 = arith.addf %83, %146 : vector<4x32xf32>
    %148 = arith.subf %139, %87 : vector<4x32xf32>
    %149 = vector.broadcast %143 : vector<4x1xf32> to vector<4x32xf32>
    %150 = arith.mulf %149, %148 : vector<4x32xf32>
    %151 = arith.addf %87, %150 : vector<4x32xf32>
    %c0_65 = arith.constant 0 : index
    %c4_66 = arith.constant 4 : index
    %c0_67 = arith.constant 0 : index
    %152 = vector.load %arg17[%c0_65, %c4_66, %c0_67] : memref<2x32x32xf32, #tpu.memory_space<vmem>>, vector<1x4x32xf32>
    %153 = vector.shape_cast %152 : vector<1x4x32xf32> to vector<4x32xf32>
    %154 = vector.shape_cast %147 : vector<4x32xf32> to vector<1x4x32xf32>
    tpu.vector_store %arg17[%c0_65, %c4_66, %c0_67], %154 {strides = array<i32>} : memref<2x32x32xf32, #tpu.memory_space<vmem>>, vector<1x4x32xf32>,
    %c1_68 = arith.constant 1 : index
    %c24_69 = arith.constant 24 : index
    %c0_70 = arith.constant 0 : index
    %155 = vector.load %arg17[%c1_68, %c24_69, %c0_70] : memref<2x32x32xf32, #tpu.memory_space<vmem>>, vector<1x4x32xf32>
    %156 = vector.shape_cast %155 : vector<1x4x32xf32> to vector<4x32xf32>
    %157 = vector.shape_cast %151 : vector<4x32xf32> to vector<1x4x32xf32>
    tpu.vector_store %arg17[%c1_68, %c24_69, %c0_70], %157 {strides = array<i32>} : memref<2x32x32xf32, #tpu.memory_space<vmem>>, vector<1x4x32xf32>,
    %c0_71 = arith.constant 0 : index
    %c8 = arith.constant 8 : index
    %c0_72 = arith.constant 0 : index
    %158 = vector.load %arg15[%c0_71, %c8, %c0_72] : memref<2x32x96xf32, #tpu.memory_space<vmem>>, vector<1x4x96xf32>
    %159 = vector.shape_cast %158 : vector<1x4x96xf32> to vector<4x96xf32>
    %c1_73 = arith.constant 1 : index
    %c20 = arith.constant 20 : index
    %c0_74 = arith.constant 0 : index
    %160 = vector.load %arg15[%c1_73, %c20, %c0_74] : memref<2x32x96xf32, #tpu.memory_space<vmem>>, vector<1x4x96xf32>
    %161 = vector.shape_cast %160 : vector<1x4x96xf32> to vector<4x96xf32>
    %cst_75 = arith.constant dense<0.000000e+00> : vector<4x96xf32>
    %162 = tpu.matmul %147, %22, %cst_75 {dimension_numbers = #tpu.dot_dimension_numbers<[1], [0], [0], [1], [0, 0, 1, 1], [], []>} : vector<4x32xf32>, vector<32x96xf32>, vector<4x96xf32> -> vector<4x96xf32>
    %163 = vector.extract_strided_slice %159 {offsets = [0, 0], sizes = [4, 64], strides = [1, 1]} : vector<4x96xf32> to vector<4x64xf32>
    %164 = vector.extract_strided_slice %162 {offsets = [0, 0], sizes = [4, 64], strides = [1, 1]} : vector<4x96xf32> to vector<4x64xf32>
    %165 = arith.addf %163, %164 : vector<4x64xf32>
    %166 = arith.negf %165 : vector<4x64xf32>
    %167 = math.exp %166 : vector<4x64xf32>
    %cst_76 = arith.constant 1.000000e+00 : f32
    %168 = vector.broadcast %cst_76 : f32 to vector<4x64xf32>
    %169 = arith.addf %168, %167 : vector<4x64xf32>
    %170 = arith.divf %168, %169 : vector<4x64xf32>
    %171 = vector.extract_strided_slice %170 {offsets = [0, 0], sizes = [4, 32], strides = [1, 1]} : vector<4x64xf32> to vector<4x32xf32>
    %172 = vector.extract_strided_slice %170 {offsets = [0, 32], sizes = [4, 32], strides = [1, 1]} : vector<4x64xf32> to vector<4x32xf32>
    %173 = vector.extract_strided_slice %159 {offsets = [0, 64], sizes = [4, 32], strides = [1, 1]} : vector<4x96xf32> to vector<4x32xf32>
    %174 = vector.extract_strided_slice %162 {offsets = [0, 64], sizes = [4, 32], strides = [1, 1]} : vector<4x96xf32> to vector<4x32xf32>
    %175 = vector.broadcast %26 : vector<1x32xf32> to vector<4x32xf32>
    %176 = arith.addf %174, %175 : vector<4x32xf32>
    %177 = arith.mulf %171, %176 : vector<4x32xf32>
    %178 = arith.addf %173, %177 : vector<4x32xf32>
    %179 = math.tanh %178 : vector<4x32xf32>
    %180 = arith.subf %147, %179 : vector<4x32xf32>
    %181 = arith.mulf %172, %180 : vector<4x32xf32>
    %182 = arith.addf %179, %181 : vector<4x32xf32>
    %cst_77 = arith.constant dense<0.000000e+00> : vector<4x96xf32>
    %183 = tpu.matmul %151, %24, %cst_77 {dimension_numbers = #tpu.dot_dimension_numbers<[1], [0], [0], [1], [0, 0, 1, 1], [], []>} : vector<4x32xf32>, vector<32x96xf32>, vector<4x96xf32> -> vector<4x96xf32>
    %184 = vector.extract_strided_slice %161 {offsets = [0, 0], sizes = [4, 64], strides = [1, 1]} : vector<4x96xf32> to vector<4x64xf32>
    %185 = vector.extract_strided_slice %183 {offsets = [0, 0], sizes = [4, 64], strides = [1, 1]} : vector<4x96xf32> to vector<4x64xf32>
    %186 = arith.addf %184, %185 : vector<4x64xf32>
    %187 = arith.negf %186 : vector<4x64xf32>
    %188 = math.exp %187 : vector<4x64xf32>
    %cst_78 = arith.constant 1.000000e+00 : f32
    %189 = vector.broadcast %cst_78 : f32 to vector<4x64xf32>
    %190 = arith.addf %189, %188 : vector<4x64xf32>
    %191 = arith.divf %189, %190 : vector<4x64xf32>
    %192 = vector.extract_strided_slice %191 {offsets = [0, 0], sizes = [4, 32], strides = [1, 1]} : vector<4x64xf32> to vector<4x32xf32>
    %193 = vector.extract_strided_slice %191 {offsets = [0, 32], sizes = [4, 32], strides = [1, 1]} : vector<4x64xf32> to vector<4x32xf32>
    %194 = vector.extract_strided_slice %161 {offsets = [0, 64], sizes = [4, 32], strides = [1, 1]} : vector<4x96xf32> to vector<4x32xf32>
    %195 = vector.extract_strided_slice %183 {offsets = [0, 64], sizes = [4, 32], strides = [1, 1]} : vector<4x96xf32> to vector<4x32xf32>
    %196 = vector.broadcast %28 : vector<1x32xf32> to vector<4x32xf32>
    %197 = arith.addf %195, %196 : vector<4x32xf32>
    %198 = arith.mulf %192, %197 : vector<4x32xf32>
    %199 = arith.addf %194, %198 : vector<4x32xf32>
    %200 = math.tanh %199 : vector<4x32xf32>
    %201 = arith.subf %151, %200 : vector<4x32xf32>
    %202 = arith.mulf %193, %201 : vector<4x32xf32>
    %203 = arith.addf %200, %202 : vector<4x32xf32>
    %c2 = arith.constant 2 : index
    %c0_79 = arith.constant 0 : index
    %c0_80 = arith.constant 0 : index
    %204 = vector.load %arg1[%c2, %c0_79, %c0_80] : memref<8x4x1xf32, #tpu.memory_space<vmem>>, vector<1x4x1xf32>
    %205 = vector.shape_cast %204 : vector<1x4x1xf32> to vector<4x1xf32>
    %c5 = arith.constant 5 : index
    %c0_81 = arith.constant 0 : index
    %c0_82 = arith.constant 0 : index
    %206 = vector.load %arg1[%c5, %c0_81, %c0_82] : memref<8x4x1xf32, #tpu.memory_space<vmem>>, vector<1x4x1xf32>
    %207 = vector.shape_cast %206 : vector<1x4x1xf32> to vector<4x1xf32>
    %208 = arith.subf %182, %147 : vector<4x32xf32>
    %209 = vector.broadcast %205 : vector<4x1xf32> to vector<4x32xf32>
    %210 = arith.mulf %209, %208 : vector<4x32xf32>
    %211 = arith.addf %147, %210 : vector<4x32xf32>
    %212 = arith.subf %203, %151 : vector<4x32xf32>
    %213 = vector.broadcast %207 : vector<4x1xf32> to vector<4x32xf32>
    %214 = arith.mulf %213, %212 : vector<4x32xf32>
    %215 = arith.addf %151, %214 : vector<4x32xf32>
    %c0_83 = arith.constant 0 : index
    %c8_84 = arith.constant 8 : index
    %c0_85 = arith.constant 0 : index
    %216 = vector.load %arg17[%c0_83, %c8_84, %c0_85] : memref<2x32x32xf32, #tpu.memory_space<vmem>>, vector<1x4x32xf32>
    %217 = vector.shape_cast %216 : vector<1x4x32xf32> to vector<4x32xf32>
    %218 = vector.shape_cast %211 : vector<4x32xf32> to vector<1x4x32xf32>
    tpu.vector_store %arg17[%c0_83, %c8_84, %c0_85], %218 {strides = array<i32>} : memref<2x32x32xf32, #tpu.memory_space<vmem>>, vector<1x4x32xf32>,
    %c1_86 = arith.constant 1 : index
    %c20_87 = arith.constant 20 : index
    %c0_88 = arith.constant 0 : index
    %219 = vector.load %arg17[%c1_86, %c20_87, %c0_88] : memref<2x32x32xf32, #tpu.memory_space<vmem>>, vector<1x4x32xf32>
    %220 = vector.shape_cast %219 : vector<1x4x32xf32> to vector<4x32xf32>
    %221 = vector.shape_cast %215 : vector<4x32xf32> to vector<1x4x32xf32>
    tpu.vector_store %arg17[%c1_86, %c20_87, %c0_88], %221 {strides = array<i32>} : memref<2x32x32xf32, #tpu.memory_space<vmem>>, vector<1x4x32xf32>,
    %c0_89 = arith.constant 0 : index
    %c12 = arith.constant 12 : index
    %c0_90 = arith.constant 0 : index
    %222 = vector.load %arg15[%c0_89, %c12, %c0_90] : memref<2x32x96xf32, #tpu.memory_space<vmem>>, vector<1x4x96xf32>
    %223 = vector.shape_cast %222 : vector<1x4x96xf32> to vector<4x96xf32>
    %c1_91 = arith.constant 1 : index
    %c16 = arith.constant 16 : index
    %c0_92 = arith.constant 0 : index
    %224 = vector.load %arg15[%c1_91, %c16, %c0_92] : memref<2x32x96xf32, #tpu.memory_space<vmem>>, vector<1x4x96xf32>
    %225 = vector.shape_cast %224 : vector<1x4x96xf32> to vector<4x96xf32>
    %cst_93 = arith.constant dense<0.000000e+00> : vector<4x96xf32>
    %226 = tpu.matmul %211, %22, %cst_93 {dimension_numbers = #tpu.dot_dimension_numbers<[1], [0], [0], [1], [0, 0, 1, 1], [], []>} : vector<4x32xf32>, vector<32x96xf32>, vector<4x96xf32> -> vector<4x96xf32>
    %227 = vector.extract_strided_slice %223 {offsets = [0, 0], sizes = [4, 64], strides = [1, 1]} : vector<4x96xf32> to vector<4x64xf32>
    %228 = vector.extract_strided_slice %226 {offsets = [0, 0], sizes = [4, 64], strides = [1, 1]} : vector<4x96xf32> to vector<4x64xf32>
    %229 = arith.addf %227, %228 : vector<4x64xf32>
    %230 = arith.negf %229 : vector<4x64xf32>
    %231 = math.exp %230 : vector<4x64xf32>
    %cst_94 = arith.constant 1.000000e+00 : f32
    %232 = vector.broadcast %cst_94 : f32 to vector<4x64xf32>
    %233 = arith.addf %232, %231 : vector<4x64xf32>
    %234 = arith.divf %232, %233 : vector<4x64xf32>
    %235 = vector.extract_strided_slice %234 {offsets = [0, 0], sizes = [4, 32], strides = [1, 1]} : vector<4x64xf32> to vector<4x32xf32>
    %236 = vector.extract_strided_slice %234 {offsets = [0, 32], sizes = [4, 32], strides = [1, 1]} : vector<4x64xf32> to vector<4x32xf32>
    %237 = vector.extract_strided_slice %223 {offsets = [0, 64], sizes = [4, 32], strides = [1, 1]} : vector<4x96xf32> to vector<4x32xf32>
    %238 = vector.extract_strided_slice %226 {offsets = [0, 64], sizes = [4, 32], strides = [1, 1]} : vector<4x96xf32> to vector<4x32xf32>
    %239 = vector.broadcast %26 : vector<1x32xf32> to vector<4x32xf32>
    %240 = arith.addf %238, %239 : vector<4x32xf32>
    %241 = arith.mulf %235, %240 : vector<4x32xf32>
    %242 = arith.addf %237, %241 : vector<4x32xf32>
    %243 = math.tanh %242 : vector<4x32xf32>
    %244 = arith.subf %211, %243 : vector<4x32xf32>
    %245 = arith.mulf %236, %244 : vector<4x32xf32>
    %246 = arith.addf %243, %245 : vector<4x32xf32>
    %cst_95 = arith.constant dense<0.000000e+00> : vector<4x96xf32>
    %247 = tpu.matmul %215, %24, %cst_95 {dimension_numbers = #tpu.dot_dimension_numbers<[1], [0], [0], [1], [0, 0, 1, 1], [], []>} : vector<4x32xf32>, vector<32x96xf32>, vector<4x96xf32> -> vector<4x96xf32>
    %248 = vector.extract_strided_slice %225 {offsets = [0, 0], sizes = [4, 64], strides = [1, 1]} : vector<4x96xf32> to vector<4x64xf32>
    %249 = vector.extract_strided_slice %247 {offsets = [0, 0], sizes = [4, 64], strides = [1, 1]} : vector<4x96xf32> to vector<4x64xf32>
    %250 = arith.addf %248, %249 : vector<4x64xf32>
    %251 = arith.negf %250 : vector<4x64xf32>
    %252 = math.exp %251 : vector<4x64xf32>
    %cst_96 = arith.constant 1.000000e+00 : f32
    %253 = vector.broadcast %cst_96 : f32 to vector<4x64xf32>
    %254 = arith.addf %253, %252 : vector<4x64xf32>
    %255 = arith.divf %253, %254 : vector<4x64xf32>
    %256 = vector.extract_strided_slice %255 {offsets = [0, 0], sizes = [4, 32], strides = [1, 1]} : vector<4x64xf32> to vector<4x32xf32>
    %257 = vector.extract_strided_slice %255 {offsets = [0, 32], sizes = [4, 32], strides = [1, 1]} : vector<4x64xf32> to vector<4x32xf32>
    %258 = vector.extract_strided_slice %225 {offsets = [0, 64], sizes = [4, 32], strides = [1, 1]} : vector<4x96xf32> to vector<4x32xf32>
    %259 = vector.extract_strided_slice %247 {offsets = [0, 64], sizes = [4, 32], strides = [1, 1]} : vector<4x96xf32> to vector<4x32xf32>
    %260 = vector.broadcast %28 : vector<1x32xf32> to vector<4x32xf32>
    %261 = arith.addf %259, %260 : vector<4x32xf32>
    %262 = arith.mulf %256, %261 : vector<4x32xf32>
    %263 = arith.addf %258, %262 : vector<4x32xf32>
    %264 = math.tanh %263 : vector<4x32xf32>
    %265 = arith.subf %215, %264 : vector<4x32xf32>
    %266 = arith.mulf %257, %265 : vector<4x32xf32>
    %267 = arith.addf %264, %266 : vector<4x32xf32>
    %c3 = arith.constant 3 : index
    %c0_97 = arith.constant 0 : index
    %c0_98 = arith.constant 0 : index
    %268 = vector.load %arg1[%c3, %c0_97, %c0_98] : memref<8x4x1xf32, #tpu.memory_space<vmem>>, vector<1x4x1xf32>
    %269 = vector.shape_cast %268 : vector<1x4x1xf32> to vector<4x1xf32>
    %c4_99 = arith.constant 4 : index
    %c0_100 = arith.constant 0 : index
    %c0_101 = arith.constant 0 : index
    %270 = vector.load %arg1[%c4_99, %c0_100, %c0_101] : memref<8x4x1xf32, #tpu.memory_space<vmem>>, vector<1x4x1xf32>
    %271 = vector.shape_cast %270 : vector<1x4x1xf32> to vector<4x1xf32>
    %272 = arith.subf %246, %211 : vector<4x32xf32>
    %273 = vector.broadcast %269 : vector<4x1xf32> to vector<4x32xf32>
    %274 = arith.mulf %273, %272 : vector<4x32xf32>
    %275 = arith.addf %211, %274 : vector<4x32xf32>
    %276 = arith.subf %267, %215 : vector<4x32xf32>
    %277 = vector.broadcast %271 : vector<4x1xf32> to vector<4x32xf32>
    %278 = arith.mulf %277, %276 : vector<4x32xf32>
    %279 = arith.addf %215, %278 : vector<4x32xf32>
    %c0_102 = arith.constant 0 : index
    %c12_103 = arith.constant 12 : index
    %c0_104 = arith.constant 0 : index
    %280 = vector.load %arg17[%c0_102, %c12_103, %c0_104] : memref<2x32x32xf32, #tpu.memory_space<vmem>>, vector<1x4x32xf32>
    %281 = vector.shape_cast %280 : vector<1x4x32xf32> to vector<4x32xf32>
    %282 = vector.shape_cast %275 : vector<4x32xf32> to vector<1x4x32xf32>
    tpu.vector_store %arg17[%c0_102, %c12_103, %c0_104], %282 {strides = array<i32>} : memref<2x32x32xf32, #tpu.memory_space<vmem>>, vector<1x4x32xf32>,
    %c1_105 = arith.constant 1 : index
    %c16_106 = arith.constant 16 : index
    %c0_107 = arith.constant 0 : index
    %283 = vector.load %arg17[%c1_105, %c16_106, %c0_107] : memref<2x32x32xf32, #tpu.memory_space<vmem>>, vector<1x4x32xf32>
    %284 = vector.shape_cast %283 : vector<1x4x32xf32> to vector<4x32xf32>
    %285 = vector.shape_cast %279 : vector<4x32xf32> to vector<1x4x32xf32>
    tpu.vector_store %arg17[%c1_105, %c16_106, %c0_107], %285 {strides = array<i32>} : memref<2x32x32xf32, #tpu.memory_space<vmem>>, vector<1x4x32xf32>,
    %c0_108 = arith.constant 0 : index
    %c16_109 = arith.constant 16 : index
    %c0_110 = arith.constant 0 : index
    %286 = vector.load %arg15[%c0_108, %c16_109, %c0_110] : memref<2x32x96xf32, #tpu.memory_space<vmem>>, vector<1x4x96xf32>
    %287 = vector.shape_cast %286 : vector<1x4x96xf32> to vector<4x96xf32>
    %c1_111 = arith.constant 1 : index
    %c12_112 = arith.constant 12 : index
    %c0_113 = arith.constant 0 : index
    %288 = vector.load %arg15[%c1_111, %c12_112, %c0_113] : memref<2x32x96xf32, #tpu.memory_space<vmem>>, vector<1x4x96xf32>
    %289 = vector.shape_cast %288 : vector<1x4x96xf32> to vector<4x96xf32>
    %cst_114 = arith.constant dense<0.000000e+00> : vector<4x96xf32>
    %290 = tpu.matmul %275, %22, %cst_114 {dimension_numbers = #tpu.dot_dimension_numbers<[1], [0], [0], [1], [0, 0, 1, 1], [], []>} : vector<4x32xf32>, vector<32x96xf32>, vector<4x96xf32> -> vector<4x96xf32>
    %291 = vector.extract_strided_slice %287 {offsets = [0, 0], sizes = [4, 64], strides = [1, 1]} : vector<4x96xf32> to vector<4x64xf32>
    %292 = vector.extract_strided_slice %290 {offsets = [0, 0], sizes = [4, 64], strides = [1, 1]} : vector<4x96xf32> to vector<4x64xf32>
    %293 = arith.addf %291, %292 : vector<4x64xf32>
    %294 = arith.negf %293 : vector<4x64xf32>
    %295 = math.exp %294 : vector<4x64xf32>
    %cst_115 = arith.constant 1.000000e+00 : f32
    %296 = vector.broadcast %cst_115 : f32 to vector<4x64xf32>
    %297 = arith.addf %296, %295 : vector<4x64xf32>
    %298 = arith.divf %296, %297 : vector<4x64xf32>
    %299 = vector.extract_strided_slice %298 {offsets = [0, 0], sizes = [4, 32], strides = [1, 1]} : vector<4x64xf32> to vector<4x32xf32>
    %300 = vector.extract_strided_slice %298 {offsets = [0, 32], sizes = [4, 32], strides = [1, 1]} : vector<4x64xf32> to vector<4x32xf32>
    %301 = vector.extract_strided_slice %287 {offsets = [0, 64], sizes = [4, 32], strides = [1, 1]} : vector<4x96xf32> to vector<4x32xf32>
    %302 = vector.extract_strided_slice %290 {offsets = [0, 64], sizes = [4, 32], strides = [1, 1]} : vector<4x96xf32> to vector<4x32xf32>
    %303 = vector.broadcast %26 : vector<1x32xf32> to vector<4x32xf32>
    %304 = arith.addf %302, %303 : vector<4x32xf32>
    %305 = arith.mulf %299, %304 : vector<4x32xf32>
    %306 = arith.addf %301, %305 : vector<4x32xf32>
    %307 = math.tanh %306 : vector<4x32xf32>
    %308 = arith.subf %275, %307 : vector<4x32xf32>
    %309 = arith.mulf %300, %308 : vector<4x32xf32>
    %310 = arith.addf %307, %309 : vector<4x32xf32>
    %cst_116 = arith.constant dense<0.000000e+00> : vector<4x96xf32>
    %311 = tpu.matmul %279, %24, %cst_116 {dimension_numbers = #tpu.dot_dimension_numbers<[1], [0], [0], [1], [0, 0, 1, 1], [], []>} : vector<4x32xf32>, vector<32x96xf32>, vector<4x96xf32> -> vector<4x96xf32>
    %312 = vector.extract_strided_slice %289 {offsets = [0, 0], sizes = [4, 64], strides = [1, 1]} : vector<4x96xf32> to vector<4x64xf32>
    %313 = vector.extract_strided_slice %311 {offsets = [0, 0], sizes = [4, 64], strides = [1, 1]} : vector<4x96xf32> to vector<4x64xf32>
    %314 = arith.addf %312, %313 : vector<4x64xf32>
    %315 = arith.negf %314 : vector<4x64xf32>
    %316 = math.exp %315 : vector<4x64xf32>
    %cst_117 = arith.constant 1.000000e+00 : f32
    %317 = vector.broadcast %cst_117 : f32 to vector<4x64xf32>
    %318 = arith.addf %317, %316 : vector<4x64xf32>
    %319 = arith.divf %317, %318 : vector<4x64xf32>
    %320 = vector.extract_strided_slice %319 {offsets = [0, 0], sizes = [4, 32], strides = [1, 1]} : vector<4x64xf32> to vector<4x32xf32>
    %321 = vector.extract_strided_slice %319 {offsets = [0, 32], sizes = [4, 32], strides = [1, 1]} : vector<4x64xf32> to vector<4x32xf32>
    %322 = vector.extract_strided_slice %289 {offsets = [0, 64], sizes = [4, 32], strides = [1, 1]} : vector<4x96xf32> to vector<4x32xf32>
    %323 = vector.extract_strided_slice %311 {offsets = [0, 64], sizes = [4, 32], strides = [1, 1]} : vector<4x96xf32> to vector<4x32xf32>
    %324 = vector.broadcast %28 : vector<1x32xf32> to vector<4x32xf32>
    %325 = arith.addf %323, %324 : vector<4x32xf32>
    %326 = arith.mulf %320, %325 : vector<4x32xf32>
    %327 = arith.addf %322, %326 : vector<4x32xf32>
    %328 = math.tanh %327 : vector<4x32xf32>
    %329 = arith.subf %279, %328 : vector<4x32xf32>
    %330 = arith.mulf %321, %329 : vector<4x32xf32>
    %331 = arith.addf %328, %330 : vector<4x32xf32>
    %c4_118 = arith.constant 4 : index
    %c0_119 = arith.constant 0 : index
    %c0_120 = arith.constant 0 : index
    %332 = vector.load %arg1[%c4_118, %c0_119, %c0_120] : memref<8x4x1xf32, #tpu.memory_space<vmem>>, vector<1x4x1xf32>
    %333 = vector.shape_cast %332 : vector<1x4x1xf32> to vector<4x1xf32>
    %c3_121 = arith.constant 3 : index
    %c0_122 = arith.constant 0 : index
    %c0_123 = arith.constant 0 : index
    %334 = vector.load %arg1[%c3_121, %c0_122, %c0_123] : memref<8x4x1xf32, #tpu.memory_space<vmem>>, vector<1x4x1xf32>
    %335 = vector.shape_cast %334 : vector<1x4x1xf32> to vector<4x1xf32>
    %336 = arith.subf %310, %275 : vector<4x32xf32>
    %337 = vector.broadcast %333 : vector<4x1xf32> to vector<4x32xf32>
    %338 = arith.mulf %337, %336 : vector<4x32xf32>
    %339 = arith.addf %275, %338 : vector<4x32xf32>
    %340 = arith.subf %331, %279 : vector<4x32xf32>
    %341 = vector.broadcast %335 : vector<4x1xf32> to vector<4x32xf32>
    %342 = arith.mulf %341, %340 : vector<4x32xf32>
    %343 = arith.addf %279, %342 : vector<4x32xf32>
    %c0_124 = arith.constant 0 : index
    %c16_125 = arith.constant 16 : index
    %c0_126 = arith.constant 0 : index
    %344 = vector.load %arg17[%c0_124, %c16_125, %c0_126] : memref<2x32x32xf32, #tpu.memory_space<vmem>>, vector<1x4x32xf32>
    %345 = vector.shape_cast %344 : vector<1x4x32xf32> to vector<4x32xf32>
    %346 = vector.shape_cast %339 : vector<4x32xf32> to vector<1x4x32xf32>
    tpu.vector_store %arg17[%c0_124, %c16_125, %c0_126], %346 {strides = array<i32>} : memref<2x32x32xf32, #tpu.memory_space<vmem>>, vector<1x4x32xf32>,
    %c1_127 = arith.constant 1 : index
    %c12_128 = arith.constant 12 : index
    %c0_129 = arith.constant 0 : index
    %347 = vector.load %arg17[%c1_127, %c12_128, %c0_129] : memref<2x32x32xf32, #tpu.memory_space<vmem>>, vector<1x4x32xf32>
    %348 = vector.shape_cast %347 : vector<1x4x32xf32> to vector<4x32xf32>
    %349 = vector.shape_cast %343 : vector<4x32xf32> to vector<1x4x32xf32>
    tpu.vector_store %arg17[%c1_127, %c12_128, %c0_129], %349 {strides = array<i32>} : memref<2x32x32xf32, #tpu.memory_space<vmem>>, vector<1x4x32xf32>,
    %c0_130 = arith.constant 0 : index
    %c20_131 = arith.constant 20 : index
    %c0_132 = arith.constant 0 : index
    %350 = vector.load %arg15[%c0_130, %c20_131, %c0_132] : memref<2x32x96xf32, #tpu.memory_space<vmem>>, vector<1x4x96xf32>
    %351 = vector.shape_cast %350 : vector<1x4x96xf32> to vector<4x96xf32>
    %c1_133 = arith.constant 1 : index
    %c8_134 = arith.constant 8 : index
    %c0_135 = arith.constant 0 : index
    %352 = vector.load %arg15[%c1_133, %c8_134, %c0_135] : memref<2x32x96xf32, #tpu.memory_space<vmem>>, vector<1x4x96xf32>
    %353 = vector.shape_cast %352 : vector<1x4x96xf32> to vector<4x96xf32>
    %cst_136 = arith.constant dense<0.000000e+00> : vector<4x96xf32>
    %354 = tpu.matmul %339, %22, %cst_136 {dimension_numbers = #tpu.dot_dimension_numbers<[1], [0], [0], [1], [0, 0, 1, 1], [], []>} : vector<4x32xf32>, vector<32x96xf32>, vector<4x96xf32> -> vector<4x96xf32>
    %355 = vector.extract_strided_slice %351 {offsets = [0, 0], sizes = [4, 64], strides = [1, 1]} : vector<4x96xf32> to vector<4x64xf32>
    %356 = vector.extract_strided_slice %354 {offsets = [0, 0], sizes = [4, 64], strides = [1, 1]} : vector<4x96xf32> to vector<4x64xf32>
    %357 = arith.addf %355, %356 : vector<4x64xf32>
    %358 = arith.negf %357 : vector<4x64xf32>
    %359 = math.exp %358 : vector<4x64xf32>
    %cst_137 = arith.constant 1.000000e+00 : f32
    %360 = vector.broadcast %cst_137 : f32 to vector<4x64xf32>
    %361 = arith.addf %360, %359 : vector<4x64xf32>
    %362 = arith.divf %360, %361 : vector<4x64xf32>
    %363 = vector.extract_strided_slice %362 {offsets = [0, 0], sizes = [4, 32], strides = [1, 1]} : vector<4x64xf32> to vector<4x32xf32>
    %364 = vector.extract_strided_slice %362 {offsets = [0, 32], sizes = [4, 32], strides = [1, 1]} : vector<4x64xf32> to vector<4x32xf32>
    %365 = vector.extract_strided_slice %351 {offsets = [0, 64], sizes = [4, 32], strides = [1, 1]} : vector<4x96xf32> to vector<4x32xf32>
    %366 = vector.extract_strided_slice %354 {offsets = [0, 64], sizes = [4, 32], strides = [1, 1]} : vector<4x96xf32> to vector<4x32xf32>
    %367 = vector.broadcast %26 : vector<1x32xf32> to vector<4x32xf32>
    %368 = arith.addf %366, %367 : vector<4x32xf32>
    %369 = arith.mulf %363, %368 : vector<4x32xf32>
    %370 = arith.addf %365, %369 : vector<4x32xf32>
    %371 = math.tanh %370 : vector<4x32xf32>
    %372 = arith.subf %339, %371 : vector<4x32xf32>
    %373 = arith.mulf %364, %372 : vector<4x32xf32>
    %374 = arith.addf %371, %373 : vector<4x32xf32>
    %cst_138 = arith.constant dense<0.000000e+00> : vector<4x96xf32>
    %375 = tpu.matmul %343, %24, %cst_138 {dimension_numbers = #tpu.dot_dimension_numbers<[1], [0], [0], [1], [0, 0, 1, 1], [], []>} : vector<4x32xf32>, vector<32x96xf32>, vector<4x96xf32> -> vector<4x96xf32>
    %376 = vector.extract_strided_slice %353 {offsets = [0, 0], sizes = [4, 64], strides = [1, 1]} : vector<4x96xf32> to vector<4x64xf32>
    %377 = vector.extract_strided_slice %375 {offsets = [0, 0], sizes = [4, 64], strides = [1, 1]} : vector<4x96xf32> to vector<4x64xf32>
    %378 = arith.addf %376, %377 : vector<4x64xf32>
    %379 = arith.negf %378 : vector<4x64xf32>
    %380 = math.exp %379 : vector<4x64xf32>
    %cst_139 = arith.constant 1.000000e+00 : f32
    %381 = vector.broadcast %cst_139 : f32 to vector<4x64xf32>
    %382 = arith.addf %381, %380 : vector<4x64xf32>
    %383 = arith.divf %381, %382 : vector<4x64xf32>
    %384 = vector.extract_strided_slice %383 {offsets = [0, 0], sizes = [4, 32], strides = [1, 1]} : vector<4x64xf32> to vector<4x32xf32>
    %385 = vector.extract_strided_slice %383 {offsets = [0, 32], sizes = [4, 32], strides = [1, 1]} : vector<4x64xf32> to vector<4x32xf32>
    %386 = vector.extract_strided_slice %353 {offsets = [0, 64], sizes = [4, 32], strides = [1, 1]} : vector<4x96xf32> to vector<4x32xf32>
    %387 = vector.extract_strided_slice %375 {offsets = [0, 64], sizes = [4, 32], strides = [1, 1]} : vector<4x96xf32> to vector<4x32xf32>
    %388 = vector.broadcast %28 : vector<1x32xf32> to vector<4x32xf32>
    %389 = arith.addf %387, %388 : vector<4x32xf32>
    %390 = arith.mulf %384, %389 : vector<4x32xf32>
    %391 = arith.addf %386, %390 : vector<4x32xf32>
    %392 = math.tanh %391 : vector<4x32xf32>
    %393 = arith.subf %343, %392 : vector<4x32xf32>
    %394 = arith.mulf %385, %393 : vector<4x32xf32>
    %395 = arith.addf %392, %394 : vector<4x32xf32>
    %c5_140 = arith.constant 5 : index
    %c0_141 = arith.constant 0 : index
    %c0_142 = arith.constant 0 : index
    %396 = vector.load %arg1[%c5_140, %c0_141, %c0_142] : memref<8x4x1xf32, #tpu.memory_space<vmem>>, vector<1x4x1xf32>
    %397 = vector.shape_cast %396 : vector<1x4x1xf32> to vector<4x1xf32>
    %c2_143 = arith.constant 2 : index
    %c0_144 = arith.constant 0 : index
    %c0_145 = arith.constant 0 : index
    %398 = vector.load %arg1[%c2_143, %c0_144, %c0_145] : memref<8x4x1xf32, #tpu.memory_space<vmem>>, vector<1x4x1xf32>
    %399 = vector.shape_cast %398 : vector<1x4x1xf32> to vector<4x1xf32>
    %400 = arith.subf %374, %339 : vector<4x32xf32>
    %401 = vector.broadcast %397 : vector<4x1xf32> to vector<4x32xf32>
    %402 = arith.mulf %401, %400 : vector<4x32xf32>
    %403 = arith.addf %339, %402 : vector<4x32xf32>
    %404 = arith.subf %395, %343 : vector<4x32xf32>
    %405 = vector.broadcast %399 : vector<4x1xf32> to vector<4x32xf32>
    %406 = arith.mulf %405, %404 : vector<4x32xf32>
    %407 = arith.addf %343, %406 : vector<4x32xf32>
    %c0_146 = arith.constant 0 : index
    %c20_147 = arith.constant 20 : index
    %c0_148 = arith.constant 0 : index
    %408 = vector.load %arg17[%c0_146, %c20_147, %c0_148] : memref<2x32x32xf32, #tpu.memory_space<vmem>>, vector<1x4x32xf32>
    %409 = vector.shape_cast %408 : vector<1x4x32xf32> to vector<4x32xf32>
    %410 = vector.shape_cast %403 : vector<4x32xf32> to vector<1x4x32xf32>
    tpu.vector_store %arg17[%c0_146, %c20_147, %c0_148], %410 {strides = array<i32>} : memref<2x32x32xf32, #tpu.memory_space<vmem>>, vector<1x4x32xf32>,
    %c1_149 = arith.constant 1 : index
    %c8_150 = arith.constant 8 : index
    %c0_151 = arith.constant 0 : index
    %411 = vector.load %arg17[%c1_149, %c8_150, %c0_151] : memref<2x32x32xf32, #tpu.memory_space<vmem>>, vector<1x4x32xf32>
    %412 = vector.shape_cast %411 : vector<1x4x32xf32> to vector<4x32xf32>
    %413 = vector.shape_cast %407 : vector<4x32xf32> to vector<1x4x32xf32>
    tpu.vector_store %arg17[%c1_149, %c8_150, %c0_151], %413 {strides = array<i32>} : memref<2x32x32xf32, #tpu.memory_space<vmem>>, vector<1x4x32xf32>,
    %c0_152 = arith.constant 0 : index
    %c24_153 = arith.constant 24 : index
    %c0_154 = arith.constant 0 : index
    %414 = vector.load %arg15[%c0_152, %c24_153, %c0_154] : memref<2x32x96xf32, #tpu.memory_space<vmem>>, vector<1x4x96xf32>
    %415 = vector.shape_cast %414 : vector<1x4x96xf32> to vector<4x96xf32>
    %c1_155 = arith.constant 1 : index
    %c4_156 = arith.constant 4 : index
    %c0_157 = arith.constant 0 : index
    %416 = vector.load %arg15[%c1_155, %c4_156, %c0_157] : memref<2x32x96xf32, #tpu.memory_space<vmem>>, vector<1x4x96xf32>
    %417 = vector.shape_cast %416 : vector<1x4x96xf32> to vector<4x96xf32>
    %cst_158 = arith.constant dense<0.000000e+00> : vector<4x96xf32>
    %418 = tpu.matmul %403, %22, %cst_158 {dimension_numbers = #tpu.dot_dimension_numbers<[1], [0], [0], [1], [0, 0, 1, 1], [], []>} : vector<4x32xf32>, vector<32x96xf32>, vector<4x96xf32> -> vector<4x96xf32>
    %419 = vector.extract_strided_slice %415 {offsets = [0, 0], sizes = [4, 64], strides = [1, 1]} : vector<4x96xf32> to vector<4x64xf32>
    %420 = vector.extract_strided_slice %418 {offsets = [0, 0], sizes = [4, 64], strides = [1, 1]} : vector<4x96xf32> to vector<4x64xf32>
    %421 = arith.addf %419, %420 : vector<4x64xf32>
    %422 = arith.negf %421 : vector<4x64xf32>
    %423 = math.exp %422 : vector<4x64xf32>
    %cst_159 = arith.constant 1.000000e+00 : f32
    %424 = vector.broadcast %cst_159 : f32 to vector<4x64xf32>
    %425 = arith.addf %424, %423 : vector<4x64xf32>
    %426 = arith.divf %424, %425 : vector<4x64xf32>
    %427 = vector.extract_strided_slice %426 {offsets = [0, 0], sizes = [4, 32], strides = [1, 1]} : vector<4x64xf32> to vector<4x32xf32>
    %428 = vector.extract_strided_slice %426 {offsets = [0, 32], sizes = [4, 32], strides = [1, 1]} : vector<4x64xf32> to vector<4x32xf32>
    %429 = vector.extract_strided_slice %415 {offsets = [0, 64], sizes = [4, 32], strides = [1, 1]} : vector<4x96xf32> to vector<4x32xf32>
    %430 = vector.extract_strided_slice %418 {offsets = [0, 64], sizes = [4, 32], strides = [1, 1]} : vector<4x96xf32> to vector<4x32xf32>
    %431 = vector.broadcast %26 : vector<1x32xf32> to vector<4x32xf32>
    %432 = arith.addf %430, %431 : vector<4x32xf32>
    %433 = arith.mulf %427, %432 : vector<4x32xf32>
    %434 = arith.addf %429, %433 : vector<4x32xf32>
    %435 = math.tanh %434 : vector<4x32xf32>
    %436 = arith.subf %403, %435 : vector<4x32xf32>
    %437 = arith.mulf %428, %436 : vector<4x32xf32>
    %438 = arith.addf %435, %437 : vector<4x32xf32>
    %cst_160 = arith.constant dense<0.000000e+00> : vector<4x96xf32>
    %439 = tpu.matmul %407, %24, %cst_160 {dimension_numbers = #tpu.dot_dimension_numbers<[1], [0], [0], [1], [0, 0, 1, 1], [], []>} : vector<4x32xf32>, vector<32x96xf32>, vector<4x96xf32> -> vector<4x96xf32>
    %440 = vector.extract_strided_slice %417 {offsets = [0, 0], sizes = [4, 64], strides = [1, 1]} : vector<4x96xf32> to vector<4x64xf32>
    %441 = vector.extract_strided_slice %439 {offsets = [0, 0], sizes = [4, 64], strides = [1, 1]} : vector<4x96xf32> to vector<4x64xf32>
    %442 = arith.addf %440, %441 : vector<4x64xf32>
    %443 = arith.negf %442 : vector<4x64xf32>
    %444 = math.exp %443 : vector<4x64xf32>
    %cst_161 = arith.constant 1.000000e+00 : f32
    %445 = vector.broadcast %cst_161 : f32 to vector<4x64xf32>
    %446 = arith.addf %445, %444 : vector<4x64xf32>
    %447 = arith.divf %445, %446 : vector<4x64xf32>
    %448 = vector.extract_strided_slice %447 {offsets = [0, 0], sizes = [4, 32], strides = [1, 1]} : vector<4x64xf32> to vector<4x32xf32>
    %449 = vector.extract_strided_slice %447 {offsets = [0, 32], sizes = [4, 32], strides = [1, 1]} : vector<4x64xf32> to vector<4x32xf32>
    %450 = vector.extract_strided_slice %417 {offsets = [0, 64], sizes = [4, 32], strides = [1, 1]} : vector<4x96xf32> to vector<4x32xf32>
    %451 = vector.extract_strided_slice %439 {offsets = [0, 64], sizes = [4, 32], strides = [1, 1]} : vector<4x96xf32> to vector<4x32xf32>
    %452 = vector.broadcast %28 : vector<1x32xf32> to vector<4x32xf32>
    %453 = arith.addf %451, %452 : vector<4x32xf32>
    %454 = arith.mulf %448, %453 : vector<4x32xf32>
    %455 = arith.addf %450, %454 : vector<4x32xf32>
    %456 = math.tanh %455 : vector<4x32xf32>
    %457 = arith.subf %407, %456 : vector<4x32xf32>
    %458 = arith.mulf %449, %457 : vector<4x32xf32>
    %459 = arith.addf %456, %458 : vector<4x32xf32>
    %c6_162 = arith.constant 6 : index
    %c0_163 = arith.constant 0 : index
    %c0_164 = arith.constant 0 : index
    %460 = vector.load %arg1[%c6_162, %c0_163, %c0_164] : memref<8x4x1xf32, #tpu.memory_space<vmem>>, vector<1x4x1xf32>
    %461 = vector.shape_cast %460 : vector<1x4x1xf32> to vector<4x1xf32>
    %c1_165 = arith.constant 1 : index
    %c0_166 = arith.constant 0 : index
    %c0_167 = arith.constant 0 : index
    %462 = vector.load %arg1[%c1_165, %c0_166, %c0_167] : memref<8x4x1xf32, #tpu.memory_space<vmem>>, vector<1x4x1xf32>
    %463 = vector.shape_cast %462 : vector<1x4x1xf32> to vector<4x1xf32>
    %464 = arith.subf %438, %403 : vector<4x32xf32>
    %465 = vector.broadcast %461 : vector<4x1xf32> to vector<4x32xf32>
    %466 = arith.mulf %465, %464 : vector<4x32xf32>
    %467 = arith.addf %403, %466 : vector<4x32xf32>
    %468 = arith.subf %459, %407 : vector<4x32xf32>
    %469 = vector.broadcast %463 : vector<4x1xf32> to vector<4x32xf32>
    %470 = arith.mulf %469, %468 : vector<4x32xf32>
    %471 = arith.addf %407, %470 : vector<4x32xf32>
    %c0_168 = arith.constant 0 : index
    %c24_169 = arith.constant 24 : index
    %c0_170 = arith.constant 0 : index
    %472 = vector.load %arg17[%c0_168, %c24_169, %c0_170] : memref<2x32x32xf32, #tpu.memory_space<vmem>>, vector<1x4x32xf32>
    %473 = vector.shape_cast %472 : vector<1x4x32xf32> to vector<4x32xf32>
    %474 = vector.shape_cast %467 : vector<4x32xf32> to vector<1x4x32xf32>
    tpu.vector_store %arg17[%c0_168, %c24_169, %c0_170], %474 {strides = array<i32>} : memref<2x32x32xf32, #tpu.memory_space<vmem>>, vector<1x4x32xf32>,
    %c1_171 = arith.constant 1 : index
    %c4_172 = arith.constant 4 : index
    %c0_173 = arith.constant 0 : index
    %475 = vector.load %arg17[%c1_171, %c4_172, %c0_173] : memref<2x32x32xf32, #tpu.memory_space<vmem>>, vector<1x4x32xf32>
    %476 = vector.shape_cast %475 : vector<1x4x32xf32> to vector<4x32xf32>
    %477 = vector.shape_cast %471 : vector<4x32xf32> to vector<1x4x32xf32>
    tpu.vector_store %arg17[%c1_171, %c4_172, %c0_173], %477 {strides = array<i32>} : memref<2x32x32xf32, #tpu.memory_space<vmem>>, vector<1x4x32xf32>,
    %c0_174 = arith.constant 0 : index
    %c28_175 = arith.constant 28 : index
    %c0_176 = arith.constant 0 : index
    %478 = vector.load %arg15[%c0_174, %c28_175, %c0_176] : memref<2x32x96xf32, #tpu.memory_space<vmem>>, vector<1x4x96xf32>
    %479 = vector.shape_cast %478 : vector<1x4x96xf32> to vector<4x96xf32>
    %c1_177 = arith.constant 1 : index
    %c0_178 = arith.constant 0 : index
    %c0_179 = arith.constant 0 : index
    %480 = vector.load %arg15[%c1_177, %c0_178, %c0_179] : memref<2x32x96xf32, #tpu.memory_space<vmem>>, vector<1x4x96xf32>
    %481 = vector.shape_cast %480 : vector<1x4x96xf32> to vector<4x96xf32>
    %cst_180 = arith.constant dense<0.000000e+00> : vector<4x96xf32>
    %482 = tpu.matmul %467, %22, %cst_180 {dimension_numbers = #tpu.dot_dimension_numbers<[1], [0], [0], [1], [0, 0, 1, 1], [], []>} : vector<4x32xf32>, vector<32x96xf32>, vector<4x96xf32> -> vector<4x96xf32>
    %483 = vector.extract_strided_slice %479 {offsets = [0, 0], sizes = [4, 64], strides = [1, 1]} : vector<4x96xf32> to vector<4x64xf32>
    %484 = vector.extract_strided_slice %482 {offsets = [0, 0], sizes = [4, 64], strides = [1, 1]} : vector<4x96xf32> to vector<4x64xf32>
    %485 = arith.addf %483, %484 : vector<4x64xf32>
    %486 = arith.negf %485 : vector<4x64xf32>
    %487 = math.exp %486 : vector<4x64xf32>
    %cst_181 = arith.constant 1.000000e+00 : f32
    %488 = vector.broadcast %cst_181 : f32 to vector<4x64xf32>
    %489 = arith.addf %488, %487 : vector<4x64xf32>
    %490 = arith.divf %488, %489 : vector<4x64xf32>
    %491 = vector.extract_strided_slice %490 {offsets = [0, 0], sizes = [4, 32], strides = [1, 1]} : vector<4x64xf32> to vector<4x32xf32>
    %492 = vector.extract_strided_slice %490 {offsets = [0, 32], sizes = [4, 32], strides = [1, 1]} : vector<4x64xf32> to vector<4x32xf32>
    %493 = vector.extract_strided_slice %479 {offsets = [0, 64], sizes = [4, 32], strides = [1, 1]} : vector<4x96xf32> to vector<4x32xf32>
    %494 = vector.extract_strided_slice %482 {offsets = [0, 64], sizes = [4, 32], strides = [1, 1]} : vector<4x96xf32> to vector<4x32xf32>
    %495 = vector.broadcast %26 : vector<1x32xf32> to vector<4x32xf32>
    %496 = arith.addf %494, %495 : vector<4x32xf32>
    %497 = arith.mulf %491, %496 : vector<4x32xf32>
    %498 = arith.addf %493, %497 : vector<4x32xf32>
    %499 = math.tanh %498 : vector<4x32xf32>
    %500 = arith.subf %467, %499 : vector<4x32xf32>
    %501 = arith.mulf %492, %500 : vector<4x32xf32>
    %502 = arith.addf %499, %501 : vector<4x32xf32>
    %cst_182 = arith.constant dense<0.000000e+00> : vector<4x96xf32>
    %503 = tpu.matmul %471, %24, %cst_182 {dimension_numbers = #tpu.dot_dimension_numbers<[1], [0], [0], [1], [0, 0, 1, 1], [], []>} : vector<4x32xf32>, vector<32x96xf32>, vector<4x96xf32> -> vector<4x96xf32>
    %504 = vector.extract_strided_slice %481 {offsets = [0, 0], sizes = [4, 64], strides = [1, 1]} : vector<4x96xf32> to vector<4x64xf32>
    %505 = vector.extract_strided_slice %503 {offsets = [0, 0], sizes = [4, 64], strides = [1, 1]} : vector<4x96xf32> to vector<4x64xf32>
    %506 = arith.addf %504, %505 : vector<4x64xf32>
    %507 = arith.negf %506 : vector<4x64xf32>
    %508 = math.exp %507 : vector<4x64xf32>
    %cst_183 = arith.constant 1.000000e+00 : f32
    %509 = vector.broadcast %cst_183 : f32 to vector<4x64xf32>
    %510 = arith.addf %509, %508 : vector<4x64xf32>
    %511 = arith.divf %509, %510 : vector<4x64xf32>
    %512 = vector.extract_strided_slice %511 {offsets = [0, 0], sizes = [4, 32], strides = [1, 1]} : vector<4x64xf32> to vector<4x32xf32>
    %513 = vector.extract_strided_slice %511 {offsets = [0, 32], sizes = [4, 32], strides = [1, 1]} : vector<4x64xf32> to vector<4x32xf32>
    %514 = vector.extract_strided_slice %481 {offsets = [0, 64], sizes = [4, 32], strides = [1, 1]} : vector<4x96xf32> to vector<4x32xf32>
    %515 = vector.extract_strided_slice %503 {offsets = [0, 64], sizes = [4, 32], strides = [1, 1]} : vector<4x96xf32> to vector<4x32xf32>
    %516 = vector.broadcast %28 : vector<1x32xf32> to vector<4x32xf32>
    %517 = arith.addf %515, %516 : vector<4x32xf32>
    %518 = arith.mulf %512, %517 : vector<4x32xf32>
    %519 = arith.addf %514, %518 : vector<4x32xf32>
    %520 = math.tanh %519 : vector<4x32xf32>
    %521 = arith.subf %471, %520 : vector<4x32xf32>
    %522 = arith.mulf %513, %521 : vector<4x32xf32>
    %523 = arith.addf %520, %522 : vector<4x32xf32>
    %c7_184 = arith.constant 7 : index
    %c0_185 = arith.constant 0 : index
    %c0_186 = arith.constant 0 : index
    %524 = vector.load %arg1[%c7_184, %c0_185, %c0_186] : memref<8x4x1xf32, #tpu.memory_space<vmem>>, vector<1x4x1xf32>
    %525 = vector.shape_cast %524 : vector<1x4x1xf32> to vector<4x1xf32>
    %c0_187 = arith.constant 0 : index
    %c0_188 = arith.constant 0 : index
    %c0_189 = arith.constant 0 : index
    %526 = vector.load %arg1[%c0_187, %c0_188, %c0_189] : memref<8x4x1xf32, #tpu.memory_space<vmem>>, vector<1x4x1xf32>
    %527 = vector.shape_cast %526 : vector<1x4x1xf32> to vector<4x1xf32>
    %528 = arith.subf %502, %467 : vector<4x32xf32>
    %529 = vector.broadcast %525 : vector<4x1xf32> to vector<4x32xf32>
    %530 = arith.mulf %529, %528 : vector<4x32xf32>
    %531 = arith.addf %467, %530 : vector<4x32xf32>
    %532 = arith.subf %523, %471 : vector<4x32xf32>
    %533 = vector.broadcast %527 : vector<4x1xf32> to vector<4x32xf32>
    %534 = arith.mulf %533, %532 : vector<4x32xf32>
    %535 = arith.addf %471, %534 : vector<4x32xf32>
    %c0_190 = arith.constant 0 : index
    %c28_191 = arith.constant 28 : index
    %c0_192 = arith.constant 0 : index
    %536 = vector.load %arg17[%c0_190, %c28_191, %c0_192] : memref<2x32x32xf32, #tpu.memory_space<vmem>>, vector<1x4x32xf32>
    %537 = vector.shape_cast %536 : vector<1x4x32xf32> to vector<4x32xf32>
    %538 = vector.shape_cast %531 : vector<4x32xf32> to vector<1x4x32xf32>
    tpu.vector_store %arg17[%c0_190, %c28_191, %c0_192], %538 {strides = array<i32>} : memref<2x32x32xf32, #tpu.memory_space<vmem>>, vector<1x4x32xf32>,
    %c1_193 = arith.constant 1 : index
    %c0_194 = arith.constant 0 : index
    %c0_195 = arith.constant 0 : index
    %539 = vector.load %arg17[%c1_193, %c0_194, %c0_195] : memref<2x32x32xf32, #tpu.memory_space<vmem>>, vector<1x4x32xf32>
    %540 = vector.shape_cast %539 : vector<1x4x32xf32> to vector<4x32xf32>
    %541 = vector.shape_cast %535 : vector<4x32xf32> to vector<1x4x32xf32>
    tpu.vector_store %arg17[%c1_193, %c0_194, %c0_195], %541 {strides = array<i32>} : memref<2x32x32xf32, #tpu.memory_space<vmem>>, vector<1x4x32xf32>,
    %c0_196 = arith.constant 0 : index
    %c0_197 = arith.constant 0 : index
    %c0_198 = arith.constant 0 : index
    %542 = vector.load %arg17[%c0_196, %c0_197, %c0_198] : memref<2x32x32xf32, #tpu.memory_space<vmem>>, vector<1x32x32xf32>
    %543 = vector.shape_cast %542 : vector<1x32x32xf32> to vector<32x32xf32>
    %c1_199 = arith.constant 1 : index
    %c0_200 = arith.constant 0 : index
    %c0_201 = arith.constant 0 : index
    %544 = vector.load %arg17[%c1_199, %c0_200, %c0_201] : memref<2x32x32xf32, #tpu.memory_space<vmem>>, vector<1x32x32xf32>
    %545 = vector.shape_cast %544 : vector<1x32x32xf32> to vector<32x32xf32>
    %c0_202 = arith.constant 0 : index
    %c0_203 = arith.constant 0 : index
    %c0_204 = arith.constant 0 : index
    %c0_205 = arith.constant 0 : index
    %546 = vector.load %arg6[%c0_202, %c0_203, %c0_204, %c0_205] : memref<2x2x32x96xf32, #tpu.memory_space<vmem>>, vector<1x1x32x96xf32>
    %547 = vector.shape_cast %546 : vector<1x1x32x96xf32> to vector<32x96xf32>
    %cst_206 = arith.constant dense<0.000000e+00> : vector<32x96xf32>
    %548 = tpu.matmul %543, %547, %cst_206 {dimension_numbers = #tpu.dot_dimension_numbers<[1], [0], [0], [1], [0, 0, 1, 1], [], []>} : vector<32x32xf32>, vector<32x96xf32>, vector<32x96xf32> -> vector<32x96xf32>
    %c0_207 = arith.constant 0 : index
    %c1_208 = arith.constant 1 : index
    %c0_209 = arith.constant 0 : index
    %c0_210 = arith.constant 0 : index
    %549 = vector.load %arg6[%c0_207, %c1_208, %c0_209, %c0_210] : memref<2x2x32x96xf32, #tpu.memory_space<vmem>>, vector<1x1x32x96xf32>
    %550 = vector.shape_cast %549 : vector<1x1x32x96xf32> to vector<32x96xf32>
    %cst_211 = arith.constant dense<0.000000e+00> : vector<32x96xf32>
    %551 = tpu.matmul %545, %550, %cst_211 {dimension_numbers = #tpu.dot_dimension_numbers<[1], [0], [0], [1], [0, 0, 1, 1], [], []>} : vector<32x32xf32>, vector<32x96xf32>, vector<32x96xf32> -> vector<32x96xf32>
    %552 = arith.addf %548, %551 : vector<32x96xf32>
    %c0_212 = arith.constant 0 : index
    %c0_213 = arith.constant 0 : index
    %c0_214 = arith.constant 0 : index
    %553 = vector.load %arg7[%c0_212, %c0_213, %c0_214] : memref<2x1x96xf32, #tpu.memory_space<vmem>>, vector<1x1x96xf32>
    %554 = vector.shape_cast %553 : vector<1x1x96xf32> to vector<1x96xf32>
    %555 = vector.broadcast %554 : vector<1x96xf32> to vector<32x96xf32>
    %556 = arith.addf %552, %555 : vector<32x96xf32>
    %c0_215 = arith.constant 0 : index
    %c0_216 = arith.constant 0 : index
    %c0_217 = arith.constant 0 : index
    %557 = vector.load %arg16[%c0_215, %c0_216, %c0_217] : memref<2x32x96xf32, #tpu.memory_space<vmem>>, vector<1x32x96xf32>
    %558 = vector.shape_cast %557 : vector<1x32x96xf32> to vector<32x96xf32>
    %559 = vector.shape_cast %556 : vector<32x96xf32> to vector<1x32x96xf32>
    tpu.vector_store %arg16[%c0_215, %c0_216, %c0_217], %559 {strides = array<i32>} : memref<2x32x96xf32, #tpu.memory_space<vmem>>, vector<1x32x96xf32>,
    %c1_218 = arith.constant 1 : index
    %c0_219 = arith.constant 0 : index
    %c0_220 = arith.constant 0 : index
    %c0_221 = arith.constant 0 : index
    %560 = vector.load %arg6[%c1_218, %c0_219, %c0_220, %c0_221] : memref<2x2x32x96xf32, #tpu.memory_space<vmem>>, vector<1x1x32x96xf32>
    %561 = vector.shape_cast %560 : vector<1x1x32x96xf32> to vector<32x96xf32>
    %cst_222 = arith.constant dense<0.000000e+00> : vector<32x96xf32>
    %562 = tpu.matmul %543, %561, %cst_222 {dimension_numbers = #tpu.dot_dimension_numbers<[1], [0], [0], [1], [0, 0, 1, 1], [], []>} : vector<32x32xf32>, vector<32x96xf32>, vector<32x96xf32> -> vector<32x96xf32>
    %c1_223 = arith.constant 1 : index
    %c1_224 = arith.constant 1 : index
    %c0_225 = arith.constant 0 : index
    %c0_226 = arith.constant 0 : index
    %563 = vector.load %arg6[%c1_223, %c1_224, %c0_225, %c0_226] : memref<2x2x32x96xf32, #tpu.memory_space<vmem>>, vector<1x1x32x96xf32>
    %564 = vector.shape_cast %563 : vector<1x1x32x96xf32> to vector<32x96xf32>
    %cst_227 = arith.constant dense<0.000000e+00> : vector<32x96xf32>
    %565 = tpu.matmul %545, %564, %cst_227 {dimension_numbers = #tpu.dot_dimension_numbers<[1], [0], [0], [1], [0, 0, 1, 1], [], []>} : vector<32x32xf32>, vector<32x96xf32>, vector<32x96xf32> -> vector<32x96xf32>
    %566 = arith.addf %562, %565 : vector<32x96xf32>
    %c1_228 = arith.constant 1 : index
    %c0_229 = arith.constant 0 : index
    %c0_230 = arith.constant 0 : index
    %567 = vector.load %arg7[%c1_228, %c0_229, %c0_230] : memref<2x1x96xf32, #tpu.memory_space<vmem>>, vector<1x1x96xf32>
    %568 = vector.shape_cast %567 : vector<1x1x96xf32> to vector<1x96xf32>
    %569 = vector.broadcast %568 : vector<1x96xf32> to vector<32x96xf32>
    %570 = arith.addf %566, %569 : vector<32x96xf32>
    %c1_231 = arith.constant 1 : index
    %c0_232 = arith.constant 0 : index
    %c0_233 = arith.constant 0 : index
    %571 = vector.load %arg16[%c1_231, %c0_232, %c0_233] : memref<2x32x96xf32, #tpu.memory_space<vmem>>, vector<1x32x96xf32>
    %572 = vector.shape_cast %571 : vector<1x32x96xf32> to vector<32x96xf32>
    %573 = vector.shape_cast %570 : vector<32x96xf32> to vector<1x32x96xf32>
    tpu.vector_store %arg16[%c1_231, %c0_232, %c0_233], %573 {strides = array<i32>} : memref<2x32x96xf32, #tpu.memory_space<vmem>>, vector<1x32x96xf32>,
    %c0_234 = arith.constant 0 : index
    %c0_235 = arith.constant 0 : index
    %c0_236 = arith.constant 0 : index
    %574 = vector.load %arg8[%c0_234, %c0_235, %c0_236] : memref<2x32x96xf32, #tpu.memory_space<vmem>>, vector<1x32x96xf32>
    %575 = vector.shape_cast %574 : vector<1x32x96xf32> to vector<32x96xf32>
    %c1_237 = arith.constant 1 : index
    %c0_238 = arith.constant 0 : index
    %c0_239 = arith.constant 0 : index
    %576 = vector.load %arg8[%c1_237, %c0_238, %c0_239] : memref<2x32x96xf32, #tpu.memory_space<vmem>>, vector<1x32x96xf32>
    %577 = vector.shape_cast %576 : vector<1x32x96xf32> to vector<32x96xf32>
    %c0_240 = arith.constant 0 : index
    %c0_241 = arith.constant 0 : index
    %c0_242 = arith.constant 0 : index
    %578 = vector.load %arg9[%c0_240, %c0_241, %c0_242] : memref<2x1x32xf32, #tpu.memory_space<vmem>>, vector<1x1x32xf32>
    %579 = vector.shape_cast %578 : vector<1x1x32xf32> to vector<1x32xf32>
    %c1_243 = arith.constant 1 : index
    %c0_244 = arith.constant 0 : index
    %c0_245 = arith.constant 0 : index
    %580 = vector.load %arg9[%c1_243, %c0_244, %c0_245] : memref<2x1x32xf32, #tpu.memory_space<vmem>>, vector<1x1x32xf32>
    %581 = vector.shape_cast %580 : vector<1x1x32xf32> to vector<1x32xf32>
    %cst_246 = arith.constant 0.000000e+00 : f32
    %582 = vector.broadcast %cst_246 : f32 to vector<4x32xf32>
    %c0_247 = arith.constant 0 : index
    %c0_248 = arith.constant 0 : index
    %c0_249 = arith.constant 0 : index
    %583 = vector.load %arg16[%c0_247, %c0_248, %c0_249] : memref<2x32x96xf32, #tpu.memory_space<vmem>>, vector<1x4x96xf32>
    %584 = vector.shape_cast %583 : vector<1x4x96xf32> to vector<4x96xf32>
    %c1_250 = arith.constant 1 : index
    %c28_251 = arith.constant 28 : index
    %c0_252 = arith.constant 0 : index
    %585 = vector.load %arg16[%c1_250, %c28_251, %c0_252] : memref<2x32x96xf32, #tpu.memory_space<vmem>>, vector<1x4x96xf32>
    %586 = vector.shape_cast %585 : vector<1x4x96xf32> to vector<4x96xf32>
    %cst_253 = arith.constant dense<0.000000e+00> : vector<4x96xf32>
    %587 = tpu.matmul %582, %575, %cst_253 {dimension_numbers = #tpu.dot_dimension_numbers<[1], [0], [0], [1], [0, 0, 1, 1], [], []>} : vector<4x32xf32>, vector<32x96xf32>, vector<4x96xf32> -> vector<4x96xf32>
    %588 = vector.extract_strided_slice %584 {offsets = [0, 0], sizes = [4, 64], strides = [1, 1]} : vector<4x96xf32> to vector<4x64xf32>
    %589 = vector.extract_strided_slice %587 {offsets = [0, 0], sizes = [4, 64], strides = [1, 1]} : vector<4x96xf32> to vector<4x64xf32>
    %590 = arith.addf %588, %589 : vector<4x64xf32>
    %591 = arith.negf %590 : vector<4x64xf32>
    %592 = math.exp %591 : vector<4x64xf32>
    %cst_254 = arith.constant 1.000000e+00 : f32
    %593 = vector.broadcast %cst_254 : f32 to vector<4x64xf32>
    %594 = arith.addf %593, %592 : vector<4x64xf32>
    %595 = arith.divf %593, %594 : vector<4x64xf32>
    %596 = vector.extract_strided_slice %595 {offsets = [0, 0], sizes = [4, 32], strides = [1, 1]} : vector<4x64xf32> to vector<4x32xf32>
    %597 = vector.extract_strided_slice %595 {offsets = [0, 32], sizes = [4, 32], strides = [1, 1]} : vector<4x64xf32> to vector<4x32xf32>
    %598 = vector.extract_strided_slice %584 {offsets = [0, 64], sizes = [4, 32], strides = [1, 1]} : vector<4x96xf32> to vector<4x32xf32>
    %599 = vector.extract_strided_slice %587 {offsets = [0, 64], sizes = [4, 32], strides = [1, 1]} : vector<4x96xf32> to vector<4x32xf32>
    %600 = vector.broadcast %579 : vector<1x32xf32> to vector<4x32xf32>
    %601 = arith.addf %599, %600 : vector<4x32xf32>
    %602 = arith.mulf %596, %601 : vector<4x32xf32>
    %603 = arith.addf %598, %602 : vector<4x32xf32>
    %604 = math.tanh %603 : vector<4x32xf32>
    %605 = arith.subf %582, %604 : vector<4x32xf32>
    %606 = arith.mulf %597, %605 : vector<4x32xf32>
    %607 = arith.addf %604, %606 : vector<4x32xf32>
    %cst_255 = arith.constant dense<0.000000e+00> : vector<4x96xf32>
    %608 = tpu.matmul %582, %577, %cst_255 {dimension_numbers = #tpu.dot_dimension_numbers<[1], [0], [0], [1], [0, 0, 1, 1], [], []>} : vector<4x32xf32>, vector<32x96xf32>, vector<4x96xf32> -> vector<4x96xf32>
    %609 = vector.extract_strided_slice %586 {offsets = [0, 0], sizes = [4, 64], strides = [1, 1]} : vector<4x96xf32> to vector<4x64xf32>
    %610 = vector.extract_strided_slice %608 {offsets = [0, 0], sizes = [4, 64], strides = [1, 1]} : vector<4x96xf32> to vector<4x64xf32>
    %611 = arith.addf %609, %610 : vector<4x64xf32>
    %612 = arith.negf %611 : vector<4x64xf32>
    %613 = math.exp %612 : vector<4x64xf32>
    %cst_256 = arith.constant 1.000000e+00 : f32
    %614 = vector.broadcast %cst_256 : f32 to vector<4x64xf32>
    %615 = arith.addf %614, %613 : vector<4x64xf32>
    %616 = arith.divf %614, %615 : vector<4x64xf32>
    %617 = vector.extract_strided_slice %616 {offsets = [0, 0], sizes = [4, 32], strides = [1, 1]} : vector<4x64xf32> to vector<4x32xf32>
    %618 = vector.extract_strided_slice %616 {offsets = [0, 32], sizes = [4, 32], strides = [1, 1]} : vector<4x64xf32> to vector<4x32xf32>
    %619 = vector.extract_strided_slice %586 {offsets = [0, 64], sizes = [4, 32], strides = [1, 1]} : vector<4x96xf32> to vector<4x32xf32>
    %620 = vector.extract_strided_slice %608 {offsets = [0, 64], sizes = [4, 32], strides = [1, 1]} : vector<4x96xf32> to vector<4x32xf32>
    %621 = vector.broadcast %581 : vector<1x32xf32> to vector<4x32xf32>
    %622 = arith.addf %620, %621 : vector<4x32xf32>
    %623 = arith.mulf %617, %622 : vector<4x32xf32>
    %624 = arith.addf %619, %623 : vector<4x32xf32>
    %625 = math.tanh %624 : vector<4x32xf32>
    %626 = arith.subf %582, %625 : vector<4x32xf32>
    %627 = arith.mulf %618, %626 : vector<4x32xf32>
    %628 = arith.addf %625, %627 : vector<4x32xf32>
    %c0_257 = arith.constant 0 : index
    %c0_258 = arith.constant 0 : index
    %c0_259 = arith.constant 0 : index
    %629 = vector.load %arg1[%c0_257, %c0_258, %c0_259] : memref<8x4x1xf32, #tpu.memory_space<vmem>>, vector<1x4x1xf32>
    %630 = vector.shape_cast %629 : vector<1x4x1xf32> to vector<4x1xf32>
    %c7_260 = arith.constant 7 : index
    %c0_261 = arith.constant 0 : index
    %c0_262 = arith.constant 0 : index
    %631 = vector.load %arg1[%c7_260, %c0_261, %c0_262] : memref<8x4x1xf32, #tpu.memory_space<vmem>>, vector<1x4x1xf32>
    %632 = vector.shape_cast %631 : vector<1x4x1xf32> to vector<4x1xf32>
    %633 = arith.subf %607, %582 : vector<4x32xf32>
    %634 = vector.broadcast %630 : vector<4x1xf32> to vector<4x32xf32>
    %635 = arith.mulf %634, %633 : vector<4x32xf32>
    %636 = arith.addf %582, %635 : vector<4x32xf32>
    %637 = arith.subf %628, %582 : vector<4x32xf32>
    %638 = vector.broadcast %632 : vector<4x1xf32> to vector<4x32xf32>
    %639 = arith.mulf %638, %637 : vector<4x32xf32>
    %640 = arith.addf %582, %639 : vector<4x32xf32>
    %c0_263 = arith.constant 0 : index
    %c4_264 = arith.constant 4 : index
    %c0_265 = arith.constant 0 : index
    %641 = vector.load %arg16[%c0_263, %c4_264, %c0_265] : memref<2x32x96xf32, #tpu.memory_space<vmem>>, vector<1x4x96xf32>
    %642 = vector.shape_cast %641 : vector<1x4x96xf32> to vector<4x96xf32>
    %c1_266 = arith.constant 1 : index
    %c24_267 = arith.constant 24 : index
    %c0_268 = arith.constant 0 : index
    %643 = vector.load %arg16[%c1_266, %c24_267, %c0_268] : memref<2x32x96xf32, #tpu.memory_space<vmem>>, vector<1x4x96xf32>
    %644 = vector.shape_cast %643 : vector<1x4x96xf32> to vector<4x96xf32>
    %cst_269 = arith.constant dense<0.000000e+00> : vector<4x96xf32>
    %645 = tpu.matmul %636, %575, %cst_269 {dimension_numbers = #tpu.dot_dimension_numbers<[1], [0], [0], [1], [0, 0, 1, 1], [], []>} : vector<4x32xf32>, vector<32x96xf32>, vector<4x96xf32> -> vector<4x96xf32>
    %646 = vector.extract_strided_slice %642 {offsets = [0, 0], sizes = [4, 64], strides = [1, 1]} : vector<4x96xf32> to vector<4x64xf32>
    %647 = vector.extract_strided_slice %645 {offsets = [0, 0], sizes = [4, 64], strides = [1, 1]} : vector<4x96xf32> to vector<4x64xf32>
    %648 = arith.addf %646, %647 : vector<4x64xf32>
    %649 = arith.negf %648 : vector<4x64xf32>
    %650 = math.exp %649 : vector<4x64xf32>
    %cst_270 = arith.constant 1.000000e+00 : f32
    %651 = vector.broadcast %cst_270 : f32 to vector<4x64xf32>
    %652 = arith.addf %651, %650 : vector<4x64xf32>
    %653 = arith.divf %651, %652 : vector<4x64xf32>
    %654 = vector.extract_strided_slice %653 {offsets = [0, 0], sizes = [4, 32], strides = [1, 1]} : vector<4x64xf32> to vector<4x32xf32>
    %655 = vector.extract_strided_slice %653 {offsets = [0, 32], sizes = [4, 32], strides = [1, 1]} : vector<4x64xf32> to vector<4x32xf32>
    %656 = vector.extract_strided_slice %642 {offsets = [0, 64], sizes = [4, 32], strides = [1, 1]} : vector<4x96xf32> to vector<4x32xf32>
    %657 = vector.extract_strided_slice %645 {offsets = [0, 64], sizes = [4, 32], strides = [1, 1]} : vector<4x96xf32> to vector<4x32xf32>
    %658 = vector.broadcast %579 : vector<1x32xf32> to vector<4x32xf32>
    %659 = arith.addf %657, %658 : vector<4x32xf32>
    %660 = arith.mulf %654, %659 : vector<4x32xf32>
    %661 = arith.addf %656, %660 : vector<4x32xf32>
    %662 = math.tanh %661 : vector<4x32xf32>
    %663 = arith.subf %636, %662 : vector<4x32xf32>
    %664 = arith.mulf %655, %663 : vector<4x32xf32>
    %665 = arith.addf %662, %664 : vector<4x32xf32>
    %cst_271 = arith.constant dense<0.000000e+00> : vector<4x96xf32>
    %666 = tpu.matmul %640, %577, %cst_271 {dimension_numbers = #tpu.dot_dimension_numbers<[1], [0], [0], [1], [0, 0, 1, 1], [], []>} : vector<4x32xf32>, vector<32x96xf32>, vector<4x96xf32> -> vector<4x96xf32>
    %667 = vector.extract_strided_slice %644 {offsets = [0, 0], sizes = [4, 64], strides = [1, 1]} : vector<4x96xf32> to vector<4x64xf32>
    %668 = vector.extract_strided_slice %666 {offsets = [0, 0], sizes = [4, 64], strides = [1, 1]} : vector<4x96xf32> to vector<4x64xf32>
    %669 = arith.addf %667, %668 : vector<4x64xf32>
    %670 = arith.negf %669 : vector<4x64xf32>
    %671 = math.exp %670 : vector<4x64xf32>
    %cst_272 = arith.constant 1.000000e+00 : f32
    %672 = vector.broadcast %cst_272 : f32 to vector<4x64xf32>
    %673 = arith.addf %672, %671 : vector<4x64xf32>
    %674 = arith.divf %672, %673 : vector<4x64xf32>
    %675 = vector.extract_strided_slice %674 {offsets = [0, 0], sizes = [4, 32], strides = [1, 1]} : vector<4x64xf32> to vector<4x32xf32>
    %676 = vector.extract_strided_slice %674 {offsets = [0, 32], sizes = [4, 32], strides = [1, 1]} : vector<4x64xf32> to vector<4x32xf32>
    %677 = vector.extract_strided_slice %644 {offsets = [0, 64], sizes = [4, 32], strides = [1, 1]} : vector<4x96xf32> to vector<4x32xf32>
    %678 = vector.extract_strided_slice %666 {offsets = [0, 64], sizes = [4, 32], strides = [1, 1]} : vector<4x96xf32> to vector<4x32xf32>
    %679 = vector.broadcast %581 : vector<1x32xf32> to vector<4x32xf32>
    %680 = arith.addf %678, %679 : vector<4x32xf32>
    %681 = arith.mulf %675, %680 : vector<4x32xf32>
    %682 = arith.addf %677, %681 : vector<4x32xf32>
    %683 = math.tanh %682 : vector<4x32xf32>
    %684 = arith.subf %640, %683 : vector<4x32xf32>
    %685 = arith.mulf %676, %684 : vector<4x32xf32>
    %686 = arith.addf %683, %685 : vector<4x32xf32>
    %c1_273 = arith.constant 1 : index
    %c0_274 = arith.constant 0 : index
    %c0_275 = arith.constant 0 : index
    %687 = vector.load %arg1[%c1_273, %c0_274, %c0_275] : memref<8x4x1xf32, #tpu.memory_space<vmem>>, vector<1x4x1xf32>
    %688 = vector.shape_cast %687 : vector<1x4x1xf32> to vector<4x1xf32>
    %c6_276 = arith.constant 6 : index
    %c0_277 = arith.constant 0 : index
    %c0_278 = arith.constant 0 : index
    %689 = vector.load %arg1[%c6_276, %c0_277, %c0_278] : memref<8x4x1xf32, #tpu.memory_space<vmem>>, vector<1x4x1xf32>
    %690 = vector.shape_cast %689 : vector<1x4x1xf32> to vector<4x1xf32>
    %691 = arith.subf %665, %636 : vector<4x32xf32>
    %692 = vector.broadcast %688 : vector<4x1xf32> to vector<4x32xf32>
    %693 = arith.mulf %692, %691 : vector<4x32xf32>
    %694 = arith.addf %636, %693 : vector<4x32xf32>
    %695 = arith.subf %686, %640 : vector<4x32xf32>
    %696 = vector.broadcast %690 : vector<4x1xf32> to vector<4x32xf32>
    %697 = arith.mulf %696, %695 : vector<4x32xf32>
    %698 = arith.addf %640, %697 : vector<4x32xf32>
    %c0_279 = arith.constant 0 : index
    %c8_280 = arith.constant 8 : index
    %c0_281 = arith.constant 0 : index
    %699 = vector.load %arg16[%c0_279, %c8_280, %c0_281] : memref<2x32x96xf32, #tpu.memory_space<vmem>>, vector<1x4x96xf32>
    %700 = vector.shape_cast %699 : vector<1x4x96xf32> to vector<4x96xf32>
    %c1_282 = arith.constant 1 : index
    %c20_283 = arith.constant 20 : index
    %c0_284 = arith.constant 0 : index
    %701 = vector.load %arg16[%c1_282, %c20_283, %c0_284] : memref<2x32x96xf32, #tpu.memory_space<vmem>>, vector<1x4x96xf32>
    %702 = vector.shape_cast %701 : vector<1x4x96xf32> to vector<4x96xf32>
    %cst_285 = arith.constant dense<0.000000e+00> : vector<4x96xf32>
    %703 = tpu.matmul %694, %575, %cst_285 {dimension_numbers = #tpu.dot_dimension_numbers<[1], [0], [0], [1], [0, 0, 1, 1], [], []>} : vector<4x32xf32>, vector<32x96xf32>, vector<4x96xf32> -> vector<4x96xf32>
    %704 = vector.extract_strided_slice %700 {offsets = [0, 0], sizes = [4, 64], strides = [1, 1]} : vector<4x96xf32> to vector<4x64xf32>
    %705 = vector.extract_strided_slice %703 {offsets = [0, 0], sizes = [4, 64], strides = [1, 1]} : vector<4x96xf32> to vector<4x64xf32>
    %706 = arith.addf %704, %705 : vector<4x64xf32>
    %707 = arith.negf %706 : vector<4x64xf32>
    %708 = math.exp %707 : vector<4x64xf32>
    %cst_286 = arith.constant 1.000000e+00 : f32
    %709 = vector.broadcast %cst_286 : f32 to vector<4x64xf32>
    %710 = arith.addf %709, %708 : vector<4x64xf32>
    %711 = arith.divf %709, %710 : vector<4x64xf32>
    %712 = vector.extract_strided_slice %711 {offsets = [0, 0], sizes = [4, 32], strides = [1, 1]} : vector<4x64xf32> to vector<4x32xf32>
    %713 = vector.extract_strided_slice %711 {offsets = [0, 32], sizes = [4, 32], strides = [1, 1]} : vector<4x64xf32> to vector<4x32xf32>
    %714 = vector.extract_strided_slice %700 {offsets = [0, 64], sizes = [4, 32], strides = [1, 1]} : vector<4x96xf32> to vector<4x32xf32>
    %715 = vector.extract_strided_slice %703 {offsets = [0, 64], sizes = [4, 32], strides = [1, 1]} : vector<4x96xf32> to vector<4x32xf32>
    %716 = vector.broadcast %579 : vector<1x32xf32> to vector<4x32xf32>
    %717 = arith.addf %715, %716 : vector<4x32xf32>
    %718 = arith.mulf %712, %717 : vector<4x32xf32>
    %719 = arith.addf %714, %718 : vector<4x32xf32>
    %720 = math.tanh %719 : vector<4x32xf32>
    %721 = arith.subf %694, %720 : vector<4x32xf32>
    %722 = arith.mulf %713, %721 : vector<4x32xf32>
    %723 = arith.addf %720, %722 : vector<4x32xf32>
    %cst_287 = arith.constant dense<0.000000e+00> : vector<4x96xf32>
    %724 = tpu.matmul %698, %577, %cst_287 {dimension_numbers = #tpu.dot_dimension_numbers<[1], [0], [0], [1], [0, 0, 1, 1], [], []>} : vector<4x32xf32>, vector<32x96xf32>, vector<4x96xf32> -> vector<4x96xf32>
    %725 = vector.extract_strided_slice %702 {offsets = [0, 0], sizes = [4, 64], strides = [1, 1]} : vector<4x96xf32> to vector<4x64xf32>
    %726 = vector.extract_strided_slice %724 {offsets = [0, 0], sizes = [4, 64], strides = [1, 1]} : vector<4x96xf32> to vector<4x64xf32>
    %727 = arith.addf %725, %726 : vector<4x64xf32>
    %728 = arith.negf %727 : vector<4x64xf32>
    %729 = math.exp %728 : vector<4x64xf32>
    %cst_288 = arith.constant 1.000000e+00 : f32
    %730 = vector.broadcast %cst_288 : f32 to vector<4x64xf32>
    %731 = arith.addf %730, %729 : vector<4x64xf32>
    %732 = arith.divf %730, %731 : vector<4x64xf32>
    %733 = vector.extract_strided_slice %732 {offsets = [0, 0], sizes = [4, 32], strides = [1, 1]} : vector<4x64xf32> to vector<4x32xf32>
    %734 = vector.extract_strided_slice %732 {offsets = [0, 32], sizes = [4, 32], strides = [1, 1]} : vector<4x64xf32> to vector<4x32xf32>
    %735 = vector.extract_strided_slice %702 {offsets = [0, 64], sizes = [4, 32], strides = [1, 1]} : vector<4x96xf32> to vector<4x32xf32>
    %736 = vector.extract_strided_slice %724 {offsets = [0, 64], sizes = [4, 32], strides = [1, 1]} : vector<4x96xf32> to vector<4x32xf32>
    %737 = vector.broadcast %581 : vector<1x32xf32> to vector<4x32xf32>
    %738 = arith.addf %736, %737 : vector<4x32xf32>
    %739 = arith.mulf %733, %738 : vector<4x32xf32>
    %740 = arith.addf %735, %739 : vector<4x32xf32>
    %741 = math.tanh %740 : vector<4x32xf32>
    %742 = arith.subf %698, %741 : vector<4x32xf32>
    %743 = arith.mulf %734, %742 : vector<4x32xf32>
    %744 = arith.addf %741, %743 : vector<4x32xf32>
    %c2_289 = arith.constant 2 : index
    %c0_290 = arith.constant 0 : index
    %c0_291 = arith.constant 0 : index
    %745 = vector.load %arg1[%c2_289, %c0_290, %c0_291] : memref<8x4x1xf32, #tpu.memory_space<vmem>>, vector<1x4x1xf32>
    %746 = vector.shape_cast %745 : vector<1x4x1xf32> to vector<4x1xf32>
    %c5_292 = arith.constant 5 : index
    %c0_293 = arith.constant 0 : index
    %c0_294 = arith.constant 0 : index
    %747 = vector.load %arg1[%c5_292, %c0_293, %c0_294] : memref<8x4x1xf32, #tpu.memory_space<vmem>>, vector<1x4x1xf32>
    %748 = vector.shape_cast %747 : vector<1x4x1xf32> to vector<4x1xf32>
    %749 = arith.subf %723, %694 : vector<4x32xf32>
    %750 = vector.broadcast %746 : vector<4x1xf32> to vector<4x32xf32>
    %751 = arith.mulf %750, %749 : vector<4x32xf32>
    %752 = arith.addf %694, %751 : vector<4x32xf32>
    %753 = arith.subf %744, %698 : vector<4x32xf32>
    %754 = vector.broadcast %748 : vector<4x1xf32> to vector<4x32xf32>
    %755 = arith.mulf %754, %753 : vector<4x32xf32>
    %756 = arith.addf %698, %755 : vector<4x32xf32>
    %c0_295 = arith.constant 0 : index
    %c12_296 = arith.constant 12 : index
    %c0_297 = arith.constant 0 : index
    %757 = vector.load %arg16[%c0_295, %c12_296, %c0_297] : memref<2x32x96xf32, #tpu.memory_space<vmem>>, vector<1x4x96xf32>
    %758 = vector.shape_cast %757 : vector<1x4x96xf32> to vector<4x96xf32>
    %c1_298 = arith.constant 1 : index
    %c16_299 = arith.constant 16 : index
    %c0_300 = arith.constant 0 : index
    %759 = vector.load %arg16[%c1_298, %c16_299, %c0_300] : memref<2x32x96xf32, #tpu.memory_space<vmem>>, vector<1x4x96xf32>
    %760 = vector.shape_cast %759 : vector<1x4x96xf32> to vector<4x96xf32>
    %cst_301 = arith.constant dense<0.000000e+00> : vector<4x96xf32>
    %761 = tpu.matmul %752, %575, %cst_301 {dimension_numbers = #tpu.dot_dimension_numbers<[1], [0], [0], [1], [0, 0, 1, 1], [], []>} : vector<4x32xf32>, vector<32x96xf32>, vector<4x96xf32> -> vector<4x96xf32>
    %762 = vector.extract_strided_slice %758 {offsets = [0, 0], sizes = [4, 64], strides = [1, 1]} : vector<4x96xf32> to vector<4x64xf32>
    %763 = vector.extract_strided_slice %761 {offsets = [0, 0], sizes = [4, 64], strides = [1, 1]} : vector<4x96xf32> to vector<4x64xf32>
    %764 = arith.addf %762, %763 : vector<4x64xf32>
    %765 = arith.negf %764 : vector<4x64xf32>
    %766 = math.exp %765 : vector<4x64xf32>
    %cst_302 = arith.constant 1.000000e+00 : f32
    %767 = vector.broadcast %cst_302 : f32 to vector<4x64xf32>
    %768 = arith.addf %767, %766 : vector<4x64xf32>
    %769 = arith.divf %767, %768 : vector<4x64xf32>
    %770 = vector.extract_strided_slice %769 {offsets = [0, 0], sizes = [4, 32], strides = [1, 1]} : vector<4x64xf32> to vector<4x32xf32>
    %771 = vector.extract_strided_slice %769 {offsets = [0, 32], sizes = [4, 32], strides = [1, 1]} : vector<4x64xf32> to vector<4x32xf32>
    %772 = vector.extract_strided_slice %758 {offsets = [0, 64], sizes = [4, 32], strides = [1, 1]} : vector<4x96xf32> to vector<4x32xf32>
    %773 = vector.extract_strided_slice %761 {offsets = [0, 64], sizes = [4, 32], strides = [1, 1]} : vector<4x96xf32> to vector<4x32xf32>
    %774 = vector.broadcast %579 : vector<1x32xf32> to vector<4x32xf32>
    %775 = arith.addf %773, %774 : vector<4x32xf32>
    %776 = arith.mulf %770, %775 : vector<4x32xf32>
    %777 = arith.addf %772, %776 : vector<4x32xf32>
    %778 = math.tanh %777 : vector<4x32xf32>
    %779 = arith.subf %752, %778 : vector<4x32xf32>
    %780 = arith.mulf %771, %779 : vector<4x32xf32>
    %781 = arith.addf %778, %780 : vector<4x32xf32>
    %cst_303 = arith.constant dense<0.000000e+00> : vector<4x96xf32>
    %782 = tpu.matmul %756, %577, %cst_303 {dimension_numbers = #tpu.dot_dimension_numbers<[1], [0], [0], [1], [0, 0, 1, 1], [], []>} : vector<4x32xf32>, vector<32x96xf32>, vector<4x96xf32> -> vector<4x96xf32>
    %783 = vector.extract_strided_slice %760 {offsets = [0, 0], sizes = [4, 64], strides = [1, 1]} : vector<4x96xf32> to vector<4x64xf32>
    %784 = vector.extract_strided_slice %782 {offsets = [0, 0], sizes = [4, 64], strides = [1, 1]} : vector<4x96xf32> to vector<4x64xf32>
    %785 = arith.addf %783, %784 : vector<4x64xf32>
    %786 = arith.negf %785 : vector<4x64xf32>
    %787 = math.exp %786 : vector<4x64xf32>
    %cst_304 = arith.constant 1.000000e+00 : f32
    %788 = vector.broadcast %cst_304 : f32 to vector<4x64xf32>
    %789 = arith.addf %788, %787 : vector<4x64xf32>
    %790 = arith.divf %788, %789 : vector<4x64xf32>
    %791 = vector.extract_strided_slice %790 {offsets = [0, 0], sizes = [4, 32], strides = [1, 1]} : vector<4x64xf32> to vector<4x32xf32>
    %792 = vector.extract_strided_slice %790 {offsets = [0, 32], sizes = [4, 32], strides = [1, 1]} : vector<4x64xf32> to vector<4x32xf32>
    %793 = vector.extract_strided_slice %760 {offsets = [0, 64], sizes = [4, 32], strides = [1, 1]} : vector<4x96xf32> to vector<4x32xf32>
    %794 = vector.extract_strided_slice %782 {offsets = [0, 64], sizes = [4, 32], strides = [1, 1]} : vector<4x96xf32> to vector<4x32xf32>
    %795 = vector.broadcast %581 : vector<1x32xf32> to vector<4x32xf32>
    %796 = arith.addf %794, %795 : vector<4x32xf32>
    %797 = arith.mulf %791, %796 : vector<4x32xf32>
    %798 = arith.addf %793, %797 : vector<4x32xf32>
    %799 = math.tanh %798 : vector<4x32xf32>
    %800 = arith.subf %756, %799 : vector<4x32xf32>
    %801 = arith.mulf %792, %800 : vector<4x32xf32>
    %802 = arith.addf %799, %801 : vector<4x32xf32>
    %c3_305 = arith.constant 3 : index
    %c0_306 = arith.constant 0 : index
    %c0_307 = arith.constant 0 : index
    %803 = vector.load %arg1[%c3_305, %c0_306, %c0_307] : memref<8x4x1xf32, #tpu.memory_space<vmem>>, vector<1x4x1xf32>
    %804 = vector.shape_cast %803 : vector<1x4x1xf32> to vector<4x1xf32>
    %c4_308 = arith.constant 4 : index
    %c0_309 = arith.constant 0 : index
    %c0_310 = arith.constant 0 : index
    %805 = vector.load %arg1[%c4_308, %c0_309, %c0_310] : memref<8x4x1xf32, #tpu.memory_space<vmem>>, vector<1x4x1xf32>
    %806 = vector.shape_cast %805 : vector<1x4x1xf32> to vector<4x1xf32>
    %807 = arith.subf %781, %752 : vector<4x32xf32>
    %808 = vector.broadcast %804 : vector<4x1xf32> to vector<4x32xf32>
    %809 = arith.mulf %808, %807 : vector<4x32xf32>
    %810 = arith.addf %752, %809 : vector<4x32xf32>
    %811 = arith.subf %802, %756 : vector<4x32xf32>
    %812 = vector.broadcast %806 : vector<4x1xf32> to vector<4x32xf32>
    %813 = arith.mulf %812, %811 : vector<4x32xf32>
    %814 = arith.addf %756, %813 : vector<4x32xf32>
    %c0_311 = arith.constant 0 : index
    %c16_312 = arith.constant 16 : index
    %c0_313 = arith.constant 0 : index
    %815 = vector.load %arg16[%c0_311, %c16_312, %c0_313] : memref<2x32x96xf32, #tpu.memory_space<vmem>>, vector<1x4x96xf32>
    %816 = vector.shape_cast %815 : vector<1x4x96xf32> to vector<4x96xf32>
    %c1_314 = arith.constant 1 : index
    %c12_315 = arith.constant 12 : index
    %c0_316 = arith.constant 0 : index
    %817 = vector.load %arg16[%c1_314, %c12_315, %c0_316] : memref<2x32x96xf32, #tpu.memory_space<vmem>>, vector<1x4x96xf32>
    %818 = vector.shape_cast %817 : vector<1x4x96xf32> to vector<4x96xf32>
    %cst_317 = arith.constant dense<0.000000e+00> : vector<4x96xf32>
    %819 = tpu.matmul %810, %575, %cst_317 {dimension_numbers = #tpu.dot_dimension_numbers<[1], [0], [0], [1], [0, 0, 1, 1], [], []>} : vector<4x32xf32>, vector<32x96xf32>, vector<4x96xf32> -> vector<4x96xf32>
    %820 = vector.extract_strided_slice %816 {offsets = [0, 0], sizes = [4, 64], strides = [1, 1]} : vector<4x96xf32> to vector<4x64xf32>
    %821 = vector.extract_strided_slice %819 {offsets = [0, 0], sizes = [4, 64], strides = [1, 1]} : vector<4x96xf32> to vector<4x64xf32>
    %822 = arith.addf %820, %821 : vector<4x64xf32>
    %823 = arith.negf %822 : vector<4x64xf32>
    %824 = math.exp %823 : vector<4x64xf32>
    %cst_318 = arith.constant 1.000000e+00 : f32
    %825 = vector.broadcast %cst_318 : f32 to vector<4x64xf32>
    %826 = arith.addf %825, %824 : vector<4x64xf32>
    %827 = arith.divf %825, %826 : vector<4x64xf32>
    %828 = vector.extract_strided_slice %827 {offsets = [0, 0], sizes = [4, 32], strides = [1, 1]} : vector<4x64xf32> to vector<4x32xf32>
    %829 = vector.extract_strided_slice %827 {offsets = [0, 32], sizes = [4, 32], strides = [1, 1]} : vector<4x64xf32> to vector<4x32xf32>
    %830 = vector.extract_strided_slice %816 {offsets = [0, 64], sizes = [4, 32], strides = [1, 1]} : vector<4x96xf32> to vector<4x32xf32>
    %831 = vector.extract_strided_slice %819 {offsets = [0, 64], sizes = [4, 32], strides = [1, 1]} : vector<4x96xf32> to vector<4x32xf32>
    %832 = vector.broadcast %579 : vector<1x32xf32> to vector<4x32xf32>
    %833 = arith.addf %831, %832 : vector<4x32xf32>
    %834 = arith.mulf %828, %833 : vector<4x32xf32>
    %835 = arith.addf %830, %834 : vector<4x32xf32>
    %836 = math.tanh %835 : vector<4x32xf32>
    %837 = arith.subf %810, %836 : vector<4x32xf32>
    %838 = arith.mulf %829, %837 : vector<4x32xf32>
    %839 = arith.addf %836, %838 : vector<4x32xf32>
    %cst_319 = arith.constant dense<0.000000e+00> : vector<4x96xf32>
    %840 = tpu.matmul %814, %577, %cst_319 {dimension_numbers = #tpu.dot_dimension_numbers<[1], [0], [0], [1], [0, 0, 1, 1], [], []>} : vector<4x32xf32>, vector<32x96xf32>, vector<4x96xf32> -> vector<4x96xf32>
    %841 = vector.extract_strided_slice %818 {offsets = [0, 0], sizes = [4, 64], strides = [1, 1]} : vector<4x96xf32> to vector<4x64xf32>
    %842 = vector.extract_strided_slice %840 {offsets = [0, 0], sizes = [4, 64], strides = [1, 1]} : vector<4x96xf32> to vector<4x64xf32>
    %843 = arith.addf %841, %842 : vector<4x64xf32>
    %844 = arith.negf %843 : vector<4x64xf32>
    %845 = math.exp %844 : vector<4x64xf32>
    %cst_320 = arith.constant 1.000000e+00 : f32
    %846 = vector.broadcast %cst_320 : f32 to vector<4x64xf32>
    %847 = arith.addf %846, %845 : vector<4x64xf32>
    %848 = arith.divf %846, %847 : vector<4x64xf32>
    %849 = vector.extract_strided_slice %848 {offsets = [0, 0], sizes = [4, 32], strides = [1, 1]} : vector<4x64xf32> to vector<4x32xf32>
    %850 = vector.extract_strided_slice %848 {offsets = [0, 32], sizes = [4, 32], strides = [1, 1]} : vector<4x64xf32> to vector<4x32xf32>
    %851 = vector.extract_strided_slice %818 {offsets = [0, 64], sizes = [4, 32], strides = [1, 1]} : vector<4x96xf32> to vector<4x32xf32>
    %852 = vector.extract_strided_slice %840 {offsets = [0, 64], sizes = [4, 32], strides = [1, 1]} : vector<4x96xf32> to vector<4x32xf32>
    %853 = vector.broadcast %581 : vector<1x32xf32> to vector<4x32xf32>
    %854 = arith.addf %852, %853 : vector<4x32xf32>
    %855 = arith.mulf %849, %854 : vector<4x32xf32>
    %856 = arith.addf %851, %855 : vector<4x32xf32>
    %857 = math.tanh %856 : vector<4x32xf32>
    %858 = arith.subf %814, %857 : vector<4x32xf32>
    %859 = arith.mulf %850, %858 : vector<4x32xf32>
    %860 = arith.addf %857, %859 : vector<4x32xf32>
    %c4_321 = arith.constant 4 : index
    %c0_322 = arith.constant 0 : index
    %c0_323 = arith.constant 0 : index
    %861 = vector.load %arg1[%c4_321, %c0_322, %c0_323] : memref<8x4x1xf32, #tpu.memory_space<vmem>>, vector<1x4x1xf32>
    %862 = vector.shape_cast %861 : vector<1x4x1xf32> to vector<4x1xf32>
    %c3_324 = arith.constant 3 : index
    %c0_325 = arith.constant 0 : index
    %c0_326 = arith.constant 0 : index
    %863 = vector.load %arg1[%c3_324, %c0_325, %c0_326] : memref<8x4x1xf32, #tpu.memory_space<vmem>>, vector<1x4x1xf32>
    %864 = vector.shape_cast %863 : vector<1x4x1xf32> to vector<4x1xf32>
    %865 = arith.subf %839, %810 : vector<4x32xf32>
    %866 = vector.broadcast %862 : vector<4x1xf32> to vector<4x32xf32>
    %867 = arith.mulf %866, %865 : vector<4x32xf32>
    %868 = arith.addf %810, %867 : vector<4x32xf32>
    %869 = arith.subf %860, %814 : vector<4x32xf32>
    %870 = vector.broadcast %864 : vector<4x1xf32> to vector<4x32xf32>
    %871 = arith.mulf %870, %869 : vector<4x32xf32>
    %872 = arith.addf %814, %871 : vector<4x32xf32>
    %c0_327 = arith.constant 0 : index
    %c20_328 = arith.constant 20 : index
    %c0_329 = arith.constant 0 : index
    %873 = vector.load %arg16[%c0_327, %c20_328, %c0_329] : memref<2x32x96xf32, #tpu.memory_space<vmem>>, vector<1x4x96xf32>
    %874 = vector.shape_cast %873 : vector<1x4x96xf32> to vector<4x96xf32>
    %c1_330 = arith.constant 1 : index
    %c8_331 = arith.constant 8 : index
    %c0_332 = arith.constant 0 : index
    %875 = vector.load %arg16[%c1_330, %c8_331, %c0_332] : memref<2x32x96xf32, #tpu.memory_space<vmem>>, vector<1x4x96xf32>
    %876 = vector.shape_cast %875 : vector<1x4x96xf32> to vector<4x96xf32>
    %cst_333 = arith.constant dense<0.000000e+00> : vector<4x96xf32>
    %877 = tpu.matmul %868, %575, %cst_333 {dimension_numbers = #tpu.dot_dimension_numbers<[1], [0], [0], [1], [0, 0, 1, 1], [], []>} : vector<4x32xf32>, vector<32x96xf32>, vector<4x96xf32> -> vector<4x96xf32>
    %878 = vector.extract_strided_slice %874 {offsets = [0, 0], sizes = [4, 64], strides = [1, 1]} : vector<4x96xf32> to vector<4x64xf32>
    %879 = vector.extract_strided_slice %877 {offsets = [0, 0], sizes = [4, 64], strides = [1, 1]} : vector<4x96xf32> to vector<4x64xf32>
    %880 = arith.addf %878, %879 : vector<4x64xf32>
    %881 = arith.negf %880 : vector<4x64xf32>
    %882 = math.exp %881 : vector<4x64xf32>
    %cst_334 = arith.constant 1.000000e+00 : f32
    %883 = vector.broadcast %cst_334 : f32 to vector<4x64xf32>
    %884 = arith.addf %883, %882 : vector<4x64xf32>
    %885 = arith.divf %883, %884 : vector<4x64xf32>
    %886 = vector.extract_strided_slice %885 {offsets = [0, 0], sizes = [4, 32], strides = [1, 1]} : vector<4x64xf32> to vector<4x32xf32>
    %887 = vector.extract_strided_slice %885 {offsets = [0, 32], sizes = [4, 32], strides = [1, 1]} : vector<4x64xf32> to vector<4x32xf32>
    %888 = vector.extract_strided_slice %874 {offsets = [0, 64], sizes = [4, 32], strides = [1, 1]} : vector<4x96xf32> to vector<4x32xf32>
    %889 = vector.extract_strided_slice %877 {offsets = [0, 64], sizes = [4, 32], strides = [1, 1]} : vector<4x96xf32> to vector<4x32xf32>
    %890 = vector.broadcast %579 : vector<1x32xf32> to vector<4x32xf32>
    %891 = arith.addf %889, %890 : vector<4x32xf32>
    %892 = arith.mulf %886, %891 : vector<4x32xf32>
    %893 = arith.addf %888, %892 : vector<4x32xf32>
    %894 = math.tanh %893 : vector<4x32xf32>
    %895 = arith.subf %868, %894 : vector<4x32xf32>
    %896 = arith.mulf %887, %895 : vector<4x32xf32>
    %897 = arith.addf %894, %896 : vector<4x32xf32>
    %cst_335 = arith.constant dense<0.000000e+00> : vector<4x96xf32>
    %898 = tpu.matmul %872, %577, %cst_335 {dimension_numbers = #tpu.dot_dimension_numbers<[1], [0], [0], [1], [0, 0, 1, 1], [], []>} : vector<4x32xf32>, vector<32x96xf32>, vector<4x96xf32> -> vector<4x96xf32>
    %899 = vector.extract_strided_slice %876 {offsets = [0, 0], sizes = [4, 64], strides = [1, 1]} : vector<4x96xf32> to vector<4x64xf32>
    %900 = vector.extract_strided_slice %898 {offsets = [0, 0], sizes = [4, 64], strides = [1, 1]} : vector<4x96xf32> to vector<4x64xf32>
    %901 = arith.addf %899, %900 : vector<4x64xf32>
    %902 = arith.negf %901 : vector<4x64xf32>
    %903 = math.exp %902 : vector<4x64xf32>
    %cst_336 = arith.constant 1.000000e+00 : f32
    %904 = vector.broadcast %cst_336 : f32 to vector<4x64xf32>
    %905 = arith.addf %904, %903 : vector<4x64xf32>
    %906 = arith.divf %904, %905 : vector<4x64xf32>
    %907 = vector.extract_strided_slice %906 {offsets = [0, 0], sizes = [4, 32], strides = [1, 1]} : vector<4x64xf32> to vector<4x32xf32>
    %908 = vector.extract_strided_slice %906 {offsets = [0, 32], sizes = [4, 32], strides = [1, 1]} : vector<4x64xf32> to vector<4x32xf32>
    %909 = vector.extract_strided_slice %876 {offsets = [0, 64], sizes = [4, 32], strides = [1, 1]} : vector<4x96xf32> to vector<4x32xf32>
    %910 = vector.extract_strided_slice %898 {offsets = [0, 64], sizes = [4, 32], strides = [1, 1]} : vector<4x96xf32> to vector<4x32xf32>
    %911 = vector.broadcast %581 : vector<1x32xf32> to vector<4x32xf32>
    %912 = arith.addf %910, %911 : vector<4x32xf32>
    %913 = arith.mulf %907, %912 : vector<4x32xf32>
    %914 = arith.addf %909, %913 : vector<4x32xf32>
    %915 = math.tanh %914 : vector<4x32xf32>
    %916 = arith.subf %872, %915 : vector<4x32xf32>
    %917 = arith.mulf %908, %916 : vector<4x32xf32>
    %918 = arith.addf %915, %917 : vector<4x32xf32>
    %c5_337 = arith.constant 5 : index
    %c0_338 = arith.constant 0 : index
    %c0_339 = arith.constant 0 : index
    %919 = vector.load %arg1[%c5_337, %c0_338, %c0_339] : memref<8x4x1xf32, #tpu.memory_space<vmem>>, vector<1x4x1xf32>
    %920 = vector.shape_cast %919 : vector<1x4x1xf32> to vector<4x1xf32>
    %c2_340 = arith.constant 2 : index
    %c0_341 = arith.constant 0 : index
    %c0_342 = arith.constant 0 : index
    %921 = vector.load %arg1[%c2_340, %c0_341, %c0_342] : memref<8x4x1xf32, #tpu.memory_space<vmem>>, vector<1x4x1xf32>
    %922 = vector.shape_cast %921 : vector<1x4x1xf32> to vector<4x1xf32>
    %923 = arith.subf %897, %868 : vector<4x32xf32>
    %924 = vector.broadcast %920 : vector<4x1xf32> to vector<4x32xf32>
    %925 = arith.mulf %924, %923 : vector<4x32xf32>
    %926 = arith.addf %868, %925 : vector<4x32xf32>
    %927 = arith.subf %918, %872 : vector<4x32xf32>
    %928 = vector.broadcast %922 : vector<4x1xf32> to vector<4x32xf32>
    %929 = arith.mulf %928, %927 : vector<4x32xf32>
    %930 = arith.addf %872, %929 : vector<4x32xf32>
    %c0_343 = arith.constant 0 : index
    %c24_344 = arith.constant 24 : index
    %c0_345 = arith.constant 0 : index
    %931 = vector.load %arg16[%c0_343, %c24_344, %c0_345] : memref<2x32x96xf32, #tpu.memory_space<vmem>>, vector<1x4x96xf32>
    %932 = vector.shape_cast %931 : vector<1x4x96xf32> to vector<4x96xf32>
    %c1_346 = arith.constant 1 : index
    %c4_347 = arith.constant 4 : index
    %c0_348 = arith.constant 0 : index
    %933 = vector.load %arg16[%c1_346, %c4_347, %c0_348] : memref<2x32x96xf32, #tpu.memory_space<vmem>>, vector<1x4x96xf32>
    %934 = vector.shape_cast %933 : vector<1x4x96xf32> to vector<4x96xf32>
    %cst_349 = arith.constant dense<0.000000e+00> : vector<4x96xf32>
    %935 = tpu.matmul %926, %575, %cst_349 {dimension_numbers = #tpu.dot_dimension_numbers<[1], [0], [0], [1], [0, 0, 1, 1], [], []>} : vector<4x32xf32>, vector<32x96xf32>, vector<4x96xf32> -> vector<4x96xf32>
    %936 = vector.extract_strided_slice %932 {offsets = [0, 0], sizes = [4, 64], strides = [1, 1]} : vector<4x96xf32> to vector<4x64xf32>
    %937 = vector.extract_strided_slice %935 {offsets = [0, 0], sizes = [4, 64], strides = [1, 1]} : vector<4x96xf32> to vector<4x64xf32>
    %938 = arith.addf %936, %937 : vector<4x64xf32>
    %939 = arith.negf %938 : vector<4x64xf32>
    %940 = math.exp %939 : vector<4x64xf32>
    %cst_350 = arith.constant 1.000000e+00 : f32
    %941 = vector.broadcast %cst_350 : f32 to vector<4x64xf32>
    %942 = arith.addf %941, %940 : vector<4x64xf32>
    %943 = arith.divf %941, %942 : vector<4x64xf32>
    %944 = vector.extract_strided_slice %943 {offsets = [0, 0], sizes = [4, 32], strides = [1, 1]} : vector<4x64xf32> to vector<4x32xf32>
    %945 = vector.extract_strided_slice %943 {offsets = [0, 32], sizes = [4, 32], strides = [1, 1]} : vector<4x64xf32> to vector<4x32xf32>
    %946 = vector.extract_strided_slice %932 {offsets = [0, 64], sizes = [4, 32], strides = [1, 1]} : vector<4x96xf32> to vector<4x32xf32>
    %947 = vector.extract_strided_slice %935 {offsets = [0, 64], sizes = [4, 32], strides = [1, 1]} : vector<4x96xf32> to vector<4x32xf32>
    %948 = vector.broadcast %579 : vector<1x32xf32> to vector<4x32xf32>
    %949 = arith.addf %947, %948 : vector<4x32xf32>
    %950 = arith.mulf %944, %949 : vector<4x32xf32>
    %951 = arith.addf %946, %950 : vector<4x32xf32>
    %952 = math.tanh %951 : vector<4x32xf32>
    %953 = arith.subf %926, %952 : vector<4x32xf32>
    %954 = arith.mulf %945, %953 : vector<4x32xf32>
    %955 = arith.addf %952, %954 : vector<4x32xf32>
    %cst_351 = arith.constant dense<0.000000e+00> : vector<4x96xf32>
    %956 = tpu.matmul %930, %577, %cst_351 {dimension_numbers = #tpu.dot_dimension_numbers<[1], [0], [0], [1], [0, 0, 1, 1], [], []>} : vector<4x32xf32>, vector<32x96xf32>, vector<4x96xf32> -> vector<4x96xf32>
    %957 = vector.extract_strided_slice %934 {offsets = [0, 0], sizes = [4, 64], strides = [1, 1]} : vector<4x96xf32> to vector<4x64xf32>
    %958 = vector.extract_strided_slice %956 {offsets = [0, 0], sizes = [4, 64], strides = [1, 1]} : vector<4x96xf32> to vector<4x64xf32>
    %959 = arith.addf %957, %958 : vector<4x64xf32>
    %960 = arith.negf %959 : vector<4x64xf32>
    %961 = math.exp %960 : vector<4x64xf32>
    %cst_352 = arith.constant 1.000000e+00 : f32
    %962 = vector.broadcast %cst_352 : f32 to vector<4x64xf32>
    %963 = arith.addf %962, %961 : vector<4x64xf32>
    %964 = arith.divf %962, %963 : vector<4x64xf32>
    %965 = vector.extract_strided_slice %964 {offsets = [0, 0], sizes = [4, 32], strides = [1, 1]} : vector<4x64xf32> to vector<4x32xf32>
    %966 = vector.extract_strided_slice %964 {offsets = [0, 32], sizes = [4, 32], strides = [1, 1]} : vector<4x64xf32> to vector<4x32xf32>
    %967 = vector.extract_strided_slice %934 {offsets = [0, 64], sizes = [4, 32], strides = [1, 1]} : vector<4x96xf32> to vector<4x32xf32>
    %968 = vector.extract_strided_slice %956 {offsets = [0, 64], sizes = [4, 32], strides = [1, 1]} : vector<4x96xf32> to vector<4x32xf32>
    %969 = vector.broadcast %581 : vector<1x32xf32> to vector<4x32xf32>
    %970 = arith.addf %968, %969 : vector<4x32xf32>
    %971 = arith.mulf %965, %970 : vector<4x32xf32>
    %972 = arith.addf %967, %971 : vector<4x32xf32>
    %973 = math.tanh %972 : vector<4x32xf32>
    %974 = arith.subf %930, %973 : vector<4x32xf32>
    %975 = arith.mulf %966, %974 : vector<4x32xf32>
    %976 = arith.addf %973, %975 : vector<4x32xf32>
    %c6_353 = arith.constant 6 : index
    %c0_354 = arith.constant 0 : index
    %c0_355 = arith.constant 0 : index
    %977 = vector.load %arg1[%c6_353, %c0_354, %c0_355] : memref<8x4x1xf32, #tpu.memory_space<vmem>>, vector<1x4x1xf32>
    %978 = vector.shape_cast %977 : vector<1x4x1xf32> to vector<4x1xf32>
    %c1_356 = arith.constant 1 : index
    %c0_357 = arith.constant 0 : index
    %c0_358 = arith.constant 0 : index
    %979 = vector.load %arg1[%c1_356, %c0_357, %c0_358] : memref<8x4x1xf32, #tpu.memory_space<vmem>>, vector<1x4x1xf32>
    %980 = vector.shape_cast %979 : vector<1x4x1xf32> to vector<4x1xf32>
    %981 = arith.subf %955, %926 : vector<4x32xf32>
    %982 = vector.broadcast %978 : vector<4x1xf32> to vector<4x32xf32>
    %983 = arith.mulf %982, %981 : vector<4x32xf32>
    %984 = arith.addf %926, %983 : vector<4x32xf32>
    %985 = arith.subf %976, %930 : vector<4x32xf32>
    %986 = vector.broadcast %980 : vector<4x1xf32> to vector<4x32xf32>
    %987 = arith.mulf %986, %985 : vector<4x32xf32>
    %988 = arith.addf %930, %987 : vector<4x32xf32>
    %c0_359 = arith.constant 0 : index
    %c28_360 = arith.constant 28 : index
    %c0_361 = arith.constant 0 : index
    %989 = vector.load %arg16[%c0_359, %c28_360, %c0_361] : memref<2x32x96xf32, #tpu.memory_space<vmem>>, vector<1x4x96xf32>
    %990 = vector.shape_cast %989 : vector<1x4x96xf32> to vector<4x96xf32>
    %c1_362 = arith.constant 1 : index
    %c0_363 = arith.constant 0 : index
    %c0_364 = arith.constant 0 : index
    %991 = vector.load %arg16[%c1_362, %c0_363, %c0_364] : memref<2x32x96xf32, #tpu.memory_space<vmem>>, vector<1x4x96xf32>
    %992 = vector.shape_cast %991 : vector<1x4x96xf32> to vector<4x96xf32>
    %cst_365 = arith.constant dense<0.000000e+00> : vector<4x96xf32>
    %993 = tpu.matmul %984, %575, %cst_365 {dimension_numbers = #tpu.dot_dimension_numbers<[1], [0], [0], [1], [0, 0, 1, 1], [], []>} : vector<4x32xf32>, vector<32x96xf32>, vector<4x96xf32> -> vector<4x96xf32>
    %994 = vector.extract_strided_slice %990 {offsets = [0, 0], sizes = [4, 64], strides = [1, 1]} : vector<4x96xf32> to vector<4x64xf32>
    %995 = vector.extract_strided_slice %993 {offsets = [0, 0], sizes = [4, 64], strides = [1, 1]} : vector<4x96xf32> to vector<4x64xf32>
    %996 = arith.addf %994, %995 : vector<4x64xf32>
    %997 = arith.negf %996 : vector<4x64xf32>
    %998 = math.exp %997 : vector<4x64xf32>
    %cst_366 = arith.constant 1.000000e+00 : f32
    %999 = vector.broadcast %cst_366 : f32 to vector<4x64xf32>
    %1000 = arith.addf %999, %998 : vector<4x64xf32>
    %1001 = arith.divf %999, %1000 : vector<4x64xf32>
    %1002 = vector.extract_strided_slice %1001 {offsets = [0, 0], sizes = [4, 32], strides = [1, 1]} : vector<4x64xf32> to vector<4x32xf32>
    %1003 = vector.extract_strided_slice %1001 {offsets = [0, 32], sizes = [4, 32], strides = [1, 1]} : vector<4x64xf32> to vector<4x32xf32>
    %1004 = vector.extract_strided_slice %990 {offsets = [0, 64], sizes = [4, 32], strides = [1, 1]} : vector<4x96xf32> to vector<4x32xf32>
    %1005 = vector.extract_strided_slice %993 {offsets = [0, 64], sizes = [4, 32], strides = [1, 1]} : vector<4x96xf32> to vector<4x32xf32>
    %1006 = vector.broadcast %579 : vector<1x32xf32> to vector<4x32xf32>
    %1007 = arith.addf %1005, %1006 : vector<4x32xf32>
    %1008 = arith.mulf %1002, %1007 : vector<4x32xf32>
    %1009 = arith.addf %1004, %1008 : vector<4x32xf32>
    %1010 = math.tanh %1009 : vector<4x32xf32>
    %1011 = arith.subf %984, %1010 : vector<4x32xf32>
    %1012 = arith.mulf %1003, %1011 : vector<4x32xf32>
    %1013 = arith.addf %1010, %1012 : vector<4x32xf32>
    %cst_367 = arith.constant dense<0.000000e+00> : vector<4x96xf32>
    %1014 = tpu.matmul %988, %577, %cst_367 {dimension_numbers = #tpu.dot_dimension_numbers<[1], [0], [0], [1], [0, 0, 1, 1], [], []>} : vector<4x32xf32>, vector<32x96xf32>, vector<4x96xf32> -> vector<4x96xf32>
    %1015 = vector.extract_strided_slice %992 {offsets = [0, 0], sizes = [4, 64], strides = [1, 1]} : vector<4x96xf32> to vector<4x64xf32>
    %1016 = vector.extract_strided_slice %1014 {offsets = [0, 0], sizes = [4, 64], strides = [1, 1]} : vector<4x96xf32> to vector<4x64xf32>
    %1017 = arith.addf %1015, %1016 : vector<4x64xf32>
    %1018 = arith.negf %1017 : vector<4x64xf32>
    %1019 = math.exp %1018 : vector<4x64xf32>
    %cst_368 = arith.constant 1.000000e+00 : f32
    %1020 = vector.broadcast %cst_368 : f32 to vector<4x64xf32>
    %1021 = arith.addf %1020, %1019 : vector<4x64xf32>
    %1022 = arith.divf %1020, %1021 : vector<4x64xf32>
    %1023 = vector.extract_strided_slice %1022 {offsets = [0, 0], sizes = [4, 32], strides = [1, 1]} : vector<4x64xf32> to vector<4x32xf32>
    %1024 = vector.extract_strided_slice %1022 {offsets = [0, 32], sizes = [4, 32], strides = [1, 1]} : vector<4x64xf32> to vector<4x32xf32>
    %1025 = vector.extract_strided_slice %992 {offsets = [0, 64], sizes = [4, 32], strides = [1, 1]} : vector<4x96xf32> to vector<4x32xf32>
    %1026 = vector.extract_strided_slice %1014 {offsets = [0, 64], sizes = [4, 32], strides = [1, 1]} : vector<4x96xf32> to vector<4x32xf32>
    %1027 = vector.broadcast %581 : vector<1x32xf32> to vector<4x32xf32>
    %1028 = arith.addf %1026, %1027 : vector<4x32xf32>
    %1029 = arith.mulf %1023, %1028 : vector<4x32xf32>
    %1030 = arith.addf %1025, %1029 : vector<4x32xf32>
    %1031 = math.tanh %1030 : vector<4x32xf32>
    %1032 = arith.subf %988, %1031 : vector<4x32xf32>
    %1033 = arith.mulf %1024, %1032 : vector<4x32xf32>
    %1034 = arith.addf %1031, %1033 : vector<4x32xf32>
    %c7_369 = arith.constant 7 : index
    %c0_370 = arith.constant 0 : index
    %c0_371 = arith.constant 0 : index
    %1035 = vector.load %arg1[%c7_369, %c0_370, %c0_371] : memref<8x4x1xf32, #tpu.memory_space<vmem>>, vector<1x4x1xf32>
    %1036 = vector.shape_cast %1035 : vector<1x4x1xf32> to vector<4x1xf32>
    %c0_372 = arith.constant 0 : index
    %c0_373 = arith.constant 0 : index
    %c0_374 = arith.constant 0 : index
    %1037 = vector.load %arg1[%c0_372, %c0_373, %c0_374] : memref<8x4x1xf32, #tpu.memory_space<vmem>>, vector<1x4x1xf32>
    %1038 = vector.shape_cast %1037 : vector<1x4x1xf32> to vector<4x1xf32>
    %1039 = arith.subf %1013, %984 : vector<4x32xf32>
    %1040 = vector.broadcast %1036 : vector<4x1xf32> to vector<4x32xf32>
    %1041 = arith.mulf %1040, %1039 : vector<4x32xf32>
    %1042 = arith.addf %984, %1041 : vector<4x32xf32>
    %1043 = arith.subf %1034, %988 : vector<4x32xf32>
    %1044 = vector.broadcast %1038 : vector<4x1xf32> to vector<4x32xf32>
    %1045 = arith.mulf %1044, %1043 : vector<4x32xf32>
    %1046 = arith.addf %988, %1045 : vector<4x32xf32>
    %1047 = tpu.concatenate %531, %535, %1042, %1046 in 1 : vector<4x32xf32>, vector<4x32xf32>, vector<4x32xf32>, vector<4x32xf32> -> vector<4x128xf32>
    %c0_375 = arith.constant 0 : index
    %c0_376 = arith.constant 0 : index
    %1048 = vector.load %arg12[%c0_375, %c0_376] : memref<4x128xf32, #tpu.memory_space<vmem>>, vector<4x128xf32>
    tpu.vector_store %arg12[%c0_375, %c0_376], %1047 {strides = array<i32>} : memref<4x128xf32, #tpu.memory_space<vmem>>, vector<4x128xf32>,
    %c0_377 = arith.constant 0 : index
    %c0_378 = arith.constant 0 : index
    %1049 = vector.load %arg10[%c0_377, %c0_378] : memref<128x32xf32, #tpu.memory_space<vmem>>, vector<128x32xf32>
    %cst_379 = arith.constant dense<0.000000e+00> : vector<4x32xf32>
    %1050 = tpu.matmul %1047, %1049, %cst_379 {dimension_numbers = #tpu.dot_dimension_numbers<[1], [0], [0], [1], [0, 0, 1, 1], [], []>} : vector<4x128xf32>, vector<128x32xf32>, vector<4x32xf32> -> vector<4x32xf32>
    %c0_380 = arith.constant 0 : index
    %c0_381 = arith.constant 0 : index
    %1051 = vector.load %arg11[%c0_380, %c0_381] : memref<1x32xf32, #tpu.memory_space<vmem>>, vector<1x32xf32>
    %1052 = vector.broadcast %1051 : vector<1x32xf32> to vector<4x32xf32>
    %1053 = arith.addf %1050, %1052 : vector<4x32xf32>
    %1054 = vector.extract_strided_slice %1053 {offsets = [0, 0], sizes = [4, 16], strides = [1, 1]} : vector<4x32xf32> to vector<4x16xf32>
    %c0_382 = arith.constant 0 : index
    %c0_383 = arith.constant 0 : index
    %1055 = vector.load %arg13[%c0_382, %c0_383] : memref<4x16xf32, #tpu.memory_space<vmem>>, vector<4x16xf32>
    tpu.vector_store %arg13[%c0_382, %c0_383], %1054 {strides = array<i32>} : memref<4x16xf32, #tpu.memory_space<vmem>>, vector<4x16xf32>,
    %1056 = vector.extract_strided_slice %1053 {offsets = [0, 16], sizes = [4, 16], strides = [1, 1]} : vector<4x32xf32> to vector<4x16xf32>
    %cst_384 = arith.constant 0.000000e+00 : f32
    %1057 = vector.broadcast %cst_384 : f32 to vector<4x16xf32>
    %1058 = arith.maximumf %1056, %1057 : vector<4x16xf32>
    %1059 = math.absf %1056 : vector<4x16xf32>
    %cst_385 = arith.constant 0.000000e+00 : f32
    %1060 = vector.broadcast %cst_385 : f32 to vector<4x16xf32>
    %1061 = arith.subf %1060, %1059 : vector<4x16xf32>
    %1062 = math.exp %1061 : vector<4x16xf32>
    %1063 = math.log1p %1062 : vector<4x16xf32>
    %1064 = arith.addf %1058, %1063 : vector<4x16xf32>
    %cst_386 = arith.constant 9.99999997E-7 : f32
    %1065 = vector.broadcast %cst_386 : f32 to vector<4x16xf32>
    %1066 = arith.addf %1065, %1064 : vector<4x16xf32>
    %c0_387 = arith.constant 0 : index
    %c0_388 = arith.constant 0 : index
    %1067 = vector.load %arg14[%c0_387, %c0_388] : memref<4x16xf32, #tpu.memory_space<vmem>>, vector<4x16xf32>
    tpu.vector_store %arg14[%c0_387, %c0_388], %1066 {strides = array<i32>} : memref<4x16xf32, #tpu.memory_space<vmem>>, vector<4x16xf32>,
    return
  }
}

</mosaic_0001>

<bundles_post_ra>
// kernel: rnn_encoder_forward.1
= control target key start
LH: loop header
LB: loop body
LE: loop exit
PB: predicated region body
PF: predicated region fallthrough
CT: control target
= control target key end

     0   :  { %20 = vsyncpa [#allocation6], 0  ;;  %s4621_s0 = inlined_call_operand.vmem [shape: f32[32,32], index: 0, kind: input, shape index: {}]   ;;  %s4622_s1 = inlined_call_operand.vmem [shape: f32[8,4,1], index: 1, kind: input, shape index: {}]   ;;  %s4623_s2 = inlined_call_operand.vmem [shape: f32[2,32,96], index: 2, kind: input, shape index: {}]   ;;  %s4624_s3 = inlined_call_operand.vmem [shape: f32[2,1,96], index: 3, kind: input, shape index: {}]   ;;  %s4625_s4 = inlined_call_operand.vmem [shape: f32[2,32,96], index: 4, kind: input, shape index: {}]   ;;  %s4626_s5 = inlined_call_operand.hbm [shape: f32[2,1,32], index: 5, kind: input, shape index: {}]   ;;  %s4627_s6 = inlined_call_operand.vmem [shape: f32[2,2,32,96], index: 6, kind: input, shape index: {}]   ;;  %s4628_s7 = inlined_call_operand.vmem [shape: f32[2,1,96], index: 7, kind: input, shape index: {}]   ;;  %s4629_s8 = inlined_call_operand.hbm [shape: f32[2,32,96], index: 8, kind: input, shape index: {}]   ;;  %s4630_s9 = inlined_call_operand.hbm [shape: f32[2,1,32], index: 9, kind: input, shape index: {}]   ;;  %s4631_s10 = inlined_call_operand.vmem [shape: f32[128,32], index: 10, kind: input, shape index: {}]   ;;  %s4632_s11 = inlined_call_operand.hbm [shape: f32[1,32], index: 11, kind: input, shape index: {}]   ;;  %s4633_s12 = inlined_call_operand.hbm [shape: f32[4,128], index: 12, kind: output, shape index: {0}]   ;;  %s4634_s13 = inlined_call_operand.hbm [shape: f32[4,16], index: 13, kind: output, shape index: {1}]   ;;  %s4635_s14 = inlined_call_operand.hbm [shape: f32[4,16], index: 14, kind: output, shape index: {2}]  }
   0x1   :  { %21 = vsyncpa [#allocation9], 0 }
   0x2   :  { %22 = vsyncpa [#allocation12], 0 }
   0x3   :  { %23 = vsyncpa [#allocation7], 0  ;;  %s56_s15 = sshll.u32 %s4629_s8, 4  ;;  %s57_s15 = int_to_ptr.hbm [resolvable:$true] %s56_s15 }
   0x4   :  { %24 = vsyncpa [#allocation15], 0  ;;  %s3588_s16 = smov [#allocation8]   ;;  %s39_s20 = sshll.u32 %s4626_s5, 4  ;;  %s40_s20 = int_to_ptr.hbm [resolvable:$true] %s39_s20 }
   0x5   :  { %s58_s17 = sshll.u32 %s3588_s16, 4  ;;  %s3589_s21 = smov 128   ;;  %s59_s17 = int_to_ptr.vmem [resolvable:$true] %s58_s17 }
   0x6   :  { %s3590_s22 = smov 8   ;;  %s3591_s23 = smov [#allocation5]  }
   0x7   :  { %64 = dma.hbm_to_vmem [thread:$0]  %s57_s15, 1024, %s59_s17, [#allocation9], %s3589_s21, %s3589_s21, %s3590_s22  }
   0x8   :  { %s41_s24 = sshll.u32 %s3591_s23, 4  ;;  %s3592_s25 = smov 16   ;;  %s42_s24 = int_to_ptr.vmem [resolvable:$true] %s41_s24 }
   0x9   :  { %s3593_s26 = smov 1   ;;  %s69_s28 = sshll.u32 %s4630_s9, 4  ;;  %s70_s28 = int_to_ptr.hbm [resolvable:$true] %s69_s28 }
   0xa   :  { %47 = dma.hbm_to_vmem [thread:$0]  %s40_s20, 32, %s42_s24, [#allocation6], %s3592_s25, %s3592_s25, %s3593_s26  }
   0xb   :  { %s3594_s29 = smov [#allocation10]   ;;  %s85_s18 = sshll.u32 %s4632_s11, 4  ;;  %s86_s18 = int_to_ptr.hbm [resolvable:$true] %s85_s18 }
   0xc   :  { %s71_s30 = sshll.u32 %s3594_s29, 4  ;;  %s3595_s15 = smov [#allocation11]   ;;  %s72_s30 = int_to_ptr.vmem [resolvable:$true] %s71_s30 }
   0xd   :  { %77 = dma.hbm_to_vmem [thread:$0]  %s70_s28, 32, %s72_s30, [#allocation9], %s3592_s25, %s3592_s25, %s3593_s26  }
   0xe   :  { %s87_s17 = sshll.u32 %s3595_s15, 4  ;;  %s88_s17 = int_to_ptr.vmem [resolvable:$true] %s87_s17 }
   0xf   :  { %90 = dma.hbm_to_vmem [thread:$0]  %s86_s18, 16, %s88_s17, [#allocation12]  }
  0x10   :  { %3578 = dma.done.wait [#allocation6], 32  }
  0x11   :  { %3579 = vsyncadd [#allocation6], 4294967264 }
  0x12   :  { %3580 = dma.done.wait [#allocation9], 1056  }
  0x13   :  { %3581 = vsyncadd [#allocation9], 4294966240 }
  0x14   :  { %3582 = dma.done.wait [#allocation12], 16  }
  0x15   :  { %3583 = vsyncadd [#allocation12], 4294967280  ;;  %v114_v0 = vld [vmem:[%s4623_s2 + $0x18] sm:$0xff]  ;;  %v113_v1 = vld [vmem:[%s4623_s2 + $0x10] sm:$0xff]  ;;  %vm119_vm0 = vcmask 261120   ;;  %s3596_s23 = smov 64  }
  0x16   :  { %3173 = vmatpush.msra.mxu1 %v114_v0  ;;  %3175 = vmatpush.msra.mxu3 %v114_v0  ;;  %v112_v2 = vld [vmem:[%s4623_s2 + $0x8] sm:$0xff]  ;;  %v111_v3 = vld [vmem:[%s4623_s2] sm:$0xff]  ;;  %v3710_v5 = vld [vmem:[%s4621_s0 + $0x18] sm:$0xff]  ;;  %v3597_v20 = vmov 0.0   ;;  %vm161_vm1 = vcmask 785408   ;;  %s3600_s11 = smov 32  }
  0x17   :  { %3174 = vmatpush.msra.mxu2 %v114_v0  ;;  %144 = vmatpush.msra.mxu0 %v114_v0  ;;  %v108_v4 = vld [vmem:[%s4621_s0 + $0x8] sm:$0xff]  ;;  %v3715_v6 = vld [vmem:[%s4625_s4 + $0x38] sm:$0xff]  ;;  %v3723_v8 = vld [vmem:[%s4625_s4 + $0x30] sm:$0xff]  ;;  %vm384_vm10 = vcmask 257024   ;;  %s3602_s25 = smov [#allocation13]   ;;  %s3604_s8 = smov [#allocation16]  }
  0x18   :  { %3176 = vmatpush.msra.mxu1 %v113_v1  ;;  %3178 = vmatpush.msra.mxu3 %v113_v1  ;;  %v3053_v7 = vld [vmem:[%s4623_s2 + $0x38] sm:$0xff]  ;;  %v3052_v9 = vld [vmem:[%s4623_s2 + $0x30] sm:$0xff]  ;;  %v3205_v10 = vld [vmem:[#allocation5 + $0x1] ss:$0 sm:$0xff]  ;;  %s3001_s26 = sshll.u32 %s3602_s25, 4  ;;  %s3023_s27 = sshll.u32 %s3604_s8, 4  ;;  %s3002_s26 = int_to_ptr.vmem [resolvable:$true] %s3001_s26  ;;  %s3024_s27 = int_to_ptr.vmem [resolvable:$true] %s3023_s27 }
  0x19   :  { %3177 = vmatpush.msra.mxu2 %v113_v1  ;;  %145 = vmatpush.msra.mxu0 %v113_v1  ;;  %v3734_v11 = vld [vmem:[%s4625_s4 + $0x28] sm:$0xff]  ;;  %v109_v12 = vld [vmem:[%s4621_s0 + $0x10] sm:$0xff]  ;;  %v3748_v14 = vld [vmem:[%s4625_s4 + $0x18] sm:$0xff]  ;;  %s3025_s29 = sshll.u32 %s4635_s14, 4  ;;  %s3026_s29 = int_to_ptr.hbm [resolvable:$true] %s3025_s29 }
  0x1a   :  { %3179 = vmatpush.msra.mxu1 %v112_v2  ;;  %3181 = vmatpush.msra.mxu3 %v112_v2  ;;  %v3051_v13 = vld [vmem:[%s4623_s2 + $0x28] sm:$0xff]  ;;  %v3753_v15 = vld [vmem:[%s4625_s4 + $0x20] sm:$0xff]  ;;  %v3767_v18 = vld [vmem:[%s4625_s4 + $0x10] sm:$0xff] }
  0x1b   :  { %3180 = vmatpush.msra.mxu2 %v112_v2  ;;  %146 = vmatpush.msra.mxu0 %v112_v2  ;;  %v3050_v16 = vld [vmem:[%s4623_s2 + $0x20] sm:$0xff]  ;;  %v3776_v21 = vld [vmem:[%s4625_s4 + $0x8] sm:$0xff] }
  0x1c   :  { %3182 = vmatpush.msra.mxu1 %v111_v3  ;;  %3184 = vmatpush.msra.mxu3 %v111_v3  ;;  %v107_v17 = vld [vmem:[%s4621_s0] sm:$0xff] }
  0x1d   :  { %3047 = vmatmul.msk.f32.vlgmr.msra.gmra.mxu1 %vm119_vm0, %v108_v4  ;;  %3049 = vmatmul.msk.f32.vlgmr.msra.gmra.mxu3 %vm119_vm0, %v3710_v5  ;;  %v3206_v19 = vld [vmem:[#allocation5] ss:$0 sm:$0xff]  ;;  %v3208_v29 = vld [vmem:[%s4624_s3 + $0x1] ss:$0 sm:$0xff] }
  0x1e   :  { %307 = vmatpush.msrb.mxu3 %v3715_v6  ;;  %188 = vmatpush.msrb.mxu1 %v3053_v7  ;;  %v3783_v22 = vld [vmem:[%s4625_s4] sm:$0xff] }
  0x1f   :  { %3183 = vmatpush.msra.mxu2 %v111_v3  ;;  %337 = vrot.lane.b32.xlu0 %v3205_v10, %s3596_s23  ;;  %v3207_v23 = vld [vmem:[%s4624_s3] ss:$0 sm:$0xff]  ;;  %s3599_s3 = smov 96  }
  0x20   :  { %308 = vmatpush.msrb.mxu3 %v3723_v8  ;;  %189 = vmatpush.msrb.mxu1 %v3052_v9 }
  0x21   :  { %3048 = vmatmul.msk.f32.vlgmr.msra.gmra.mxu2 %vm119_vm0, %v109_v12  ;;  %147 = vmatpush.msra.mxu0 %v111_v3 }
  0x22   :  { %309 = vmatpush.msrb.mxu3 %v3734_v11  ;;  %190 = vmatpush.msrb.mxu1 %v3051_v13 }
  0x23   :  { %239 = vmatpush.msrb.mxu2 %v3748_v14  ;;  %3046 = vmatmul.msk.f32.vlgmr.msra.gmra.mxu0 %vm119_vm0, %v107_v17 }
  0x24   :  { %310 = vmatpush.msrb.mxu3 %v3753_v15  ;;  %191 = vmatpush.msrb.mxu1 %v3050_v16 }
  0x25   :  { %3055 = vmatmul.msk.f32.vlgmr.msrb.gmra.mxu1 %vm119_vm0, %v107_v17  ;;  %311 = vmatmul.f32.vlgmr.msrb.gmra.mxu3 %v3597_v20 }
  0x26   :  { %240 = vmatpush.msrb.mxu2 %v3767_v18  ;;  %473 = vmatpush.msra.mxu3 %v3715_v6 }
  0x27   :  { %269 = vrot.lane.b32.xlu0 %v3206_v19, %s3596_s23  ;;  %959 = vmatpush.msra.mxu1 %v3715_v6 }
  0x28   :  { %241 = vmatpush.msrb.mxu2 %v3776_v21  ;;  %474 = vmatpush.msra.mxu3 %v3723_v8 }
  0x29   :  { %894 = vmatpush.msrb.mxu0 %v3748_v14  ;;  %960 = vmatpush.msra.mxu1 %v3723_v8 }
  0x2a   :  { %242 = vmatpush.msrb.mxu2 %v3783_v22  ;;  %475 = vmatpush.msra.mxu3 %v3734_v11 }
  0x2b   :  { %243 = vmatmul.f32.vlgmr.msrb.gmra.mxu2 %v3597_v20  ;;  %895 = vmatpush.msrb.mxu0 %v3767_v18 }
  0x2c   :  { %476 = vmatpush.msra.mxu3 %v3753_v15  ;;  %408 = vmatpush.msra.mxu2 %v3748_v14 }
  0x2d   :  { %3056 = vmatmul.msk.f32.gmra.mxu1 %vm119_vm0, %v108_v4  ;;  %896 = vmatpush.msrb.mxu0 %v3776_v21 }
  0x2e   :  { %635 = vmatpush.msrb.mxu3 %v3715_v6  ;;  %409 = vmatpush.msra.mxu2 %v3767_v18 }
  0x2f   :  { %961 = vmatpush.msra.mxu1 %v3734_v11  ;;  %897 = vmatpush.msrb.mxu0 %v3783_v22 }
  0x30   :  { %636 = vmatpush.msrb.mxu3 %v3723_v8  ;;  %410 = vmatpush.msra.mxu2 %v3776_v21 }
  0x31   :  { %962 = vmatpush.msra.mxu1 %v3753_v15  ;;  %1214 = vmatpush.msra.mxu0 %v3748_v14 }
  0x32   :  { %637 = vmatpush.msrb.mxu3 %v3734_v11  ;;  %411 = vmatpush.msra.mxu2 %v3783_v22 }
  0x33   :  { %1215 = vmatpush.msra.mxu0 %v3767_v18  ;;  %1279 = vmatpush.msrb.mxu1 %v3715_v6 }
  0x34   :  { %570 = vmatpush.msrb.mxu2 %v3748_v14  ;;  %638 = vmatpush.msrb.mxu3 %v3753_v15 }
  0x35   :  { %3057 = vmatmul.msk.f32.gmra.mxu1 %vm119_vm0, %v109_v12  ;;  %1216 = vmatpush.msra.mxu0 %v3776_v21 }
  0x36   :  { %571 = vmatpush.msrb.mxu2 %v3767_v18  ;;  %1280 = vmatpush.msrb.mxu1 %v3723_v8 }
  0x37   :  { %1217 = vmatpush.msra.mxu0 %v3783_v22 }
  0x38   :  { %572 = vmatpush.msrb.mxu2 %v3776_v21  ;;  %1281 = vmatpush.msrb.mxu1 %v3734_v11 }
  0x3a   :  { %573 = vmatpush.msrb.mxu2 %v3783_v22  ;;  %1282 = vmatpush.msrb.mxu1 %v3753_v15 }
  0x3d   :  { %3058 = vmatmul.msk.f32.gmra.mxu1 %vm119_vm0, %v3710_v5 }
  0x91   :  { %v3831_v32 = vpop.permute.xlu0 %337 }
  0x99   :  { %v3839_v40 = vpop.permute.xlu0 %269 }
  0x9a   :  { %v152_v24 = vpop.f32.mrf.mxu1 }
  0x9b   :  { %v153_v25 = vadd.f32 %v3207_v23, %v152_v24 }
  0x9d   :  { %163 = vst.msk [vmem:[#allocation2 + $0x8] sm:$0xff] %vm161_vm1, %v153_v25 }
  0xa0   :  { %v158_v26 = vpop.f32.mrf.mxu3  ;;  %v149_v27 = vpop.f32.mrf.mxu0 }
  0xa1   :  { %v159_v28 = vadd.f32 %v3207_v23, %v158_v26  ;;  %v150_v30 = vadd.f32 %v3207_v23, %v149_v27  ;;  %v3598_v26 = vmov 0  }
  0xa2   :  { %v193_v31 = vpop.f32.mrf.mxu1  ;;  %3202 = vset.pattern.permute.xlu0 %v3598_v26  ;;  %3203 = vset.pattern.permute.xlu2 %v3598_v26 }
  0xa3   :  { %165 = vst.msk [vmem:[#allocation2 + $0x18] sm:$0xff] %vm161_vm1, %v159_v28  ;;  %v194_v33 = vadd.f32 %v3208_v29, %v193_v31  ;;  %3204 = vset.pattern.permute.xlu1 %v3598_v26 }
  0xa4   :  { %v155_v34 = vpop.f32.mrf.mxu2  ;;  %162 = vst.msk [vmem:[#allocation2] sm:$0xff] %vm161_vm1, %v150_v30 }
  0xa5   :  { %206 = vst.msk [vmem:[#allocation2 + $0x20] sm:$0xff] %vm161_vm1, %v194_v33  ;;  %v156_v35 = vadd.f32 %v3207_v23, %v155_v34 }
  0xa7   :  { %164 = vst.msk [vmem:[#allocation2 + $0x10] sm:$0xff] %vm161_vm1, %v156_v35  ;;  %v3065_v35 = vld [vmem:[%s4622_s1 + $0x1c] sm:$0xf] }
  0xa8   :  { %v312_v36 = vpop.f32.mrf.mxu3 }
  0xa9   :  { %v340_v37 = vadd.f32 %v3831_v32, %v312_v36 }
  0xaa   :  { %v196_v38 = vpop.f32.mrf.mxu1 }
  0xab   :  { %v197_v39 = vadd.f32 %v3208_v29, %v196_v38  ;;  %342 = vrot.lane.b32.xlu1 %v340_v37, %s3596_s23  ;;  %v222_v50 = vld [vmem:[#allocation2] sm:$0xf] }
  0xad   :  { %207 = vst.msk [vmem:[#allocation2 + $0x28] sm:$0xff] %vm161_vm1, %v197_v39 }
  0xae   :  { %v244_v41 = vpop.f32.mrf.mxu2 }
  0xaf   :  { %v272_v42 = vadd.f32 %v3839_v40, %v244_v41  ;;  %v247_v51 = vadd.f32 %v244_v41, %v222_v50  ;;  %v363_v41 = vld [vmem:[%s4622_s1] sm:$0xf] }
  0xb1   :  { %v3063_v52 = vmul.f32 -1.442695, %v247_v51 }
  0xb2   :  { %v199_v43 = vpop.f32.mrf.mxu1 }
  0xb3   :  { %v200_v44 = vadd.f32 %v3208_v29, %v199_v43  ;;  %274 = vrot.lane.b32.xlu1 %v272_v42, %s3596_s23 }
  0xb5   :  { %208 = vst.msk [vmem:[#allocation2 + $0x30] sm:$0xff] %vm161_vm1, %v200_v44 }
  0xba   :  { %v202_v45 = vpop.f32.mrf.mxu1 }
  0xbb   :  { %v203_v46 = vadd.f32 %v3208_v29, %v202_v45 }
  0xbd   :  { %209 = vst.msk [vmem:[#allocation2 + $0x38] sm:$0xff] %vm161_vm1, %v203_v46 }
  0xc4   :  { %v223_v47 = vld [vmem:[#allocation2 + $0x3c] sm:$0xf] }
  0xc5   :  { %v315_v48 = vadd.f32 %v312_v36, %v223_v47 }
  0xc7   :  { %v3064_v49 = vmul.f32 -1.442695, %v315_v48 }
  0xc9   :  { %3214 = vpow2.f32 %v3064_v49 }
  0xca   :  { %3216 = vpow2.f32 %v3063_v52 }
  0xcf   :  { %v3215_v53 = vpop.eup %3214 }
  0xd0   :  { %v319_v54 = vadd.f32 1.0, %v3215_v53  ;;  %v3217_v55 = vpop.eup %3216 }
  0xd1   :  { %v251_v56 = vadd.f32 1.0, %v3217_v55 }
  0xd2   :  { %3218 = vrcp.f32 %v319_v54  ;;  %v331_v1 = vand.u32 2147483648, %v319_v54  ;;  %vm325_vm3 = vweird.f32 %v319_v54  ;;  %v329_v2 = vand.u32 2147483647, %v319_v54 }
  0xd3   :  { %3220 = vrcp.f32 %v251_v56  ;;  %vm257_vm6 = vweird.f32 %v251_v56  ;;  %v263_v10 = vand.u32 2147483648, %v251_v56  ;;  %v261_v16 = vand.u32 2147483647, %v251_v56 }
  0xd4   :  { %v332_v5 = vor.u32 1.1754944e-38, %v331_v1  ;;  %vm330_vm5 = vcmp.eq.f32.partialorder %v329_v2, 8.507059e+37 }
  0xd5   :  { %v264_v17 = vor.u32 1.1754944e-38, %v263_v10  ;;  %vm262_vm9 = vcmp.eq.f32.partialorder %v261_v16, 8.507059e+37 }
  0xd8   :  { %v3219_v57 = vpop.eup %3218 }
  0xd9   :  { %v321_v58 = vmul.f32 %v3219_v57, %v319_v54  ;;  %v3221_v60 = vpop.eup %3220  ;;  %vm326_vm2 = vweird.f32 %v3219_v57 }
  0xda   :  { %v253_v62 = vmul.f32 %v3221_v60, %v251_v56  ;;  %vm327_vm4 = vmor %vm325_vm3, %vm326_vm2  ;;  %vm258_vm7 = vweird.f32 %v3221_v60 }
  0xdb   :  { %v322_v59 = vsub.f32 1.0, %v321_v58  ;;  %vm259_vm8 = vmor %vm257_vm6, %vm258_vm7 }
  0xdc   :  { %v254_v0 = vsub.f32 1.0, %v253_v62 }
  0xdd   :  { %v323_v61 = vmul.f32 %v3219_v57, %v322_v59 }
  0xde   :  { %v255_v4 = vmul.f32 %v3221_v60, %v254_v0 }
  0xdf   :  { %v324_v63 = vadd.f32 %v3219_v57, %v323_v61 }
  0xe0   :  { %v256_v13 = vadd.f32 %v3221_v60, %v255_v4 }
  0xe1   :  { %v328_v3 = vsel %vm327_vm4, %v3219_v57, %v324_v63  ;;  %v393_v57 = vld [vmem:[#allocation2 + $0x38] sm:$0xf] }
  0xe2   :  { %v333_v9 = vsel %vm330_vm5, %v332_v5, %v328_v3  ;;  %v260_v19 = vsel %vm259_vm8, %v3221_v60, %v256_v13  ;;  %v392_v60 = vld [vmem:[#allocation2 + $0x4] sm:$0xf] }
  0xe3   :  { %v265_v24 = vsel %vm262_vm9, %v264_v17, %v260_v19 }
 0x11d   :  { %v343_v7 = vpop.permute.xlu1 %342 }
 0x11e   :  { %v345_v12 = vmul.f32 %v343_v7, %v333_v9 }
 0x120   :  { %347 = vrot.lane.b32.xlu2 %v345_v12, %s3596_s23 }
 0x125   :  { %v275_v23 = vpop.permute.xlu1 %274 }
 0x126   :  { %v277_v25 = vmul.f32 %v275_v23, %v265_v24 }
 0x128   :  { %279 = vrot.lane.b32.xlu2 %v277_v25, %s3596_s23 }
 0x17a   :  { %v348_v27 = vpop.permute.xlu2 %347 }
 0x17b   :  { %v350_v28 = vadd.f32 %v348_v27, %v223_v47 }
 0x17d   :  { %3222 = vtanh.f32 %v350_v28 }
 0x182   :  { %v280_v29 = vpop.permute.xlu2 %279 }
 0x183   :  { %v3223_v30 = vpop.eup %3222  ;;  %v282_v31 = vadd.f32 %v280_v29, %v222_v50 }
 0x184   :  { %v352_v33 = vsub.f32 0.0, %v3223_v30 }
 0x185   :  { %3224 = vtanh.f32 %v282_v31 }
 0x186   :  { %354 = vrot.lane.b32.xlu0 %v352_v33, %s3599_s3 }
 0x18b   :  { %v3225_v34 = vpop.eup %3224 }
 0x18c   :  { %v284_v36 = vsub.f32 0.0, %v3225_v34 }
 0x18e   :  { %286 = vrot.lane.b32.xlu1 %v284_v36, %s3599_s3  ;;  %375 = vperm.xlu0 %3202, %v3065_v35  }
 0x1f8   :  { %v355_v37 = vpop.permute.xlu0 %354 }
 0x1f9   :  { %v357_v38 = vmul.f32 %v355_v37, %v333_v9 }
 0x1fb   :  { %359 = vrot.lane.b32.xlu2 %v357_v38, %s3600_s11 }
 0x200   :  { %v287_v39 = vpop.permute.xlu1 %286  ;;  %v376_v44 = vpop.permute.xlu0 %375 }
 0x201   :  { %v289_v42 = vmul.f32 %v287_v39, %v265_v24 }
 0x203   :  { %291 = vrot.lane.b32.xlu1 %v289_v42, %s3600_s11  ;;  %368 = vperm.xlu2 %3203, %v363_v41  }
 0x255   :  { %v360_v43 = vpop.permute.xlu2 %359 }
 0x256   :  { %v362_v45 = vadd.f32 %v3223_v30, %v360_v43 }
 0x258   :  { %v3858_v46 = vmul.f32 %v376_v44, %v362_v45 }
 0x25a   :  { %387 = vrot.lane.b32.xlu1 %v3858_v46, %s3596_s23 }
 0x25d   :  { %v369_v48 = vpop.permute.xlu2 %368 }
 0x275   :  { %v292_v47 = vpop.permute.xlu1 %291 }
 0x276   :  { %v294_v49 = vadd.f32 %v3225_v34, %v292_v47  ;;  %v3071_v47 = vld [vmem:[%s4622_s1 + $0x18] sm:$0xf] }
 0x278   :  { %v3862_v50 = vmul.f32 %v369_v48, %v294_v49 }
 0x27a   :  { %381 = vrot.lane.b32.xlu2 %v3862_v50, %s3596_s23 }
 0x2cc   :  { %v388_v51 = vpop.permute.xlu1 %387 }
 0x2cd   :  { %391 = vst.msk [vmem:[#allocation4 + $0x3c] sm:$0xf] %vm384_vm10, %v388_v51  ;;  %3068 = vmatmul.msk.f32.vlgmr.msra.gmra.mxu3 %vm119_vm0, %v388_v51 }
 0x2ce   :  { %797 = vmatpush.msra.mxu3 %v3715_v6 }
 0x2d0   :  { %798 = vmatpush.msra.mxu3 %v3723_v8 }
 0x2d2   :  { %799 = vmatpush.msra.mxu3 %v3734_v11 }
 0x2d4   :  { %v382_v52 = vpop.permute.xlu2 %381  ;;  %800 = vmatpush.msra.mxu3 %v3753_v15 }
 0x2d5   :  { %385 = vst.msk [vmem:[#allocation4] sm:$0xf] %vm384_vm10, %v382_v52  ;;  %3066 = vmatmul.msk.f32.vlgmr.msra.gmra.mxu2 %vm119_vm0, %v382_v52  ;;  %v3070_v52 = vld [vmem:[%s4622_s1 + $0x4] sm:$0xf] }
 0x2d6   :  { %732 = vmatpush.msra.mxu2 %v3748_v14 }
 0x2d8   :  { %733 = vmatpush.msra.mxu2 %v3767_v18 }
 0x2da   :  { %734 = vmatpush.msra.mxu2 %v3776_v21 }
 0x2dc   :  { %735 = vmatpush.msra.mxu2 %v3783_v22 }
 0x350   :  { %v478_v53 = vpop.f32.mrf.mxu3 }
 0x351   :  { %v501_v54 = vadd.f32 %v478_v53, %v3831_v32  ;;  %v481_v58 = vadd.f32 %v478_v53, %v393_v57 }
 0x353   :  { %503 = vrot.lane.b32.xlu0 %v501_v54, %s3596_s23  ;;  %v3069_v59 = vmul.f32 -1.442695, %v481_v58 }
 0x355   :  { %3226 = vpow2.f32 %v3069_v59 }
 0x358   :  { %v413_v55 = vpop.f32.mrf.mxu2 }
 0x359   :  { %v436_v56 = vadd.f32 %v413_v55, %v3839_v40  ;;  %v416_v61 = vadd.f32 %v413_v55, %v392_v60 }
 0x35b   :  { %438 = vrot.lane.b32.xlu1 %v436_v56, %s3596_s23  ;;  %v3067_v62 = vmul.f32 -1.442695, %v416_v61  ;;  %v3227_v63 = vpop.eup %3226 }
 0x35c   :  { %v485_v0 = vadd.f32 1.0, %v3227_v63 }
 0x35d   :  { %3228 = vpow2.f32 %v3067_v62 }
 0x35e   :  { %3230 = vrcp.f32 %v485_v0  ;;  %v497_v16 = vand.u32 2147483648, %v485_v0  ;;  %vm491_vm12 = vweird.f32 %v485_v0  ;;  %v495_v17 = vand.u32 2147483647, %v485_v0 }
 0x360   :  { %v498_v24 = vor.u32 1.1754944e-38, %v497_v16  ;;  %vm496_vm14 = vcmp.eq.f32.partialorder %v495_v17, 8.507059e+37  ;;  %v555_v16 = vld [vmem:[#allocation2 + $0x34] sm:$0xf] }
 0x363   :  { %v3229_v1 = vpop.eup %3228 }
 0x364   :  { %v420_v2 = vadd.f32 1.0, %v3229_v1  ;;  %v3231_v3 = vpop.eup %3230 }
 0x365   :  { %v487_v4 = vmul.f32 %v3231_v3, %v485_v0  ;;  %vm492_vm11 = vweird.f32 %v3231_v3 }
 0x366   :  { %3232 = vrcp.f32 %v420_v2  ;;  %vm493_vm13 = vmor %vm491_vm12, %vm492_vm11  ;;  %v432_v29 = vand.u32 2147483648, %v420_v2  ;;  %vm426_vm2 = vweird.f32 %v420_v2  ;;  %v430_v30 = vand.u32 2147483647, %v420_v2 }
 0x367   :  { %v488_v5 = vsub.f32 1.0, %v487_v4 }
 0x368   :  { %v433_v33 = vor.u32 1.1754944e-38, %v432_v29  ;;  %vm431_vm4 = vcmp.eq.f32.partialorder %v430_v30, 8.507059e+37 }
 0x369   :  { %v489_v9 = vmul.f32 %v3231_v3, %v488_v5 }
 0x36b   :  { %v490_v12 = vadd.f32 %v3231_v3, %v489_v9 }
 0x36c   :  { %v3233_v7 = vpop.eup %3232 }
 0x36d   :  { %v422_v10 = vmul.f32 %v3233_v7, %v420_v2  ;;  %v494_v19 = vsel %vm493_vm13, %v3231_v3, %v490_v12  ;;  %vm427_vm15 = vweird.f32 %v3233_v7 }
 0x36e   :  { %v499_v26 = vsel %vm496_vm14, %v498_v24, %v494_v19  ;;  %vm428_vm3 = vmor %vm426_vm2, %vm427_vm15 }
 0x36f   :  { %v423_v13 = vsub.f32 1.0, %v422_v10 }
 0x371   :  { %v424_v23 = vmul.f32 %v3233_v7, %v423_v13 }
 0x373   :  { %v425_v28 = vadd.f32 %v3233_v7, %v424_v23 }
 0x375   :  { %v429_v31 = vsel %vm428_vm3, %v3233_v7, %v425_v28  ;;  %v554_v7 = vld [vmem:[#allocation2 + $0x8] sm:$0xf] }
 0x376   :  { %v434_v35 = vsel %vm431_vm4, %v433_v33, %v429_v31 }
 0x3c5   :  { %v504_v25 = vpop.permute.xlu0 %503 }
 0x3c6   :  { %v506_v27 = vmul.f32 %v504_v25, %v499_v26 }
 0x3c8   :  { %508 = vrot.lane.b32.xlu2 %v506_v27, %s3596_s23 }
 0x3cd   :  { %v439_v34 = vpop.permute.xlu1 %438 }
 0x3ce   :  { %v441_v36 = vmul.f32 %v439_v34, %v434_v35 }
 0x3d0   :  { %443 = vrot.lane.b32.xlu0 %v441_v36, %s3596_s23 }
 0x422   :  { %v509_v37 = vpop.permute.xlu2 %508 }
 0x423   :  { %v511_v38 = vadd.f32 %v509_v37, %v393_v57 }
 0x425   :  { %3234 = vtanh.f32 %v511_v38 }
 0x42b   :  { %v3235_v39 = vpop.eup %3234 }
 0x42c   :  { %v513_v41 = vsub.f32 %v3858_v46, %v3235_v39 }
 0x42e   :  { %515 = vrot.lane.b32.xlu1 %v513_v41, %s3599_s3 }
 0x436   :  { %539 = vperm.xlu1 %3204, %v3071_v47  }
 0x442   :  { %v444_v42 = vpop.permute.xlu0 %443 }
 0x443   :  { %v446_v43 = vadd.f32 %v444_v42, %v392_v60 }
 0x445   :  { %3236 = vtanh.f32 %v446_v43 }
 0x44b   :  { %v3237_v44 = vpop.eup %3236 }
 0x44c   :  { %v448_v45 = vsub.f32 %v3862_v50, %v3237_v44 }
 0x44e   :  { %450 = vrot.lane.b32.xlu2 %v448_v45, %s3599_s3 }
 0x4a0   :  { %v516_v48 = vpop.permute.xlu1 %515 }
 0x4a1   :  { %v518_v49 = vmul.f32 %v516_v48, %v499_v26 }
 0x4a3   :  { %520 = vrot.lane.b32.xlu0 %v518_v49, %s3600_s11 }
 0x4a8   :  { %v451_v51 = vpop.permute.xlu2 %450  ;;  %v540_v57 = vpop.permute.xlu1 %539 }
 0x4a9   :  { %v453_v53 = vmul.f32 %v451_v51, %v434_v35 }
 0x4ab   :  { %531 = vperm.xlu0 %3202, %v3070_v52   ;;  %455 = vrot.lane.b32.xlu2 %v453_v53, %s3600_s11 }
 0x505   :  { %v456_v54 = vpop.permute.xlu2 %455 }
 0x506   :  { %v458_v58 = vadd.f32 %v3237_v44, %v456_v54 }
 0x508   :  { %v528_v62 = vsub.f32 %v458_v58, %v3862_v50 }
 0x515   :  { %v521_v55 = vpop.permute.xlu0 %520 }
 0x516   :  { %v523_v56 = vadd.f32 %v3235_v39, %v521_v55 }
 0x518   :  { %v536_v59 = vsub.f32 %v523_v56, %v3858_v46 }
 0x51a   :  { %v542_v60 = vmul.f32 %v540_v57, %v536_v59 }
 0x51c   :  { %v3898_v61 = vadd.f32 %v542_v60, %v3858_v46 }
 0x51d   :  { %v532_v63 = vpop.permute.xlu0 %531 }
 0x51e   :  { %v534_v0 = vmul.f32 %v532_v63, %v528_v62  ;;  %550 = vrot.lane.b32.xlu1 %v3898_v61, %s3596_s23  ;;  %v3077_v62 = vld [vmem:[%s4622_s1 + $0x14] sm:$0xf] }
 0x520   :  { %v3904_v1 = vadd.f32 %v534_v0, %v3862_v50 }
 0x522   :  { %545 = vrot.lane.b32.xlu2 %v3904_v1, %s3596_s23 }
 0x57c   :  { %v546_v2 = vpop.permute.xlu2 %545 }
 0x57d   :  { %548 = vst.msk [vmem:[#allocation4 + $0x4] sm:$0xf] %vm384_vm10, %v546_v2  ;;  %3072 = vmatmul.msk.f32.vlgmr.msrb.gmra.mxu2 %vm119_vm0, %v546_v2 }
 0x57e   :  { %1054 = vmatpush.msrb.mxu2 %v3748_v14 }
 0x580   :  { %1055 = vmatpush.msrb.mxu2 %v3767_v18 }
 0x582   :  { %1056 = vmatpush.msrb.mxu2 %v3776_v21 }
 0x584   :  { %1057 = vmatpush.msrb.mxu2 %v3783_v22 }
 0x590   :  { %v551_v46 = vpop.permute.xlu1 %550 }
 0x591   :  { %553 = vst.msk [vmem:[#allocation4 + $0x38] sm:$0xf] %vm384_vm10, %v551_v46  ;;  %3074 = vmatmul.msk.f32.vlgmr.msrb.gmra.mxu3 %vm119_vm0, %v551_v46 }
 0x592   :  { %1119 = vmatpush.msrb.mxu3 %v3715_v6 }
 0x594   :  { %1120 = vmatpush.msrb.mxu3 %v3723_v8 }
 0x596   :  { %1121 = vmatpush.msrb.mxu3 %v3734_v11 }
 0x598   :  { %1122 = vmatpush.msrb.mxu3 %v3753_v15 }
 0x600   :  { %v575_v50 = vpop.f32.mrf.mxu2 }
 0x601   :  { %v598_v3 = vadd.f32 %v575_v50, %v3839_v40  ;;  %v578_v9 = vadd.f32 %v575_v50, %v554_v7  ;;  %v3076_v50 = vld [vmem:[%s4622_s1 + $0x8] sm:$0xf] }
 0x603   :  { %600 = vrot.lane.b32.xlu1 %v598_v3, %s3596_s23  ;;  %v3073_v10 = vmul.f32 -1.442695, %v578_v9 }
 0x605   :  { %3238 = vpow2.f32 %v3073_v10 }
 0x60b   :  { %v3239_v12 = vpop.eup %3238 }
 0x60c   :  { %v582_v13 = vadd.f32 1.0, %v3239_v12 }
 0x60e   :  { %3240 = vrcp.f32 %v582_v13  ;;  %v594_v30 = vand.u32 2147483648, %v582_v13  ;;  %vm588_vm6 = vweird.f32 %v582_v13  ;;  %v592_v31 = vand.u32 2147483647, %v582_v13 }
 0x610   :  { %v595_v35 = vor.u32 1.1754944e-38, %v594_v30  ;;  %vm593_vm8 = vcmp.eq.f32.partialorder %v592_v31, 8.507059e+37 }
 0x614   :  { %v640_v4 = vpop.f32.mrf.mxu3  ;;  %v3241_v23 = vpop.eup %3240 }
 0x615   :  { %v663_v5 = vadd.f32 %v640_v4, %v3831_v32  ;;  %v643_v17 = vadd.f32 %v640_v4, %v555_v16  ;;  %v584_v24 = vmul.f32 %v3241_v23, %v582_v13  ;;  %vm589_vm5 = vweird.f32 %v3241_v23 }
 0x616   :  { %vm590_vm7 = vmor %vm588_vm6, %vm589_vm5 }
 0x617   :  { %665 = vrot.lane.b32.xlu0 %v663_v5, %s3596_s23  ;;  %v3075_v19 = vmul.f32 -1.442695, %v643_v17  ;;  %v585_v26 = vsub.f32 1.0, %v584_v24 }
 0x619   :  { %3242 = vpow2.f32 %v3075_v19  ;;  %v586_v28 = vmul.f32 %v3241_v23, %v585_v26 }
 0x61b   :  { %v587_v29 = vadd.f32 %v3241_v23, %v586_v28 }
 0x61d   :  { %v591_v33 = vsel %vm590_vm7, %v3241_v23, %v587_v29 }
 0x61e   :  { %v596_v37 = vsel %vm593_vm8, %v595_v35, %v591_v33 }
 0x61f   :  { %v3243_v25 = vpop.eup %3242 }
 0x620   :  { %v647_v27 = vadd.f32 1.0, %v3243_v25 }
 0x622   :  { %3244 = vrcp.f32 %v647_v27  ;;  %v659_v44 = vand.u32 2147483648, %v647_v27  ;;  %vm653_vm11 = vweird.f32 %v647_v27  ;;  %v657_v45 = vand.u32 2147483647, %v647_v27 }
 0x624   :  { %v660_v48 = vor.u32 1.1754944e-38, %v659_v44  ;;  %vm658_vm13 = vcmp.eq.f32.partialorder %v657_v45, 8.507059e+37 }
 0x628   :  { %v3245_v34 = vpop.eup %3244 }
 0x629   :  { %v649_v39 = vmul.f32 %v3245_v34, %v647_v27  ;;  %vm654_vm9 = vweird.f32 %v3245_v34  ;;  %v717_v27 = vld [vmem:[#allocation2 + $0x30] sm:$0xf] }
 0x62a   :  { %vm655_vm12 = vmor %vm653_vm11, %vm654_vm9 }
 0x62b   :  { %v650_v41 = vsub.f32 1.0, %v649_v39 }
 0x62d   :  { %v651_v42 = vmul.f32 %v3245_v34, %v650_v41 }
 0x62f   :  { %v652_v43 = vadd.f32 %v3245_v34, %v651_v42 }
 0x631   :  { %v656_v47 = vsel %vm655_vm12, %v3245_v34, %v652_v43 }
 0x632   :  { %v661_v51 = vsel %vm658_vm13, %v660_v48, %v656_v47 }
 0x675   :  { %v601_v36 = vpop.permute.xlu1 %600 }
 0x676   :  { %v603_v38 = vmul.f32 %v601_v36, %v596_v37 }
 0x678   :  { %605 = vrot.lane.b32.xlu0 %v603_v38, %s3596_s23 }
 0x689   :  { %v666_v49 = vpop.permute.xlu0 %665 }
 0x68a   :  { %v668_v52 = vmul.f32 %v666_v49, %v661_v51 }
 0x68c   :  { %670 = vrot.lane.b32.xlu2 %v668_v52, %s3596_s23 }
 0x6e6   :  { %v671_v53 = vpop.permute.xlu2 %670 }
 0x6e7   :  { %v673_v54 = vadd.f32 %v671_v53, %v555_v16 }
 0x6e9   :  { %3246 = vtanh.f32 %v673_v54 }
 0x6ea   :  { %v606_v55 = vpop.permute.xlu0 %605 }
 0x6eb   :  { %v608_v56 = vadd.f32 %v606_v55, %v554_v7 }
 0x6ed   :  { %3248 = vtanh.f32 %v608_v56 }
 0x6ef   :  { %v3247_v57 = vpop.eup %3246 }
 0x6f0   :  { %v675_v58 = vsub.f32 %v3898_v61, %v3247_v57 }
 0x6f2   :  { %677 = vrot.lane.b32.xlu1 %v675_v58, %s3599_s3 }
 0x6f3   :  { %v3249_v59 = vpop.eup %3248 }
 0x6f4   :  { %v610_v60 = vsub.f32 %v3904_v1, %v3249_v59 }
 0x6f6   :  { %612 = vrot.lane.b32.xlu2 %v610_v60, %s3599_s3 }
 0x6fa   :  { %701 = vperm.xlu1 %3204, %v3077_v62  }
 0x750   :  { %v613_v63 = vpop.permute.xlu2 %612 }
 0x751   :  { %v615_v0 = vmul.f32 %v613_v63, %v596_v37 }
 0x753   :  { %617 = vrot.lane.b32.xlu2 %v615_v0, %s3600_s11 }
 0x764   :  { %v678_v2 = vpop.permute.xlu1 %677 }
 0x765   :  { %v680_v46 = vmul.f32 %v678_v2, %v661_v51 }
 0x767   :  { %682 = vrot.lane.b32.xlu0 %v680_v46, %s3600_s11 }
 0x76c   :  { %v702_v10 = vpop.permute.xlu1 %701 }
 0x76f   :  { %693 = vperm.xlu0 %3202, %v3076_v50   ;;  %v3083_v50 = vld [vmem:[%s4622_s1 + $0x10] sm:$0xf] }
 0x7ad   :  { %v618_v3 = vpop.permute.xlu2 %617 }
 0x7ae   :  { %v620_v7 = vadd.f32 %v3249_v59, %v618_v3 }
 0x7b0   :  { %v690_v13 = vsub.f32 %v620_v7, %v3904_v1 }
 0x7d9   :  { %v683_v4 = vpop.permute.xlu0 %682 }
 0x7da   :  { %v685_v5 = vadd.f32 %v3247_v57, %v683_v4 }
 0x7dc   :  { %v698_v9 = vsub.f32 %v685_v5, %v3898_v61 }
 0x7de   :  { %v704_v12 = vmul.f32 %v702_v10, %v698_v9  ;;  %v3082_v9 = vld [vmem:[%s4622_s1 + $0xc] sm:$0xf] }
 0x7e0   :  { %v3941_v16 = vadd.f32 %v704_v12, %v3898_v61 }
 0x7e1   :  { %v694_v17 = vpop.permute.xlu0 %693 }
 0x7e2   :  { %v696_v19 = vmul.f32 %v694_v17, %v690_v13  ;;  %712 = vrot.lane.b32.xlu1 %v3941_v16, %s3596_s23 }
 0x7e4   :  { %v3946_v23 = vadd.f32 %v696_v19, %v3904_v1  ;;  %v716_v1 = vld [vmem:[#allocation2 + $0xc] sm:$0xf] }
 0x7e6   :  { %707 = vrot.lane.b32.xlu2 %v3946_v23, %s3596_s23 }
 0x840   :  { %v708_v24 = vpop.permute.xlu2 %707 }
 0x841   :  { %710 = vst.msk [vmem:[#allocation4 + $0x8] sm:$0xf] %vm384_vm10, %v708_v24  ;;  %3078 = vmatmul.msk.f32.vlgmr.msra.gmra.mxu2 %vm119_vm0, %v708_v24 }
 0x842   :  { %1374 = vmatpush.msra.mxu2 %v3748_v14 }
 0x844   :  { %1375 = vmatpush.msra.mxu2 %v3767_v18 }
 0x846   :  { %1376 = vmatpush.msra.mxu2 %v3776_v21 }
 0x848   :  { %1377 = vmatpush.msra.mxu2 %v3783_v22 }
 0x854   :  { %v713_v61 = vpop.permute.xlu1 %712 }
 0x855   :  { %715 = vst.msk [vmem:[#allocation4 + $0x34] sm:$0xf] %vm384_vm10, %v713_v61  ;;  %3080 = vmatmul.msk.f32.vlgmr.msra.gmra.mxu3 %vm119_vm0, %v713_v61 }
 0x856   :  { %1439 = vmatpush.msra.mxu3 %v3715_v6 }
 0x858   :  { %1440 = vmatpush.msra.mxu3 %v3723_v8 }
 0x85a   :  { %1441 = vmatpush.msra.mxu3 %v3734_v11 }
 0x85c   :  { %1442 = vmatpush.msra.mxu3 %v3753_v15 }
 0x8c4   :  { %v737_v14 = vpop.f32.mrf.mxu2 }
 0x8c5   :  { %v760_v18 = vadd.f32 %v737_v14, %v3839_v40  ;;  %v740_v25 = vadd.f32 %v737_v14, %v716_v1 }
 0x8c7   :  { %762 = vrot.lane.b32.xlu1 %v760_v18, %s3596_s23  ;;  %v3079_v26 = vmul.f32 -1.442695, %v740_v25 }
 0x8c9   :  { %3250 = vpow2.f32 %v3079_v26 }
 0x8cf   :  { %v3251_v6 = vpop.eup %3250 }
 0x8d0   :  { %v744_v8 = vadd.f32 1.0, %v3251_v6 }
 0x8d2   :  { %3252 = vrcp.f32 %v744_v8  ;;  %v756_v36 = vand.u32 2147483648, %v744_v8  ;;  %vm750_vm15 = vweird.f32 %v744_v8  ;;  %v754_v37 = vand.u32 2147483647, %v744_v8 }
 0x8d4   :  { %v757_v41 = vor.u32 1.1754944e-38, %v756_v36  ;;  %vm755_vm3 = vcmp.eq.f32.partialorder %v754_v37, 8.507059e+37 }
 0x8d8   :  { %v802_v21 = vpop.f32.mrf.mxu3  ;;  %v3253_v28 = vpop.eup %3252 }
 0x8d9   :  { %v825_v22 = vadd.f32 %v802_v21, %v3831_v32  ;;  %v805_v11 = vadd.f32 %v802_v21, %v717_v27  ;;  %v746_v29 = vmul.f32 %v3253_v28, %v744_v8  ;;  %vm751_vm14 = vweird.f32 %v3253_v28 }
 0x8da   :  { %vm752_vm2 = vmor %vm750_vm15, %vm751_vm14 }
 0x8db   :  { %827 = vrot.lane.b32.xlu0 %v825_v22, %s3596_s23  ;;  %v3081_v15 = vmul.f32 -1.442695, %v805_v11  ;;  %v747_v31 = vsub.f32 1.0, %v746_v29 }
 0x8dd   :  { %3254 = vpow2.f32 %v3081_v15  ;;  %v748_v34 = vmul.f32 %v3253_v28, %v747_v31 }
 0x8df   :  { %v749_v35 = vadd.f32 %v3253_v28, %v748_v34 }
 0x8e1   :  { %v753_v38 = vsel %vm752_vm2, %v3253_v28, %v749_v35 }
 0x8e2   :  { %v758_v43 = vsel %vm755_vm3, %v757_v41, %v753_v38 }
 0x8e3   :  { %v3255_v30 = vpop.eup %3254 }
 0x8e4   :  { %v809_v33 = vadd.f32 1.0, %v3255_v30  ;;  %v879_v30 = vld [vmem:[#allocation2 + $0x2c] sm:$0xf] }
 0x8e6   :  { %3256 = vrcp.f32 %v809_v33  ;;  %v821_v51 = vand.u32 2147483648, %v809_v33  ;;  %vm815_vm5 = vweird.f32 %v809_v33  ;;  %v819_v52 = vand.u32 2147483647, %v809_v33 }
 0x8e8   :  { %v822_v54 = vor.u32 1.1754944e-38, %v821_v51  ;;  %vm820_vm7 = vcmp.eq.f32.partialorder %v819_v52, 8.507059e+37 }
 0x8ec   :  { %v3257_v39 = vpop.eup %3256 }
 0x8ed   :  { %v811_v45 = vmul.f32 %v3257_v39, %v809_v33  ;;  %vm816_vm4 = vweird.f32 %v3257_v39 }
 0x8ee   :  { %vm817_vm6 = vmor %vm815_vm5, %vm816_vm4 }
 0x8ef   :  { %v812_v47 = vsub.f32 1.0, %v811_v45 }
 0x8f1   :  { %v813_v48 = vmul.f32 %v3257_v39, %v812_v47 }
 0x8f3   :  { %v814_v49 = vadd.f32 %v3257_v39, %v813_v48 }
 0x8f5   :  { %v818_v53 = vsel %vm817_vm6, %v3257_v39, %v814_v49 }
 0x8f6   :  { %v823_v56 = vsel %vm820_vm7, %v822_v54, %v818_v53 }
 0x939   :  { %v763_v42 = vpop.permute.xlu1 %762 }
 0x93a   :  { %v765_v44 = vmul.f32 %v763_v42, %v758_v43 }
 0x93c   :  { %767 = vrot.lane.b32.xlu0 %v765_v44, %s3596_s23 }
 0x94d   :  { %v828_v55 = vpop.permute.xlu0 %827 }
 0x94e   :  { %v830_v57 = vmul.f32 %v828_v55, %v823_v56 }
 0x950   :  { %832 = vrot.lane.b32.xlu2 %v830_v57, %s3596_s23 }
 0x9aa   :  { %v833_v58 = vpop.permute.xlu2 %832 }
 0x9ab   :  { %v835_v59 = vadd.f32 %v833_v58, %v717_v27  ;;  %v878_v27 = vld [vmem:[#allocation2 + $0x10] sm:$0xf] }
 0x9ad   :  { %3258 = vtanh.f32 %v835_v59 }
 0x9ae   :  { %v768_v60 = vpop.permute.xlu0 %767 }
 0x9af   :  { %v770_v62 = vadd.f32 %v768_v60, %v716_v1 }
 0x9b1   :  { %3260 = vtanh.f32 %v770_v62 }
 0x9b3   :  { %v3259_v63 = vpop.eup %3258 }
 0x9b4   :  { %v837_v0 = vsub.f32 %v3941_v16, %v3259_v63 }
 0x9b6   :  { %839 = vrot.lane.b32.xlu1 %v837_v0, %s3599_s3 }
 0x9b7   :  { %v3261_v2 = vpop.eup %3260 }
 0x9b8   :  { %v772_v46 = vsub.f32 %v3946_v23, %v3261_v2 }
 0x9ba   :  { %774 = vrot.lane.b32.xlu2 %v772_v46, %s3599_s3 }
 0x9be   :  { %863 = vperm.xlu1 %3204, %v3083_v50  }
 0xa14   :  { %v775_v3 = vpop.permute.xlu2 %774 }
 0xa15   :  { %v777_v4 = vmul.f32 %v775_v3, %v758_v43 }
 0xa17   :  { %779 = vrot.lane.b32.xlu2 %v777_v4, %s3600_s11 }
 0xa28   :  { %v840_v5 = vpop.permute.xlu1 %839 }
 0xa29   :  { %v842_v7 = vmul.f32 %v840_v5, %v823_v56 }
 0xa2b   :  { %844 = vrot.lane.b32.xlu0 %v842_v7, %s3600_s11 }
 0xa30   :  { %v864_v24 = vpop.permute.xlu1 %863 }
 0xa33   :  { %855 = vperm.xlu0 %3202, %v3082_v9   ;;  %v3089_v9 = vld [vmem:[%s4622_s1 + $0xc] sm:$0xf] }
 0xa71   :  { %v780_v10 = vpop.permute.xlu2 %779 }
 0xa72   :  { %v782_v17 = vadd.f32 %v3261_v2, %v780_v10 }
 0xa74   :  { %v852_v18 = vsub.f32 %v782_v17, %v3946_v23 }
 0xa9d   :  { %v845_v12 = vpop.permute.xlu0 %844 }
 0xa9e   :  { %v847_v13 = vadd.f32 %v3259_v63, %v845_v12 }
 0xaa0   :  { %v860_v19 = vsub.f32 %v847_v13, %v3941_v16 }
 0xaa2   :  { %v866_v61 = vmul.f32 %v864_v24, %v860_v19  ;;  %v3088_v19 = vld [vmem:[%s4622_s1 + $0x10] sm:$0xf] }
 0xaa4   :  { %v3982_v14 = vadd.f32 %v866_v61, %v3941_v16 }
 0xaa5   :  { %v856_v21 = vpop.permute.xlu0 %855 }
 0xaa6   :  { %v858_v22 = vmul.f32 %v856_v21, %v852_v18  ;;  %874 = vrot.lane.b32.xlu1 %v3982_v14, %s3596_s23 }
 0xaa8   :  { %v3988_v1 = vadd.f32 %v858_v22, %v3946_v23 }
 0xaaa   :  { %869 = vrot.lane.b32.xlu2 %v3988_v1, %s3596_s23 }
 0xb04   :  { %v870_v25 = vpop.permute.xlu2 %869 }
 0xb05   :  { %872 = vst.msk [vmem:[#allocation4 + $0xc] sm:$0xf] %vm384_vm10, %v870_v25  ;;  %3084 = vmatmul.msk.f32.vlgmr.msrb.gmra.mxu0 %vm119_vm0, %v870_v25 }
 0xb18   :  { %v875_v16 = vpop.permute.xlu1 %874 }
 0xb19   :  { %877 = vst.msk [vmem:[#allocation4 + $0x30] sm:$0xf] %vm384_vm10, %v875_v16  ;;  %3086 = vmatmul.msk.f32.vlgmr.msra.gmra.mxu1 %vm119_vm0, %v875_v16 }
 0xb82   :  { %v899_v26 = vpop.f32.mrf.mxu0 }
 0xb83   :  { %v922_v6 = vadd.f32 %v899_v26, %v3839_v40  ;;  %v902_v11 = vadd.f32 %v899_v26, %v878_v27 }
 0xb85   :  { %924 = vrot.lane.b32.xlu1 %v922_v6, %s3596_s23  ;;  %v3085_v15 = vmul.f32 -1.442695, %v902_v11 }
 0xb87   :  { %3262 = vpow2.f32 %v3085_v15 }
 0xb8d   :  { %v3263_v28 = vpop.eup %3262 }
 0xb8e   :  { %v906_v29 = vadd.f32 1.0, %v3263_v28 }
 0xb90   :  { %3264 = vrcp.f32 %v906_v29  ;;  %v918_v42 = vand.u32 2147483648, %v906_v29  ;;  %vm912_vm9 = vweird.f32 %v906_v29  ;;  %v916_v43 = vand.u32 2147483647, %v906_v29 }
 0xb92   :  { %v919_v47 = vor.u32 1.1754944e-38, %v918_v42  ;;  %vm917_vm12 = vcmp.eq.f32.partialorder %v916_v43, 8.507059e+37 }
 0xb96   :  { %v964_v23 = vpop.f32.mrf.mxu1  ;;  %v3265_v34 = vpop.eup %3264 }
 0xb97   :  { %v987_v8 = vadd.f32 %v964_v23, %v3831_v32  ;;  %v967_v31 = vadd.f32 %v964_v23, %v879_v30  ;;  %v908_v35 = vmul.f32 %v3265_v34, %v906_v29  ;;  %vm913_vm8 = vweird.f32 %v3265_v34 }
 0xb98   :  { %vm914_vm11 = vmor %vm912_vm9, %vm913_vm8 }
 0xb99   :  { %989 = vrot.lane.b32.xlu0 %v987_v8, %s3596_s23  ;;  %v3087_v33 = vmul.f32 -1.442695, %v967_v31  ;;  %v909_v37 = vsub.f32 1.0, %v908_v35 }
 0xb9b   :  { %3266 = vpow2.f32 %v3087_v33  ;;  %v910_v39 = vmul.f32 %v3265_v34, %v909_v37 }
 0xb9d   :  { %v911_v41 = vadd.f32 %v3265_v34, %v910_v39 }
 0xb9f   :  { %v915_v44 = vsel %vm914_vm11, %v3265_v34, %v911_v41 }
 0xba0   :  { %v920_v49 = vsel %vm917_vm12, %v919_v47, %v915_v44 }
 0xba1   :  { %v3267_v36 = vpop.eup %3266 }
 0xba2   :  { %v971_v38 = vadd.f32 1.0, %v3267_v36  ;;  %v1039_v36 = vld [vmem:[#allocation2 + $0x28] sm:$0xf] }
 0xba4   :  { %3268 = vrcp.f32 %v971_v38  ;;  %v983_v56 = vand.u32 2147483648, %v971_v38  ;;  %vm977_vm14 = vweird.f32 %v971_v38  ;;  %v981_v57 = vand.u32 2147483647, %v971_v38 }
 0xba6   :  { %v984_v59 = vor.u32 1.1754944e-38, %v983_v56  ;;  %vm982_vm2 = vcmp.eq.f32.partialorder %v981_v57, 8.507059e+37 }
 0xbaa   :  { %v3269_v45 = vpop.eup %3268 }
 0xbab   :  { %v973_v52 = vmul.f32 %v3269_v45, %v971_v38  ;;  %vm978_vm13 = vweird.f32 %v3269_v45 }
 0xbac   :  { %vm979_vm15 = vmor %vm977_vm14, %vm978_vm13 }
 0xbad   :  { %v974_v53 = vsub.f32 1.0, %v973_v52 }
 0xbaf   :  { %v975_v54 = vmul.f32 %v3269_v45, %v974_v53 }
 0xbb1   :  { %v976_v55 = vadd.f32 %v3269_v45, %v975_v54 }
 0xbb3   :  { %v980_v58 = vsel %vm979_vm15, %v3269_v45, %v976_v55 }
 0xbb4   :  { %v985_v62 = vsel %vm982_vm2, %v984_v59, %v980_v58 }
 0xbf7   :  { %v925_v48 = vpop.permute.xlu1 %924 }
 0xbf8   :  { %v927_v51 = vmul.f32 %v925_v48, %v920_v49 }
 0xbfa   :  { %929 = vrot.lane.b32.xlu0 %v927_v51, %s3596_s23 }
 0xc0b   :  { %v990_v60 = vpop.permute.xlu0 %989 }
 0xc0c   :  { %v992_v63 = vmul.f32 %v990_v60, %v985_v62 }
 0xc0e   :  { %994 = vrot.lane.b32.xlu2 %v992_v63, %s3596_s23 }
 0xc68   :  { %v995_v0 = vpop.permute.xlu2 %994 }
 0xc69   :  { %v997_v2 = vadd.f32 %v995_v0, %v879_v30  ;;  %v1038_v30 = vld [vmem:[#allocation2 + $0x14] sm:$0xf] }
 0xc6b   :  { %3270 = vtanh.f32 %v997_v2 }
 0xc6c   :  { %v930_v46 = vpop.permute.xlu0 %929 }
 0xc6d   :  { %v932_v50 = vadd.f32 %v930_v46, %v878_v27 }
 0xc6f   :  { %3272 = vtanh.f32 %v932_v50 }
 0xc71   :  { %v3271_v3 = vpop.eup %3270 }
 0xc72   :  { %v999_v4 = vsub.f32 %v3982_v14, %v3271_v3 }
 0xc74   :  { %1001 = vrot.lane.b32.xlu1 %v999_v4, %s3599_s3 }
 0xc75   :  { %v3273_v5 = vpop.eup %3272 }
 0xc76   :  { %v934_v7 = vsub.f32 %v3988_v1, %v3273_v5 }
 0xc78   :  { %936 = vrot.lane.b32.xlu2 %v934_v7, %s3599_s3 }
 0xc7c   :  { %1023 = vperm.xlu1 %3204, %v3089_v9  }
 0xcd2   :  { %v937_v10 = vpop.permute.xlu2 %936 }
 0xcd3   :  { %v939_v12 = vmul.f32 %v937_v10, %v920_v49 }
 0xcd5   :  { %941 = vrot.lane.b32.xlu2 %v939_v12, %s3600_s11 }
 0xce6   :  { %v1002_v13 = vpop.permute.xlu1 %1001 }
 0xce7   :  { %v1004_v17 = vmul.f32 %v1002_v13, %v985_v62 }
 0xce9   :  { %1006 = vrot.lane.b32.xlu0 %v1004_v17, %s3600_s11 }
 0xcee   :  { %v1024_v25 = vpop.permute.xlu1 %1023 }
 0xcf1   :  { %1015 = vperm.xlu0 %3202, %v3088_v19   ;;  %v3095_v19 = vld [vmem:[%s4622_s1 + $0x8] sm:$0xf] }
 0xd2f   :  { %v942_v24 = vpop.permute.xlu2 %941 }
 0xd30   :  { %v944_v21 = vadd.f32 %v3273_v5, %v942_v24 }
 0xd32   :  { %v1012_v6 = vsub.f32 %v944_v21, %v3988_v1 }
 0xd5b   :  { %v1007_v61 = vpop.permute.xlu0 %1006 }
 0xd5c   :  { %v1009_v18 = vadd.f32 %v3271_v3, %v1007_v61 }
 0xd5e   :  { %v1020_v22 = vsub.f32 %v1009_v18, %v3982_v14 }
 0xd60   :  { %v1026_v16 = vmul.f32 %v1024_v25, %v1020_v22  ;;  %v3094_v22 = vld [vmem:[%s4622_s1 + $0x14] sm:$0xf] }
 0xd62   :  { %v4016_v26 = vadd.f32 %v1026_v16, %v3982_v14 }
 0xd63   :  { %v1016_v23 = vpop.permute.xlu0 %1015 }
 0xd64   :  { %v1018_v8 = vmul.f32 %v1016_v23, %v1012_v6  ;;  %1034 = vrot.lane.b32.xlu1 %v4016_v26, %s3596_s23 }
 0xd66   :  { %v4022_v27 = vadd.f32 %v1018_v8, %v3988_v1 }
 0xd68   :  { %1029 = vrot.lane.b32.xlu2 %v4022_v27, %s3596_s23 }
 0xdc2   :  { %v1030_v11 = vpop.permute.xlu2 %1029 }
 0xdc3   :  { %1032 = vst.msk [vmem:[#allocation4 + $0x10] sm:$0xf] %vm384_vm10, %v1030_v11  ;;  %3090 = vmatmul.msk.f32.vlgmr.msrb.gmra.mxu2 %vm119_vm0, %v1030_v11 }
 0xdd6   :  { %v1035_v14 = vpop.permute.xlu1 %1034 }
 0xdd7   :  { %1037 = vst.msk [vmem:[#allocation4 + $0x2c] sm:$0xf] %vm384_vm10, %v1035_v14  ;;  %3092 = vmatmul.msk.f32.vlgmr.msrb.gmra.mxu3 %vm119_vm0, %v1035_v14 }
 0xe46   :  { %v1059_v15 = vpop.f32.mrf.mxu2 }
 0xe47   :  { %v1082_v28 = vadd.f32 %v1059_v15, %v3839_v40  ;;  %v1062_v31 = vadd.f32 %v1059_v15, %v1038_v30 }
 0xe49   :  { %1084 = vrot.lane.b32.xlu1 %v1082_v28, %s3596_s23  ;;  %v3091_v33 = vmul.f32 -1.442695, %v1062_v31  ;;  %v1529_v31 = vld [vmem:[%s4627_s6 + $0x18] sm:$0xff] }
 0xe4a   :  { %1600 = vmatpush.msra.mxu1 %v1529_v31 }
 0xe4b   :  { %3274 = vpow2.f32 %v3091_v33  ;;  %v1527_v33 = vld [vmem:[%s4627_s6 + $0x8] sm:$0xff] }
 0xe51   :  { %v3275_v34 = vpop.eup %3274 }
 0xe52   :  { %v1066_v35 = vadd.f32 1.0, %v3275_v34 }
 0xe54   :  { %3276 = vrcp.f32 %v1066_v35  ;;  %v1078_v48 = vand.u32 2147483648, %v1066_v35  ;;  %vm1072_vm4 = vweird.f32 %v1066_v35  ;;  %v1076_v49 = vand.u32 2147483647, %v1066_v35 }
 0xe56   :  { %v1079_v53 = vor.u32 1.1754944e-38, %v1078_v48  ;;  %vm1077_vm6 = vcmp.eq.f32.partialorder %v1076_v49, 8.507059e+37 }
 0xe5a   :  { %v1124_v1 = vpop.f32.mrf.mxu3  ;;  %v3277_v39 = vpop.eup %3276 }
 0xe5b   :  { %v1147_v29 = vadd.f32 %v1124_v1, %v3831_v32  ;;  %v1127_v37 = vadd.f32 %v1124_v1, %v1039_v36  ;;  %v1068_v41 = vmul.f32 %v3277_v39, %v1066_v35  ;;  %vm1073_vm3 = vweird.f32 %v3277_v39 }
 0xe5c   :  { %vm1074_vm5 = vmor %vm1072_vm4, %vm1073_vm3 }
 0xe5d   :  { %1149 = vrot.lane.b32.xlu0 %v1147_v29, %s3596_s23  ;;  %v3093_v38 = vmul.f32 -1.442695, %v1127_v37  ;;  %v1069_v43 = vsub.f32 1.0, %v1068_v41  ;;  %v4080_v37 = vld [vmem:[#allocation4 + $0x8] sm:$0xff] }
 0xe5f   :  { %3278 = vpow2.f32 %v3093_v38  ;;  %v1070_v45 = vmul.f32 %v3277_v39, %v1069_v43 }
 0xe61   :  { %v1071_v47 = vadd.f32 %v3277_v39, %v1070_v45 }
 0xe63   :  { %v1075_v51 = vsel %vm1074_vm5, %v3277_v39, %v1071_v47 }
 0xe64   :  { %v1080_v55 = vsel %vm1077_vm6, %v1079_v53, %v1075_v51  ;;  %v1199_v51 = vld [vmem:[#allocation2 + $0x24] sm:$0xf] }
 0xe65   :  { %v3279_v42 = vpop.eup %3278 }
 0xe66   :  { %v1131_v44 = vadd.f32 1.0, %v3279_v42 }
 0xe68   :  { %3280 = vrcp.f32 %v1131_v44  ;;  %v1143_v62 = vand.u32 2147483648, %v1131_v44  ;;  %vm1137_vm8 = vweird.f32 %v1131_v44  ;;  %v1141_v63 = vand.u32 2147483647, %v1131_v44 }
 0xe6a   :  { %v1144_v2 = vor.u32 1.1754944e-38, %v1143_v62  ;;  %vm1142_vm11 = vcmp.eq.f32.partialorder %v1141_v63, 8.507059e+37 }
 0xe6e   :  { %v3281_v52 = vpop.eup %3280 }
 0xe6f   :  { %v1133_v57 = vmul.f32 %v3281_v52, %v1131_v44  ;;  %vm1138_vm7 = vweird.f32 %v3281_v52  ;;  %v1198_v44 = vld [vmem:[#allocation2 + $0x18] sm:$0xf] }
 0xe70   :  { %vm1139_vm9 = vmor %vm1137_vm8, %vm1138_vm7 }
 0xe71   :  { %v1134_v58 = vsub.f32 1.0, %v1133_v57 }
 0xe73   :  { %v1135_v59 = vmul.f32 %v3281_v52, %v1134_v58 }
 0xe75   :  { %v1136_v60 = vadd.f32 %v3281_v52, %v1135_v59 }
 0xe77   :  { %v1140_v0 = vsel %vm1139_vm9, %v3281_v52, %v1136_v60 }
 0xe78   :  { %v1145_v50 = vsel %vm1142_vm11, %v1144_v2, %v1140_v0 }
 0xebb   :  { %v1085_v54 = vpop.permute.xlu1 %1084 }
 0xebc   :  { %v1087_v56 = vmul.f32 %v1085_v54, %v1080_v55 }
 0xebe   :  { %1089 = vrot.lane.b32.xlu0 %v1087_v56, %s3596_s23 }
 0xecf   :  { %v1150_v46 = vpop.permute.xlu0 %1149 }
 0xed0   :  { %v1152_v3 = vmul.f32 %v1150_v46, %v1145_v50 }
 0xed2   :  { %1154 = vrot.lane.b32.xlu2 %v1152_v3, %s3596_s23 }
 0xf2c   :  { %v1155_v4 = vpop.permute.xlu2 %1154 }
 0xf2d   :  { %v1157_v5 = vadd.f32 %v1155_v4, %v1039_v36  ;;  %v4076_v36 = vld [vmem:[#allocation4] sm:$0xff] }
 0xf2f   :  { %3282 = vtanh.f32 %v1157_v5 }
 0xf30   :  { %v1090_v7 = vpop.permute.xlu0 %1089 }
 0xf31   :  { %v1092_v9 = vadd.f32 %v1090_v7, %v1038_v30 }
 0xf33   :  { %3284 = vtanh.f32 %v1092_v9 }
 0xf35   :  { %v3283_v10 = vpop.eup %3282 }
 0xf36   :  { %v1159_v12 = vsub.f32 %v4016_v26, %v3283_v10 }
 0xf38   :  { %1161 = vrot.lane.b32.xlu1 %v1159_v12, %s3599_s3 }
 0xf39   :  { %v3285_v13 = vpop.eup %3284 }
 0xf3a   :  { %v1094_v17 = vsub.f32 %v4022_v27, %v3285_v13 }
 0xf3c   :  { %1096 = vrot.lane.b32.xlu2 %v1094_v17, %s3599_s3 }
 0xf40   :  { %1183 = vperm.xlu1 %3204, %v3095_v19  }
 0xf96   :  { %v1097_v24 = vpop.permute.xlu2 %1096 }
 0xf97   :  { %v1099_v61 = vmul.f32 %v1097_v24, %v1080_v55 }
 0xf99   :  { %1101 = vrot.lane.b32.xlu2 %v1099_v61, %s3600_s11 }
 0xfaa   :  { %v1162_v18 = vpop.permute.xlu1 %1161 }
 0xfab   :  { %v1164_v21 = vmul.f32 %v1162_v18, %v1145_v50 }
 0xfad   :  { %1166 = vrot.lane.b32.xlu0 %v1164_v21, %s3600_s11 }
 0xfb2   :  { %v1184_v11 = vpop.permute.xlu1 %1183 }
 0xfb5   :  { %1175 = vperm.xlu0 %3202, %v3094_v22  }
 0xff3   :  { %v1102_v25 = vpop.permute.xlu2 %1101 }
 0xff4   :  { %v1104_v23 = vadd.f32 %v3285_v13, %v1102_v25 }
 0xff6   :  { %v1172_v28 = vsub.f32 %v1104_v23, %v4022_v27 }
0x101f   :  { %v1167_v16 = vpop.permute.xlu0 %1166 }
0x1020   :  { %v1169_v6 = vadd.f32 %v3283_v10, %v1167_v16 }
0x1022   :  { %v1180_v8 = vsub.f32 %v1169_v6, %v4016_v26 }
0x1024   :  { %v1186_v14 = vmul.f32 %v1184_v11, %v1180_v8 }
0x1026   :  { %v4050_v15 = vadd.f32 %v1186_v14, %v4016_v26  ;;  %v1528_v26 = vld [vmem:[%s4627_s6 + $0x10] sm:$0xff]  ;;  %v3101_v14 = vld [vmem:[%s4622_s1 + $0x4] sm:$0xf] }
0x1027   :  { %v1176_v1 = vpop.permute.xlu0 %1175  ;;  %1601 = vmatpush.msra.mxu1 %v1528_v26  ;;  %v3100_v26 = vld [vmem:[%s4622_s1 + $0x18] sm:$0xf] }
0x1028   :  { %v1178_v29 = vmul.f32 %v1176_v1, %v1172_v28  ;;  %1194 = vrot.lane.b32.xlu1 %v4050_v15, %s3596_s23 }
0x1029   :  { %1602 = vmatpush.msra.mxu1 %v1527_v33 }
0x102a   :  { %v4056_v30 = vadd.f32 %v1178_v29, %v4022_v27  ;;  %v1526_v27 = vld [vmem:[%s4627_s6] sm:$0xff] }
0x102b   :  { %1603 = vmatpush.msra.mxu1 %v1526_v27 }
0x102c   :  { %1189 = vrot.lane.b32.xlu2 %v4056_v30, %s3596_s23 }
0x1086   :  { %v1190_v34 = vpop.permute.xlu2 %1189 }
0x1087   :  { %1192 = vst.msk [vmem:[#allocation4 + $0x14] sm:$0xf] %vm384_vm10, %v1190_v34  ;;  %3096 = vmatmul.msk.f32.vlgmr.msra.gmra.mxu0 %vm119_vm0, %v1190_v34 }
0x108e   :  { %v4084_v38 = vld [vmem:[#allocation4 + $0x10] sm:$0xff] }
0x109a   :  { %v1195_v35 = vpop.permute.xlu1 %1194 }
0x109b   :  { %1197 = vst.msk [vmem:[#allocation4 + $0x28] sm:$0xf] %vm384_vm10, %v1195_v35  ;;  %3098 = vmatmul.msk.f32.vlgmr.msrb.gmra.mxu1 %vm119_vm0, %v1195_v35 }
0x10a3   :  { %3115 = vmatmul.msk.f32.vlgmr.msra.gmra.mxu1 %vm119_vm0, %v4076_v36 }
0x10ab   :  { %3116 = vmatmul.msk.f32.gmra.mxu1 %vm119_vm0, %v4080_v37 }
0x10b3   :  { %3117 = vmatmul.msk.f32.gmra.mxu1 %vm119_vm0, %v4084_v38 }
0x1104   :  { %v1219_v39 = vpop.f32.mrf.mxu0 }
0x1105   :  { %v1242_v41 = vadd.f32 %v1219_v39, %v3839_v40  ;;  %v1222_v45 = vadd.f32 %v1219_v39, %v1198_v44 }
0x1107   :  { %1244 = vrot.lane.b32.xlu1 %v1242_v41, %s3596_s23  ;;  %v3097_v47 = vmul.f32 -1.442695, %v1222_v45 }
0x1109   :  { %3286 = vpow2.f32 %v3097_v47 }
0x110f   :  { %v3287_v48 = vpop.eup %3286 }
0x1110   :  { %v1226_v49 = vadd.f32 1.0, %v3287_v48 }
0x1112   :  { %3288 = vrcp.f32 %v1226_v49  ;;  %v1238_v62 = vand.u32 2147483648, %v1226_v49  ;;  %vm1232_vm13 = vweird.f32 %v1226_v49  ;;  %v1236_v63 = vand.u32 2147483647, %v1226_v49 }
0x1114   :  { %v1239_v46 = vor.u32 1.1754944e-38, %v1238_v62  ;;  %vm1237_vm15 = vcmp.eq.f32.partialorder %v1236_v63, 8.507059e+37 }
0x1118   :  { %v1284_v42 = vpop.f32.mrf.mxu1  ;;  %v3289_v54 = vpop.eup %3288 }
0x1119   :  { %v1307_v43 = vadd.f32 %v1284_v42, %v3831_v32  ;;  %v1287_v52 = vadd.f32 %v1284_v42, %v1199_v51  ;;  %v1228_v55 = vmul.f32 %v3289_v54, %v1226_v49  ;;  %vm1233_vm12 = vweird.f32 %v3289_v54  ;;  %v3122_v49 = vld [vmem:[%s4627_s6 + $0x58] sm:$0xff] }
0x111a   :  { %vm1234_vm14 = vmor %vm1232_vm13, %vm1233_vm12  ;;  %1680 = vmatpush.msrb.mxu3 %v3122_v49 }
0x111b   :  { %1309 = vrot.lane.b32.xlu0 %v1307_v43, %s3596_s23  ;;  %v3099_v53 = vmul.f32 -1.442695, %v1287_v52  ;;  %v1229_v57 = vsub.f32 1.0, %v1228_v55 }
0x111d   :  { %3290 = vpow2.f32 %v3099_v53  ;;  %v1230_v59 = vmul.f32 %v3289_v54, %v1229_v57 }
0x111f   :  { %v1231_v60 = vadd.f32 %v3289_v54, %v1230_v59 }
0x1121   :  { %v1235_v0 = vsel %vm1234_vm14, %v3289_v54, %v1231_v60 }
0x1122   :  { %v1240_v3 = vsel %vm1237_vm15, %v1239_v46, %v1235_v0 }
0x1123   :  { %v3291_v56 = vpop.eup %3290 }
0x1124   :  { %v1291_v58 = vadd.f32 1.0, %v3291_v56 }
0x1126   :  { %3292 = vrcp.f32 %v1291_v58  ;;  %v1303_v12 = vand.u32 2147483648, %v1291_v58  ;;  %vm1297_vm3 = vweird.f32 %v1291_v58  ;;  %v1301_v13 = vand.u32 2147483647, %v1291_v58 }
0x1128   :  { %v1304_v19 = vor.u32 1.1754944e-38, %v1303_v12  ;;  %vm1302_vm5 = vcmp.eq.f32.partialorder %v1301_v13, 8.507059e+37 }
0x112c   :  { %v3293_v2 = vpop.eup %3292 }
0x112d   :  { %v1293_v5 = vmul.f32 %v3293_v2, %v1291_v58  ;;  %vm1298_vm2 = vweird.f32 %v3293_v2  ;;  %v1358_v58 = vld [vmem:[#allocation2 + $0x1c] sm:$0xf] }
0x112e   :  { %vm1299_vm4 = vmor %vm1297_vm3, %vm1298_vm2 }
0x112f   :  { %v1294_v7 = vsub.f32 1.0, %v1293_v5 }
0x1131   :  { %v1295_v9 = vmul.f32 %v3293_v2, %v1294_v7 }
0x1133   :  { %v1296_v10 = vadd.f32 %v3293_v2, %v1295_v9 }
0x1135   :  { %v1300_v17 = vsel %vm1299_vm4, %v3293_v2, %v1296_v10 }
0x1136   :  { %v1305_v61 = vsel %vm1302_vm5, %v1304_v19, %v1300_v17 }
0x1179   :  { %v1245_v50 = vpop.permute.xlu1 %1244 }
0x117a   :  { %v1247_v4 = vmul.f32 %v1245_v50, %v1240_v3 }
0x117c   :  { %1249 = vrot.lane.b32.xlu0 %v1247_v4, %s3596_s23 }
0x118d   :  { %v1310_v24 = vpop.permute.xlu0 %1309 }
0x118e   :  { %v1312_v18 = vmul.f32 %v1310_v24, %v1305_v61 }
0x1190   :  { %1314 = vrot.lane.b32.xlu2 %v1312_v18, %s3596_s23 }
0x11ea   :  { %v1315_v21 = vpop.permute.xlu2 %1314 }
0x11eb   :  { %v1317_v22 = vadd.f32 %v1315_v21, %v1199_v51  ;;  %v3120_v51 = vld [vmem:[%s4627_s6 + $0x48] sm:$0xff] }
0x11ed   :  { %3294 = vtanh.f32 %v1317_v22 }
0x11ee   :  { %v1250_v25 = vpop.permute.xlu0 %1249 }
0x11ef   :  { %v1252_v16 = vadd.f32 %v1250_v25, %v1198_v44 }
0x11f1   :  { %3296 = vtanh.f32 %v1252_v16 }
0x11f3   :  { %v3295_v6 = vpop.eup %3294 }
0x11f4   :  { %v1319_v23 = vsub.f32 %v4050_v15, %v3295_v6 }
0x11f6   :  { %1321 = vrot.lane.b32.xlu1 %v1319_v23, %s3599_s3 }
0x11f7   :  { %v3297_v8 = vpop.eup %3296 }
0x11f8   :  { %v1254_v11 = vsub.f32 %v4056_v30, %v3297_v8 }
0x11fa   :  { %1256 = vrot.lane.b32.xlu2 %v1254_v11, %s3599_s3 }
0x11fe   :  { %1343 = vperm.xlu1 %3204, %v3101_v14  }
0x1254   :  { %v1257_v28 = vpop.permute.xlu2 %1256 }
0x1255   :  { %v1259_v1 = vmul.f32 %v1257_v28, %v1240_v3 }
0x1257   :  { %1261 = vrot.lane.b32.xlu2 %v1259_v1, %s3600_s11 }
0x1268   :  { %v1322_v29 = vpop.permute.xlu1 %1321 }
0x1269   :  { %v1324_v31 = vmul.f32 %v1322_v29, %v1305_v61 }
0x126b   :  { %1326 = vrot.lane.b32.xlu0 %v1324_v31, %s3600_s11 }
0x1270   :  { %v1344_v41 = vpop.permute.xlu1 %1343 }
0x1273   :  { %1335 = vperm.xlu0 %3202, %v3100_v26  }
0x12b1   :  { %v1262_v33 = vpop.permute.xlu2 %1261 }
0x12b2   :  { %v1264_v35 = vadd.f32 %v3297_v8, %v1262_v33 }
0x12b4   :  { %v1332_v44 = vsub.f32 %v1264_v35, %v4056_v30 }
0x12dd   :  { %v1327_v27 = vpop.permute.xlu0 %1326 }
0x12de   :  { %v1329_v34 = vadd.f32 %v3295_v6, %v1327_v27  ;;  %v1491_v27 = vld [vmem:[%s4622_s1] sm:$0xf] }
0x12e0   :  { %v1340_v39 = vsub.f32 %v1329_v34, %v4050_v15 }
0x12e2   :  { %v1346_v42 = vmul.f32 %v1344_v41, %v1340_v39 }
0x12e4   :  { %v4108_v43 = vadd.f32 %v1346_v42, %v4050_v15  ;;  %v3121_v15 = vld [vmem:[%s4627_s6 + $0x50] sm:$0xff]  ;;  %v3106_v42 = vld [vmem:[%s4622_s1 + $0x1c] sm:$0xf] }
0x12e5   :  { %v1336_v45 = vpop.permute.xlu0 %1335  ;;  %1681 = vmatpush.msrb.mxu3 %v3121_v15 }
0x12e6   :  { %v1338_v47 = vmul.f32 %v1336_v45, %v1332_v44  ;;  %1354 = vrot.lane.b32.xlu1 %v4108_v43, %s3596_s23 }
0x12e7   :  { %1682 = vmatpush.msrb.mxu3 %v3120_v51 }
0x12e8   :  { %v4114_v48 = vadd.f32 %v1338_v47, %v4056_v30  ;;  %v3119_v30 = vld [vmem:[%s4627_s6 + $0x40] sm:$0xff] }
0x12e9   :  { %1683 = vmatpush.msrb.mxu3 %v3119_v30 }
0x12ea   :  { %1349 = vrot.lane.b32.xlu2 %v4114_v48, %s3596_s23 }
0x1344   :  { %v1350_v52 = vpop.permute.xlu2 %1349 }
0x1345   :  { %1352 = vst.msk [vmem:[#allocation4 + $0x18] sm:$0xf] %vm384_vm10, %v1350_v52  ;;  %3102 = vmatmul.msk.f32.vlgmr.msra.gmra.mxu2 %vm119_vm0, %v1350_v52 }
0x1358   :  { %v1355_v53 = vpop.permute.xlu1 %1354 }
0x1359   :  { %1357 = vst.msk [vmem:[#allocation4 + $0x24] sm:$0xf] %vm384_vm10, %v1355_v53  ;;  %3104 = vmatmul.msk.f32.vlgmr.msra.gmra.mxu3 %vm119_vm0, %v1355_v53 }
0x1361   :  { %3131 = vmatmul.msk.f32.vlgmr.msrb.gmra.mxu3 %vm119_vm0, %v4076_v36 }
0x1369   :  { %3132 = vmatmul.msk.f32.gmra.mxu3 %vm119_vm0, %v4080_v37  ;;  %v1359_v37 = vld [vmem:[#allocation2 + $0x20] sm:$0xf] }
0x1371   :  { %3133 = vmatmul.msk.f32.gmra.mxu3 %vm119_vm0, %v4084_v38 }
0x13c8   :  { %v1379_v54 = vpop.f32.mrf.mxu2 }
0x13c9   :  { %v1402_v55 = vadd.f32 %v1379_v54, %v3839_v40  ;;  %v1382_v59 = vadd.f32 %v1379_v54, %v1358_v58 }
0x13cb   :  { %1404 = vrot.lane.b32.xlu1 %v1402_v55, %s3596_s23  ;;  %v3103_v60 = vmul.f32 -1.442695, %v1382_v59  ;;  %v4173_v59 = vld [vmem:[#allocation8 + $0x28] sm:$0xff] }
0x13cd   :  { %3298 = vpow2.f32 %v3103_v60  ;;  %v3126_v60 = vld [vmem:[%s4627_s6 + $0x78] sm:$0xff] }
0x13ce   :  { %1651 = vmatpush.msrb.mxu2 %v3126_v60 }
0x13d3   :  { %v3299_v36 = vpop.eup %3298 }
0x13d4   :  { %v1386_v62 = vadd.f32 1.0, %v3299_v36  ;;  %v3109_v36 = vld [vmem:[%s4627_s6 + $0x30] sm:$0xff] }
0x13d6   :  { %3300 = vrcp.f32 %v1386_v62  ;;  %v1398_v4 = vand.u32 2147483648, %v1386_v62  ;;  %vm1392_vm7 = vweird.f32 %v1386_v62  ;;  %v1396_v5 = vand.u32 2147483647, %v1386_v62 }
0x13d8   :  { %v1399_v10 = vor.u32 1.1754944e-38, %v1398_v4  ;;  %vm1397_vm9 = vcmp.eq.f32.partialorder %v1396_v5, 8.507059e+37  ;;  %v4238_v5 = vld [vmem:[#allocation8] sm:$0xff] }
0x13dc   :  { %v1444_v56 = vpop.f32.mrf.mxu3  ;;  %v3301_v0 = vpop.eup %3300 }
0x13dd   :  { %v1467_v57 = vadd.f32 %v1444_v56, %v3831_v32  ;;  %v1447_v63 = vadd.f32 %v1444_v56, %v1359_v37  ;;  %v1388_v40 = vmul.f32 %v3301_v0, %v1386_v62  ;;  %vm1393_vm6 = vweird.f32 %v3301_v0  ;;  %v3125_v62 = vld [vmem:[%s4627_s6 + $0x70] sm:$0xff] }
0x13de   :  { %vm1394_vm8 = vmor %vm1392_vm7, %vm1393_vm6  ;;  %1652 = vmatpush.msrb.mxu2 %v3125_v62 }
0x13df   :  { %1469 = vrot.lane.b32.xlu0 %v1467_v57, %s3596_s23  ;;  %v3105_v38 = vmul.f32 -1.442695, %v1447_v63  ;;  %v1389_v46 = vsub.f32 1.0, %v1388_v40  ;;  %v4167_v57 = vld [vmem:[#allocation8 + $0x38] sm:$0xff]  ;;  %v3124_v63 = vld [vmem:[%s4627_s6 + $0x68] sm:$0xff] }
0x13e0   :  { %1805 = vmatpush.msrb.mxu1 %v4167_v57  ;;  %1964 = vmatpush.msra.mxu3 %v4167_v57  ;;  %v3123_v40 = vld [vmem:[%s4627_s6 + $0x60] sm:$0xff] }
0x13e1   :  { %3302 = vpow2.f32 %v3105_v38  ;;  %v1390_v3 = vmul.f32 %v3301_v0, %v1389_v46  ;;  %v3209_v38 = vld [vmem:[#allocation10 + $0x1] ss:$0 sm:$0xff]  ;;  %1653 = vmatpush.msrb.mxu2 %v3124_v63 }
0x13e3   :  { %v1391_v32 = vadd.f32 %v3301_v0, %v1390_v3  ;;  %1654 = vmatpush.msrb.mxu2 %v3123_v40 }
0x13e5   :  { %v1395_v7 = vsel %vm1394_vm8, %v3301_v0, %v1391_v32  ;;  %v3107_v0 = vld [vmem:[%s4627_s6 + $0x20] sm:$0xff]  ;;  %v4230_v32 = vld [vmem:[#allocation8 + $0x8] sm:$0xff] }
0x13e6   :  { %v1400_v13 = vsel %vm1397_vm9, %v1399_v10, %v1395_v7  ;;  %v1523_v10 = vld [vmem:[#allocation4 + $0x28] sm:$0xff] }
0x13e7   :  { %v3303_v2 = vpop.eup %3302 }
0x13e8   :  { %v1451_v50 = vadd.f32 1.0, %v3303_v2  ;;  %v4216_v2 = vld [vmem:[#allocation8 + $0x18] sm:$0xff] }
0x13e9   :  { %1896 = vmatpush.msra.mxu2 %v4216_v2 }
0x13ea   :  { %3304 = vrcp.f32 %v1451_v50  ;;  %v1463_v21 = vand.u32 2147483648, %v1451_v50  ;;  %vm1457_vm12 = vweird.f32 %v1451_v50  ;;  %v1461_v22 = vand.u32 2147483647, %v1451_v50 }
0x13ec   :  { %v1464_v16 = vor.u32 1.1754944e-38, %v1463_v21  ;;  %vm1462_vm14 = vcmp.eq.f32.partialorder %v1461_v22, 8.507059e+37 }
0x13f0   :  { %v3305_v9 = vpop.eup %3304 }
0x13f1   :  { %v1453_v19 = vmul.f32 %v3305_v9, %v1451_v50  ;;  %vm1458_vm11 = vweird.f32 %v3305_v9  ;;  %v4224_v50 = vld [vmem:[#allocation8 + $0x10] sm:$0xff] }
0x13f2   :  { %vm1459_vm13 = vmor %vm1457_vm12, %vm1458_vm11  ;;  %1897 = vmatpush.msra.mxu2 %v4224_v50 }
0x13f3   :  { %v1454_v24 = vsub.f32 1.0, %v1453_v19 }
0x13f4   :  { %1898 = vmatpush.msra.mxu2 %v4230_v32 }
0x13f5   :  { %v1455_v61 = vmul.f32 %v3305_v9, %v1454_v24 }
0x13f6   :  { %1899 = vmatpush.msra.mxu2 %v4238_v5 }
0x13f7   :  { %v1456_v18 = vadd.f32 %v3305_v9, %v1455_v61 }
0x13f9   :  { %v1460_v25 = vsel %vm1459_vm13, %v3305_v9, %v1456_v18  ;;  %v3210_v9 = vld [vmem:[#allocation10] ss:$0 sm:$0xff] }
0x13fa   :  { %v1465_v23 = vsel %vm1462_vm14, %v1464_v16, %v1460_v25  ;;  %v1685_v16 = vpop.f32.mrf.mxu3 }
0x143d   :  { %v1405_v12 = vpop.permute.xlu1 %1404 }
0x143e   :  { %v1407_v17 = vmul.f32 %v1405_v12, %v1400_v13  ;;  %v1524_v12 = vld [vmem:[#allocation4 + $0x30] sm:$0xff] }
0x1440   :  { %1409 = vrot.lane.b32.xlu0 %v1407_v17, %s3596_s23  ;;  %v1605_v17 = vpop.f32.mrf.mxu1 }
0x1448   :  { %v1608_v19 = vpop.f32.mrf.mxu1 }
0x1450   :  { %v1611_v24 = vpop.f32.mrf.mxu1 }
0x1451   :  { %v1470_v6 = vpop.permute.xlu0 %1469 }
0x1452   :  { %v1472_v8 = vmul.f32 %v1470_v6, %v1465_v23 }
0x1454   :  { %1474 = vrot.lane.b32.xlu2 %v1472_v8, %s3596_s23  ;;  %v3212_v8 = vld [vmem:[%s4628_s7 + $0x1] ss:$0 sm:$0xff] }
0x14ae   :  { %v1475_v11 = vpop.permute.xlu2 %1474 }
0x14af   :  { %v1477_v14 = vadd.f32 %v1475_v11, %v1359_v37  ;;  %v3108_v37 = vld [vmem:[%s4627_s6 + $0x28] sm:$0xff] }
0x14b1   :  { %3306 = vtanh.f32 %v1477_v14 }
0x14b2   :  { %v1410_v28 = vpop.permute.xlu0 %1409 }
0x14b3   :  { %v1412_v1 = vadd.f32 %v1410_v28, %v1358_v58  ;;  %v4169_v58 = vld [vmem:[#allocation8 + $0x30] sm:$0xff] }
0x14b4   :  { %1806 = vmatpush.msrb.mxu1 %v4169_v58  ;;  %1965 = vmatpush.msra.mxu3 %v4169_v58 }
0x14b5   :  { %3308 = vtanh.f32 %v1412_v1 }
0x14b6   :  { %1807 = vmatpush.msrb.mxu1 %v4173_v59  ;;  %1966 = vmatpush.msra.mxu3 %v4173_v59 }
0x14b7   :  { %v3307_v29 = vpop.eup %3306 }
0x14b8   :  { %v1479_v31 = vsub.f32 %v4108_v43, %v3307_v29 }
0x14ba   :  { %1481 = vrot.lane.b32.xlu1 %v1479_v31, %s3599_s3  ;;  %v1688_v31 = vpop.f32.mrf.mxu3 }
0x14bb   :  { %v3309_v26 = vpop.eup %3308 }
0x14bc   :  { %v1414_v33 = vsub.f32 %v4114_v48, %v3309_v26 }
0x14be   :  { %1416 = vrot.lane.b32.xlu2 %v1414_v33, %s3599_s3 }
0x14c2   :  { %1503 = vperm.xlu1 %3204, %v1491_v27  }
0x1518   :  { %v1417_v34 = vpop.permute.xlu2 %1416 }
0x1519   :  { %v1419_v35 = vmul.f32 %v1417_v34, %v1400_v13  ;;  %v1525_v13 = vld [vmem:[#allocation4 + $0x38] sm:$0xff] }
0x151b   :  { %1421 = vrot.lane.b32.xlu2 %v1419_v35, %s3600_s11 }
0x152c   :  { %v1482_v39 = vpop.permute.xlu1 %1481 }
0x152d   :  { %v1484_v41 = vmul.f32 %v1482_v39, %v1465_v23 }
0x152f   :  { %1486 = vrot.lane.b32.xlu0 %v1484_v41, %s3600_s11 }
0x1534   :  { %v1504_v51 = vpop.permute.xlu1 %1503 }
0x1537   :  { %1495 = vperm.xlu0 %3202, %v3106_v42   ;;  %v1691_v42 = vpop.f32.mrf.mxu3 }
0x153f   :  { %1835 = vrot.lane.b32.xlu0 %v3209_v38, %s3596_s23 }
0x1575   :  { %v1422_v44 = vpop.permute.xlu2 %1421 }
0x1576   :  { %v1424_v49 = vadd.f32 %v3309_v26, %v1422_v44 }
0x1578   :  { %v1492_v52 = vsub.f32 %v1424_v49, %v4114_v48 }
0x15a1   :  { %v1487_v45 = vpop.permute.xlu0 %1486 }
0x15a2   :  { %v1489_v47 = vadd.f32 %v3307_v29, %v1487_v45 }
0x15a4   :  { %v1500_v15 = vsub.f32 %v1489_v47, %v4108_v43 }
0x15a6   :  { %v1506_v30 = vmul.f32 %v1504_v51, %v1500_v15 }
0x15a8   :  { %v4161_v53 = vadd.f32 %v1506_v30, %v4108_v43  ;;  %v4177_v43 = vld [vmem:[#allocation8 + $0x20] sm:$0xff] }
0x15a9   :  { %v1496_v54 = vpop.permute.xlu0 %1495  ;;  %1808 = vmatpush.msrb.mxu1 %v4177_v43  ;;  %1967 = vmatpush.msra.mxu3 %v4177_v43 }
0x15aa   :  { %v1498_v55 = vmul.f32 %v1496_v54, %v1492_v52  ;;  %1514 = vrot.lane.b32.xlu1 %v4161_v53, %s3596_s23 }
0x15ab   :  { %2120 = vmatpush.msra.mxu1 %v4167_v57  ;;  %2276 = vmatpush.msrb.mxu3 %v4167_v57 }
0x15ac   :  { %v1499_v56 = vadd.f32 %v1498_v55, %v4114_v48  ;;  %v3110_v48 = vld [vmem:[%s4627_s6 + $0x38] sm:$0xff] }
0x15ad   :  { %2121 = vmatpush.msra.mxu1 %v4169_v58  ;;  %2277 = vmatpush.msrb.mxu3 %v4169_v58 }
0x15ae   :  { %1509 = vrot.lane.b32.xlu2 %v1499_v56, %s3596_s23  ;;  %1559 = vmatpush.msrb.mxu0 %v3110_v48 }
0x15af   :  { %2122 = vmatpush.msra.mxu1 %v4173_v59  ;;  %2278 = vmatpush.msrb.mxu3 %v4173_v59 }
0x15b0   :  { %1560 = vmatpush.msrb.mxu0 %v3109_v36 }
0x15b1   :  { %2123 = vmatpush.msra.mxu1 %v4177_v43  ;;  %2279 = vmatpush.msrb.mxu3 %v4177_v43  ;;  %v4266_v18 = vpop.permute.xlu0 %1835 }
0x15b2   :  { %1561 = vmatpush.msrb.mxu0 %v3108_v37  ;;  %1767 = vrot.lane.b32.xlu1 %v3210_v9, %s3596_s23 }
0x15b4   :  { %1562 = vmatpush.msrb.mxu0 %v3107_v0 }
0x15b6   :  { %1737 = vmatpush.msra.mxu0 %v4216_v2 }
0x15b8   :  { %1738 = vmatpush.msra.mxu0 %v4224_v50 }
0x15ba   :  { %1739 = vmatpush.msra.mxu0 %v4230_v32 }
0x15bc   :  { %1740 = vmatpush.msra.mxu0 %v4238_v5 }
0x1608   :  { %v4220_v46 = vpop.permute.xlu2 %1509 }
0x1609   :  { %1512 = vst.msk [vmem:[#allocation4 + $0x1c] sm:$0xf] %vm384_vm10, %v4220_v46 }
0x1610   :  { %v1521_v3 = vld [vmem:[#allocation4 + $0x18] sm:$0xff] }
0x1611   :  { %3118 = vmatmul.msk.f32.gmra.mxu1 %vm119_vm0, %v1521_v3  ;;  %3134 = vmatmul.msk.f32.gmra.mxu3 %vm119_vm0, %v1521_v3 }
0x1619   :  { %1809 = vmatmul.f32.vlgmr.msrb.gmra.mxu1 %v3597_v20 }
0x161a   :  { %2432 = vmatpush.msrb.mxu1 %v4167_v57 }
0x161c   :  { %v1515_v4 = vpop.permute.xlu1 %1514  ;;  %2433 = vmatpush.msrb.mxu1 %v4169_v58 }
0x161d   :  { %1517 = vst.msk [vmem:[#allocation4 + $0x20] sm:$0xf] %vm384_vm10, %v1515_v4 }
0x161e   :  { %2434 = vmatpush.msrb.mxu1 %v4173_v59 }
0x1620   :  { %2435 = vmatpush.msrb.mxu1 %v4177_v43 }
0x1624   :  { %v1522_v7 = vld [vmem:[#allocation4 + $0x20] sm:$0xff]  ;;  %v4283_v54 = vpop.permute.xlu1 %1767 }
0x1625   :  { %3111 = vmatmul.msk.f32.vlgmr.msrb.gmra.mxu0 %vm119_vm0, %v1522_v7  ;;  %3127 = vmatmul.msk.f32.vlgmr.msrb.gmra.mxu2 %vm119_vm0, %v1522_v7 }
0x1626   :  { %2052 = vmatpush.msrb.mxu0 %v4216_v2  ;;  %2208 = vmatpush.msrb.mxu2 %v4216_v2 }
0x1628   :  { %2053 = vmatpush.msrb.mxu0 %v4224_v50  ;;  %2209 = vmatpush.msrb.mxu2 %v4224_v50 }
0x162a   :  { %2054 = vmatpush.msrb.mxu0 %v4230_v32  ;;  %2210 = vmatpush.msrb.mxu2 %v4230_v32 }
0x162c   :  { %2055 = vmatpush.msrb.mxu0 %v4238_v5  ;;  %2211 = vmatpush.msrb.mxu2 %v4238_v5 }
0x162d   :  { %3112 = vmatmul.msk.f32.gmra.mxu0 %vm119_vm0, %v1523_v10  ;;  %3128 = vmatmul.msk.f32.gmra.mxu2 %vm119_vm0, %v1523_v10 }
0x1635   :  { %3113 = vmatmul.msk.f32.gmra.mxu0 %vm119_vm0, %v1524_v12  ;;  %3129 = vmatmul.msk.f32.gmra.mxu2 %vm119_vm0, %v1524_v12 }
0x163d   :  { %3114 = vmatmul.msk.f32.gmra.mxu0 %vm119_vm0, %v1525_v13  ;;  %3130 = vmatmul.msk.f32.gmra.mxu2 %vm119_vm0, %v1525_v13 }
0x1645   :  { %1741 = vmatmul.f32.vlgmr.msra.gmra.mxu0 %v3597_v20  ;;  %v3211_v20 = vld [vmem:[%s4628_s7] ss:$0 sm:$0xff]  ;;  %s3003_s7 = sshll.u32 %s4633_s12, 4  ;;  %s3004_s7 = int_to_ptr.hbm [resolvable:$true] %s3003_s7 }
0x1646   :  { %2364 = vmatpush.msra.mxu0 %v4216_v2 }
0x1648   :  { %2365 = vmatpush.msra.mxu0 %v4224_v50 }
0x164a   :  { %2366 = vmatpush.msra.mxu0 %v4230_v32 }
0x164c   :  { %2367 = vmatpush.msra.mxu0 %v4238_v5 }
0x168e   :  { %v1614_v61 = vpop.f32.mrf.mxu1 }
0x1694   :  { %v1694_v30 = vpop.f32.mrf.mxu3 }
0x1696   :  { %v1810_v21 = vpop.f32.mrf.mxu1 }
0x1697   :  { %v1838_v22 = vadd.f32 %v4266_v18, %v1810_v21 }
0x1699   :  { %1840 = vrot.lane.b32.xlu2 %v1838_v22, %s3596_s23 }
0x16a2   :  { %v1564_v25 = vpop.f32.mrf.mxu0 }
0x16a3   :  { %v1606_v6 = vadd.f32 %v1605_v17, %v1564_v25 }
0x16a5   :  { %v1621_v23 = vadd.f32 %v3211_v20, %v1606_v6 }
0x16a7   :  { %1625 = vst.msk [vmem:[#allocation3] sm:$0xff] %vm161_vm1, %v1621_v23 }
0x16a8   :  { %v1656_v11 = vpop.f32.mrf.mxu2 }
0x16a9   :  { %v1686_v14 = vadd.f32 %v1685_v16, %v1656_v11 }
0x16aa   :  { %v1567_v28 = vpop.f32.mrf.mxu0 }
0x16ab   :  { %v1702_v1 = vadd.f32 %v3212_v8, %v1686_v14  ;;  %v1609_v29 = vadd.f32 %v1608_v19, %v1567_v28 }
0x16ad   :  { %1707 = vst.msk [vmem:[#allocation3 + $0x20] sm:$0xff] %vm161_vm1, %v1702_v1  ;;  %v1622_v26 = vadd.f32 %v3211_v20, %v1609_v29 }
0x16af   :  { %1626 = vst.msk [vmem:[#allocation3 + $0x8] sm:$0xff] %vm161_vm1, %v1622_v26 }
0x16b0   :  { %v1659_v33 = vpop.f32.mrf.mxu2 }
0x16b1   :  { %v1689_v27 = vadd.f32 %v1688_v31, %v1659_v33 }
0x16b2   :  { %v1570_v34 = vpop.f32.mrf.mxu0 }
0x16b3   :  { %v1703_v35 = vadd.f32 %v3212_v8, %v1689_v27  ;;  %v1612_v39 = vadd.f32 %v1611_v24, %v1570_v34 }
0x16b5   :  { %1708 = vst.msk [vmem:[#allocation3 + $0x28] sm:$0xff] %vm161_vm1, %v1703_v35  ;;  %v1623_v41 = vadd.f32 %v3211_v20, %v1612_v39 }
0x16b7   :  { %1627 = vst.msk [vmem:[#allocation3 + $0x10] sm:$0xff] %vm161_vm1, %v1623_v41  ;;  %v3138_v41 = vld [vmem:[%s4622_s1 + $0x1c] sm:$0xf] }
0x16b8   :  { %v1662_v44 = vpop.f32.mrf.mxu2 }
0x16b9   :  { %v1692_v45 = vadd.f32 %v1691_v42, %v1662_v44 }
0x16ba   :  { %v1573_v47 = vpop.f32.mrf.mxu0 }
0x16bb   :  { %v1704_v49 = vadd.f32 %v3212_v8, %v1692_v45  ;;  %v1615_v15 = vadd.f32 %v1614_v61, %v1573_v47  ;;  %v1723_v61 = vld [vmem:[#allocation3] sm:$0xf] }
0x16bd   :  { %1709 = vst.msk [vmem:[#allocation3 + $0x30] sm:$0xff] %vm161_vm1, %v1704_v49  ;;  %v1624_v51 = vadd.f32 %v3211_v20, %v1615_v15 }
0x16bf   :  { %1628 = vst.msk [vmem:[#allocation3 + $0x18] sm:$0xff] %vm161_vm1, %v1624_v51  ;;  %v1861_v51 = vld [vmem:[%s4622_s1] sm:$0xf] }
0x16c0   :  { %v1665_v52 = vpop.f32.mrf.mxu2 }
0x16c1   :  { %v1695_v55 = vadd.f32 %v1694_v30, %v1665_v52 }
0x16c2   :  { %v1742_v56 = vpop.f32.mrf.mxu0 }
0x16c3   :  { %v1705_v48 = vadd.f32 %v3212_v8, %v1695_v55  ;;  %v1770_v60 = vadd.f32 %v4283_v54, %v1742_v56 }
0x16c5   :  { %1710 = vst.msk [vmem:[#allocation3 + $0x38] sm:$0xff] %vm161_vm1, %v1705_v48  ;;  %1772 = vrot.lane.b32.xlu0 %v1770_v60, %s3596_s23 }
0x16cc   :  { %v1724_v36 = vld [vmem:[#allocation3 + $0x3c] sm:$0xf] }
0x16cd   :  { %v1813_v62 = vadd.f32 %v1810_v21, %v1724_v36  ;;  %v1745_v21 = vadd.f32 %v1742_v56, %v1723_v61 }
0x16cf   :  { %v3137_v37 = vmul.f32 -1.442695, %v1813_v62  ;;  %v3136_v22 = vmul.f32 -1.442695, %v1745_v21 }
0x16d1   :  { %3310 = vpow2.f32 %v3137_v37 }
0x16d7   :  { %v3311_v63 = vpop.eup %3310 }
0x16d8   :  { %v1817_v38 = vadd.f32 1.0, %v3311_v63 }
0x16da   :  { %3312 = vrcp.f32 %v1817_v38  ;;  %v1829_v9 = vand.u32 2147483648, %v1817_v38  ;;  %vm1823_vm15 = vweird.f32 %v1817_v38  ;;  %v1827_v10 = vand.u32 2147483647, %v1817_v38 }
0x16db   :  { %3314 = vpow2.f32 %v3136_v22 }
0x16dc   :  { %v1830_v13 = vor.u32 1.1754944e-38, %v1829_v9  ;;  %vm1828_vm3 = vcmp.eq.f32.partialorder %v1827_v10, 8.507059e+37 }
0x16e0   :  { %v3313_v0 = vpop.eup %3312 }
0x16e1   :  { %v1819_v40 = vmul.f32 %v3313_v0, %v1817_v38  ;;  %vm1824_vm10 = vweird.f32 %v3313_v0  ;;  %v3315_v20 = vpop.eup %3314 }
0x16e2   :  { %vm1825_vm2 = vmor %vm1823_vm15, %vm1824_vm10  ;;  %v1749_v25 = vadd.f32 1.0, %v3315_v20 }
0x16e3   :  { %v1820_v3 = vsub.f32 1.0, %v1819_v40 }
0x16e4   :  { %3316 = vrcp.f32 %v1749_v25  ;;  %v1761_v14 = vand.u32 2147483648, %v1749_v25  ;;  %vm1755_vm5 = vweird.f32 %v1749_v25  ;;  %v1759_v28 = vand.u32 2147483647, %v1749_v25 }
0x16e5   :  { %v1821_v4 = vmul.f32 %v3313_v0, %v1820_v3 }
0x16e6   :  { %v1762_v29 = vor.u32 1.1754944e-38, %v1761_v14  ;;  %vm1760_vm7 = vcmp.eq.f32.partialorder %v1759_v28, 8.507059e+37  ;;  %v1877_v14 = vld [vmem:[#allocation3 + $0x4] sm:$0xf] }
0x16e7   :  { %v1822_v7 = vadd.f32 %v3313_v0, %v1821_v4  ;;  %v1878_v4 = vld [vmem:[#allocation3 + $0x38] sm:$0xf] }
0x16e9   :  { %v1826_v12 = vsel %vm1825_vm2, %v3313_v0, %v1822_v7 }
0x16ea   :  { %v1831_v19 = vsel %vm1828_vm3, %v1830_v13, %v1826_v12  ;;  %v3317_v16 = vpop.eup %3316 }
0x16eb   :  { %v1751_v6 = vmul.f32 %v3317_v16, %v1749_v25  ;;  %vm1756_vm4 = vweird.f32 %v3317_v16 }
0x16ec   :  { %vm1757_vm6 = vmor %vm1755_vm5, %vm1756_vm4 }
0x16ed   :  { %v1752_v23 = vsub.f32 1.0, %v1751_v6 }
0x16ef   :  { %v1753_v8 = vmul.f32 %v3317_v16, %v1752_v23 }
0x16f1   :  { %v1754_v11 = vadd.f32 %v3317_v16, %v1753_v8 }
0x16f3   :  { %v1841_v17 = vpop.permute.xlu2 %1840  ;;  %v1758_v1 = vsel %vm1757_vm6, %v3317_v16, %v1754_v11 }
0x16f4   :  { %v1843_v24 = vmul.f32 %v1841_v17, %v1831_v19  ;;  %v1763_v31 = vsel %vm1760_vm7, %v1762_v29, %v1758_v1 }
0x16f6   :  { %1845 = vrot.lane.b32.xlu1 %v1843_v24, %s3596_s23 }
0x1737   :  { %v1773_v26 = vpop.permute.xlu0 %1772 }
0x1738   :  { %v1775_v33 = vmul.f32 %v1773_v26, %v1763_v31 }
0x173a   :  { %1777 = vrot.lane.b32.xlu2 %v1775_v33, %s3596_s23 }
0x1768   :  { %v1846_v27 = vpop.permute.xlu1 %1845 }
0x1769   :  { %v1848_v34 = vadd.f32 %v1846_v27, %v1724_v36 }
0x176b   :  { %3318 = vtanh.f32 %v1848_v34 }
0x1771   :  { %v3319_v35 = vpop.eup %3318 }
0x1772   :  { %v1850_v39 = vsub.f32 0.0, %v3319_v35 }
0x1774   :  { %1852 = vrot.lane.b32.xlu0 %v1850_v39, %s3599_s3 }
0x177c   :  { %1872 = vperm.xlu0 %3202, %v3138_v41  }
0x1794   :  { %v1778_v42 = vpop.permute.xlu2 %1777 }
0x1795   :  { %v1780_v44 = vadd.f32 %v1778_v42, %v1723_v61 }
0x1797   :  { %3320 = vtanh.f32 %v1780_v44 }
0x179d   :  { %v3321_v45 = vpop.eup %3320 }
0x179e   :  { %v1782_v47 = vsub.f32 0.0, %v3321_v45 }
0x17a0   :  { %1784 = vrot.lane.b32.xlu1 %v1782_v47, %s3599_s3 }
0x17e6   :  { %v1853_v49 = vpop.permute.xlu0 %1852 }
0x17e7   :  { %v1855_v15 = vmul.f32 %v1853_v49, %v1831_v19 }
0x17e9   :  { %1857 = vrot.lane.b32.xlu2 %v1855_v15, %s3600_s11 }
0x17ee   :  { %v4300_v48 = vpop.permute.xlu0 %1872 }
0x17f1   :  { %1865 = vperm.xlu2 %3203, %v1861_v51  }
0x1812   :  { %v1785_v30 = vpop.permute.xlu1 %1784 }
0x1813   :  { %v1787_v52 = vmul.f32 %v1785_v30, %v1763_v31 }
0x1815   :  { %1789 = vrot.lane.b32.xlu1 %v1787_v52, %s3600_s11 }
0x1843   :  { %v1858_v55 = vpop.permute.xlu2 %1857 }
0x1844   :  { %v1860_v56 = vadd.f32 %v3319_v35, %v1858_v55  ;;  %v3144_v55 = vld [vmem:[%s4622_s1 + $0x18] sm:$0xf] }
0x1846   :  { %v4303_v60 = vmul.f32 %v4300_v48, %v1860_v56 }
0x1848   :  { %1948 = vrot.lane.b32.xlu0 %v4303_v60, %s3596_s23 }
0x184b   :  { %v4307_v37 = vpop.permute.xlu2 %1865 }
0x1887   :  { %v1790_v36 = vpop.permute.xlu1 %1789 }
0x1888   :  { %v1792_v62 = vadd.f32 %v3321_v45, %v1790_v36 }
0x188a   :  { %v4310_v63 = vmul.f32 %v4307_v37, %v1792_v62 }
0x188c   :  { %1880 = vrot.lane.b32.xlu1 %v4310_v63, %s3596_s23 }
0x18ba   :  { %v1949_v38 = vpop.permute.xlu0 %1948 }
0x18bb   :  { %3141 = vmatmul.msk.f32.vlgmr.msra.gmra.mxu3 %vm119_vm0, %v1949_v38 }
0x18bc   :  { %2576 = vmatpush.msra.mxu3 %v4167_v57 }
0x18be   :  { %2577 = vmatpush.msra.mxu3 %v4169_v58 }
0x18c0   :  { %2578 = vmatpush.msra.mxu3 %v4173_v59 }
0x18c2   :  { %2579 = vmatpush.msra.mxu3 %v4177_v43 }
0x18fe   :  { %v1881_v0 = vpop.permute.xlu1 %1880 }
0x18ff   :  { %3139 = vmatmul.msk.f32.vlgmr.msra.gmra.mxu2 %vm119_vm0, %v1881_v0 }
0x1900   :  { %2508 = vmatpush.msra.mxu2 %v4216_v2 }
0x1902   :  { %2509 = vmatpush.msra.mxu2 %v4224_v50 }
0x1904   :  { %2510 = vmatpush.msra.mxu2 %v4230_v32 }
0x1906   :  { %2511 = vmatpush.msra.mxu2 %v4238_v5 }
0x193e   :  { %v1969_v40 = vpop.f32.mrf.mxu3 }
0x193f   :  { %v1992_v3 = vadd.f32 %v1969_v40, %v4266_v18  ;;  %v1972_v7 = vadd.f32 %v1969_v40, %v1878_v4 }
0x1941   :  { %1994 = vrot.lane.b32.xlu2 %v1992_v3, %s3596_s23  ;;  %v3142_v9 = vmul.f32 -1.442695, %v1972_v7  ;;  %v3143_v3 = vld [vmem:[%s4622_s1 + $0x4] sm:$0xf] }
0x1943   :  { %3322 = vpow2.f32 %v3142_v9 }
0x1949   :  { %v3323_v10 = vpop.eup %3322 }
0x194a   :  { %v1976_v12 = vadd.f32 1.0, %v3323_v10 }
0x194c   :  { %3324 = vrcp.f32 %v1976_v12  ;;  %v1988_v20 = vand.u32 2147483648, %v1976_v12  ;;  %vm1982_vm9 = vweird.f32 %v1976_v12  ;;  %v1986_v25 = vand.u32 2147483647, %v1976_v12 }
0x194e   :  { %v1989_v6 = vor.u32 1.1754944e-38, %v1988_v20  ;;  %vm1987_vm12 = vcmp.eq.f32.partialorder %v1986_v25, 8.507059e+37 }
0x1952   :  { %v3325_v19 = vpop.eup %3324 }
0x1953   :  { %v1978_v24 = vmul.f32 %v3325_v19, %v1976_v12  ;;  %vm1983_vm8 = vweird.f32 %v3325_v19 }
0x1954   :  { %vm1984_vm11 = vmor %vm1982_vm9, %vm1983_vm8 }
0x1955   :  { %v1979_v61 = vsub.f32 1.0, %v1978_v24 }
0x1957   :  { %v1980_v21 = vmul.f32 %v3325_v19, %v1979_v61 }
0x1959   :  { %v1981_v22 = vadd.f32 %v3325_v19, %v1980_v21 }
0x195b   :  { %v1985_v16 = vsel %vm1984_vm11, %v3325_v19, %v1981_v22 }
0x195c   :  { %v1990_v8 = vsel %vm1987_vm12, %v1989_v6, %v1985_v16 }
0x1982   :  { %v1901_v13 = vpop.f32.mrf.mxu2 }
0x1983   :  { %v1924_v17 = vadd.f32 %v1901_v13, %v4283_v54  ;;  %v1904_v28 = vadd.f32 %v1901_v13, %v1877_v14 }
0x1985   :  { %1926 = vrot.lane.b32.xlu0 %v1924_v17, %s3596_s23  ;;  %v3140_v1 = vmul.f32 -1.442695, %v1904_v28 }
0x1987   :  { %3326 = vpow2.f32 %v3140_v1 }
0x198d   :  { %v3327_v29 = vpop.eup %3326 }
0x198e   :  { %v1908_v31 = vadd.f32 1.0, %v3327_v29 }
0x1990   :  { %3328 = vrcp.f32 %v1908_v31  ;;  %v1920_v39 = vand.u32 2147483648, %v1908_v31  ;;  %vm1914_vm14 = vweird.f32 %v1908_v31  ;;  %v1918_v41 = vand.u32 2147483647, %v1908_v31 }
0x1992   :  { %v1921_v44 = vor.u32 1.1754944e-38, %v1920_v39  ;;  %vm1919_vm15 = vcmp.eq.f32.partialorder %v1918_v41, 8.507059e+37 }
0x1996   :  { %v3329_v26 = vpop.eup %3328 }
0x1997   :  { %v1910_v33 = vmul.f32 %v3329_v26, %v1908_v31  ;;  %vm1915_vm13 = vweird.f32 %v3329_v26 }
0x1998   :  { %vm1916_vm10 = vmor %vm1914_vm14, %vm1915_vm13 }
0x1999   :  { %v1911_v27 = vsub.f32 1.0, %v1910_v33 }
0x199b   :  { %v1995_v23 = vpop.permute.xlu2 %1994  ;;  %v1912_v34 = vmul.f32 %v3329_v26, %v1911_v27 }
0x199c   :  { %v1997_v11 = vmul.f32 %v1995_v23, %v1990_v8  ;;  %v2034_v23 = vld [vmem:[#allocation3 + $0x34] sm:$0xf] }
0x199d   :  { %v1913_v35 = vadd.f32 %v3329_v26, %v1912_v34 }
0x199e   :  { %1999 = vrot.lane.b32.xlu1 %v1997_v11, %s3596_s23 }
0x199f   :  { %v1917_v42 = vsel %vm1916_vm10, %v3329_v26, %v1913_v35 }
0x19a0   :  { %v1922_v47 = vsel %vm1919_vm15, %v1921_v44, %v1917_v42 }
0x19f7   :  { %v1927_v45 = vpop.permute.xlu0 %1926 }
0x19f8   :  { %v1929_v49 = vmul.f32 %v1927_v45, %v1922_v47 }
0x19fa   :  { %1931 = vrot.lane.b32.xlu2 %v1929_v49, %s3596_s23  ;;  %v2033_v49 = vld [vmem:[#allocation3 + $0x8] sm:$0xf] }
0x1a10   :  { %v2000_v15 = vpop.permute.xlu1 %1999 }
0x1a11   :  { %v2002_v51 = vadd.f32 %v2000_v15, %v1878_v4 }
0x1a13   :  { %3330 = vtanh.f32 %v2002_v51 }
0x1a19   :  { %v3331_v30 = vpop.eup %3330 }
0x1a1a   :  { %v2004_v52 = vsub.f32 %v4303_v60, %v3331_v30 }
0x1a1c   :  { %2006 = vrot.lane.b32.xlu0 %v2004_v52, %s3599_s3 }
0x1a24   :  { %2028 = vperm.xlu0 %3202, %v3144_v55  }
0x1a54   :  { %v1932_v56 = vpop.permute.xlu2 %1931 }
0x1a55   :  { %v1934_v36 = vadd.f32 %v1932_v56, %v1877_v14 }
0x1a57   :  { %3332 = vtanh.f32 %v1934_v36 }
0x1a5d   :  { %v3333_v62 = vpop.eup %3332 }
0x1a5e   :  { %v1936_v38 = vsub.f32 %v4310_v63, %v3333_v62 }
0x1a60   :  { %1938 = vrot.lane.b32.xlu1 %v1936_v38, %s3599_s3 }
0x1a8e   :  { %v2007_v0 = vpop.permute.xlu0 %2006 }
0x1a8f   :  { %v2009_v40 = vmul.f32 %v2007_v0, %v1990_v8 }
0x1a91   :  { %2011 = vrot.lane.b32.xlu2 %v2009_v40, %s3600_s11 }
0x1a96   :  { %v4343_v13 = vpop.permute.xlu0 %2028 }
0x1a99   :  { %2020 = vperm.xlu2 %3203, %v3143_v3  }
0x1ad2   :  { %v1939_v4 = vpop.permute.xlu1 %1938 }
0x1ad3   :  { %v1941_v7 = vmul.f32 %v1939_v4, %v1922_v47 }
0x1ad5   :  { %1943 = vrot.lane.b32.xlu1 %v1941_v7, %s3600_s11 }
0x1aeb   :  { %v2012_v9 = vpop.permute.xlu2 %2011 }
0x1aec   :  { %v2014_v10 = vadd.f32 %v3331_v30, %v2012_v9 }
0x1aee   :  { %v2025_v12 = vsub.f32 %v2014_v10, %v4303_v60 }
0x1af0   :  { %v2031_v17 = vmul.f32 %v4343_v13, %v2025_v12 }
0x1af2   :  { %v4347_v19 = vadd.f32 %v2031_v17, %v4303_v60 }
0x1af3   :  { %v4352_v22 = vpop.permute.xlu2 %2020 }
0x1af4   :  { %2104 = vrot.lane.b32.xlu0 %v4347_v19, %s3596_s23 }
0x1b47   :  { %v1944_v24 = vpop.permute.xlu1 %1943 }
0x1b48   :  { %v1946_v61 = vadd.f32 %v3333_v62, %v1944_v24 }
0x1b4a   :  { %v2017_v21 = vsub.f32 %v1946_v61, %v4310_v63 }
0x1b4c   :  { %v2023_v20 = vmul.f32 %v4352_v22, %v2017_v21  ;;  %v3150_v21 = vld [vmem:[%s4622_s1 + $0x14] sm:$0xf] }
0x1b4e   :  { %v4356_v25 = vadd.f32 %v2023_v20, %v4310_v63 }
0x1b50   :  { %2036 = vrot.lane.b32.xlu1 %v4356_v25, %s3596_s23 }
0x1b66   :  { %v2105_v16 = vpop.permute.xlu0 %2104 }
0x1b67   :  { %3147 = vmatmul.msk.f32.vlgmr.msra.gmra.mxu1 %vm119_vm0, %v2105_v16 }
0x1b68   :  { %2720 = vmatpush.msra.mxu1 %v4167_v57 }
0x1b6a   :  { %2721 = vmatpush.msra.mxu1 %v4169_v58 }
0x1b6c   :  { %2722 = vmatpush.msra.mxu1 %v4173_v59 }
0x1b6e   :  { %2723 = vmatpush.msra.mxu1 %v4177_v43 }
0x1bc2   :  { %v2037_v60 = vpop.permute.xlu1 %2036 }
0x1bc3   :  { %3145 = vmatmul.msk.f32.vlgmr.msrb.gmra.mxu0 %vm119_vm0, %v2037_v60 }
0x1bc4   :  { %2652 = vmatpush.msrb.mxu0 %v4216_v2 }
0x1bc6   :  { %2653 = vmatpush.msrb.mxu0 %v4224_v50 }
0x1bc8   :  { %2654 = vmatpush.msrb.mxu0 %v4230_v32 }
0x1bca   :  { %2655 = vmatpush.msrb.mxu0 %v4238_v5 }
0x1be4   :  { %v2125_v63 = vpop.f32.mrf.mxu1 }
0x1be5   :  { %v2148_v6 = vadd.f32 %v2125_v63, %v4266_v18  ;;  %v2128_v8 = vadd.f32 %v2125_v63, %v2034_v23 }
0x1be7   :  { %2150 = vrot.lane.b32.xlu2 %v2148_v6, %s3596_s23  ;;  %v3148_v11 = vmul.f32 -1.442695, %v2128_v8  ;;  %v3149_v8 = vld [vmem:[%s4622_s1 + $0x8] sm:$0xf] }
0x1be9   :  { %3334 = vpow2.f32 %v3148_v11 }
0x1bef   :  { %v3335_v14 = vpop.eup %3334 }
0x1bf0   :  { %v2132_v28 = vadd.f32 1.0, %v3335_v14 }
0x1bf2   :  { %3336 = vrcp.f32 %v2132_v28  ;;  %v2144_v27 = vand.u32 2147483648, %v2132_v28  ;;  %vm2138_vm3 = vweird.f32 %v2132_v28  ;;  %v2142_v34 = vand.u32 2147483647, %v2132_v28 }
0x1bf4   :  { %v2145_v39 = vor.u32 1.1754944e-38, %v2144_v27  ;;  %vm2143_vm5 = vcmp.eq.f32.partialorder %v2142_v34, 8.507059e+37 }
0x1bf8   :  { %v3337_v1 = vpop.eup %3336 }
0x1bf9   :  { %v2134_v29 = vmul.f32 %v3337_v1, %v2132_v28  ;;  %vm2139_vm2 = vweird.f32 %v3337_v1 }
0x1bfa   :  { %vm2140_vm4 = vmor %vm2138_vm3, %vm2139_vm2 }
0x1bfb   :  { %v2135_v31 = vsub.f32 1.0, %v2134_v29 }
0x1bfd   :  { %v2136_v26 = vmul.f32 %v3337_v1, %v2135_v31 }
0x1bff   :  { %v2137_v33 = vadd.f32 %v3337_v1, %v2136_v26 }
0x1c01   :  { %v2141_v35 = vsel %vm2140_vm4, %v3337_v1, %v2137_v33 }
0x1c02   :  { %v2146_v45 = vsel %vm2143_vm5, %v2145_v39, %v2141_v35 }
0x1c40   :  { %v2057_v41 = vpop.f32.mrf.mxu0 }
0x1c41   :  { %v2080_v42 = vadd.f32 %v2057_v41, %v4283_v54  ;;  %v2151_v44 = vpop.permute.xlu2 %2150  ;;  %v2060_v15 = vadd.f32 %v2057_v41, %v2033_v49 }
0x1c42   :  { %v2153_v47 = vmul.f32 %v2151_v44, %v2146_v45 }
0x1c43   :  { %2082 = vrot.lane.b32.xlu0 %v2080_v42, %s3596_s23  ;;  %v3146_v51 = vmul.f32 -1.442695, %v2060_v15 }
0x1c44   :  { %2155 = vrot.lane.b32.xlu1 %v2153_v47, %s3596_s23 }
0x1c45   :  { %3338 = vpow2.f32 %v3146_v51 }
0x1c4b   :  { %v3339_v30 = vpop.eup %3338 }
0x1c4c   :  { %v2064_v52 = vadd.f32 1.0, %v3339_v30 }
0x1c4e   :  { %3340 = vrcp.f32 %v2064_v52  ;;  %v2076_v0 = vand.u32 2147483648, %v2064_v52  ;;  %vm2070_vm7 = vweird.f32 %v2064_v52  ;;  %v2074_v40 = vand.u32 2147483647, %v2064_v52 }
0x1c50   :  { %v2077_v4 = vor.u32 1.1754944e-38, %v2076_v0  ;;  %vm2075_vm9 = vcmp.eq.f32.partialorder %v2074_v40, 8.507059e+37  ;;  %v2189_v0 = vld [vmem:[#allocation3 + $0xc] sm:$0xf] }
0x1c54   :  { %v3341_v55 = vpop.eup %3340 }
0x1c55   :  { %v2066_v56 = vmul.f32 %v3341_v55, %v2064_v52  ;;  %vm2071_vm6 = vweird.f32 %v3341_v55 }
0x1c56   :  { %vm2072_vm8 = vmor %vm2070_vm7, %vm2071_vm6 }
0x1c57   :  { %v2067_v36 = vsub.f32 1.0, %v2066_v56 }
0x1c59   :  { %v2068_v62 = vmul.f32 %v3341_v55, %v2067_v36 }
0x1c5b   :  { %v2069_v38 = vadd.f32 %v3341_v55, %v2068_v62 }
0x1c5d   :  { %v2073_v3 = vsel %vm2072_vm8, %v3341_v55, %v2069_v38 }
0x1c5e   :  { %v2078_v9 = vsel %vm2075_vm9, %v2077_v4, %v2073_v3 }
0x1cb5   :  { %v2083_v7 = vpop.permute.xlu0 %2082 }
0x1cb6   :  { %v2085_v10 = vmul.f32 %v2083_v7, %v2078_v9  ;;  %v2156_v12 = vpop.permute.xlu1 %2155 }
0x1cb7   :  { %v2158_v17 = vadd.f32 %v2156_v12, %v2034_v23 }
0x1cb8   :  { %2087 = vrot.lane.b32.xlu2 %v2085_v10, %s3596_s23 }
0x1cb9   :  { %3342 = vtanh.f32 %v2158_v17 }
0x1cbf   :  { %v3343_v24 = vpop.eup %3342 }
0x1cc0   :  { %v2160_v61 = vsub.f32 %v4347_v19, %v3343_v24 }
0x1cc2   :  { %2162 = vrot.lane.b32.xlu0 %v2160_v61, %s3599_s3 }
0x1cca   :  { %2184 = vperm.xlu0 %3202, %v3150_v21  }
0x1d12   :  { %v2088_v20 = vpop.permute.xlu2 %2087 }
0x1d13   :  { %v2090_v16 = vadd.f32 %v2088_v20, %v2033_v49 }
0x1d15   :  { %3344 = vtanh.f32 %v2090_v16 }
0x1d1b   :  { %v3345_v60 = vpop.eup %3344 }
0x1d1c   :  { %v2092_v63 = vsub.f32 %v4356_v25, %v3345_v60 }
0x1d1e   :  { %2094 = vrot.lane.b32.xlu1 %v2092_v63, %s3599_s3 }
0x1d34   :  { %v2163_v6 = vpop.permute.xlu0 %2162 }
0x1d35   :  { %v2165_v23 = vmul.f32 %v2163_v6, %v2146_v45 }
0x1d37   :  { %2167 = vrot.lane.b32.xlu2 %v2165_v23, %s3600_s11 }
0x1d3c   :  { %v4389_v31 = vpop.permute.xlu0 %2184 }
0x1d3f   :  { %2176 = vperm.xlu2 %3203, %v3149_v8  }
0x1d90   :  { %v2095_v11 = vpop.permute.xlu1 %2094 }
0x1d91   :  { %v2097_v14 = vmul.f32 %v2095_v11, %v2078_v9  ;;  %v2168_v28 = vpop.permute.xlu2 %2167 }
0x1d92   :  { %v2170_v1 = vadd.f32 %v3343_v24, %v2168_v28 }
0x1d93   :  { %2099 = vrot.lane.b32.xlu1 %v2097_v14, %s3600_s11 }
0x1d94   :  { %v2181_v29 = vsub.f32 %v2170_v1, %v4347_v19 }
0x1d96   :  { %v2187_v26 = vmul.f32 %v4389_v31, %v2181_v29 }
0x1d98   :  { %v4393_v33 = vadd.f32 %v2187_v26, %v4347_v19 }
0x1d99   :  { %v4398_v39 = vpop.permute.xlu2 %2176 }
0x1d9a   :  { %2260 = vrot.lane.b32.xlu0 %v4393_v33, %s3596_s23 }
0x1e05   :  { %v2100_v27 = vpop.permute.xlu1 %2099 }
0x1e06   :  { %v2102_v34 = vadd.f32 %v3345_v60, %v2100_v27  ;;  %v3156_v60 = vld [vmem:[%s4622_s1 + $0x10] sm:$0xf] }
0x1e08   :  { %v2173_v35 = vsub.f32 %v2102_v34, %v4356_v25 }
0x1e0a   :  { %v2179_v41 = vmul.f32 %v4398_v39, %v2173_v35 }
0x1e0c   :  { %v4402_v42 = vadd.f32 %v2179_v41, %v4356_v25  ;;  %v2261_v44 = vpop.permute.xlu0 %2260  ;;  %v3155_v41 = vld [vmem:[%s4622_s1 + $0xc] sm:$0xf] }
0x1e0d   :  { %3153 = vmatmul.msk.f32.vlgmr.msrb.gmra.mxu3 %vm119_vm0, %v2261_v44 }
0x1e0e   :  { %2192 = vrot.lane.b32.xlu1 %v4402_v42, %s3596_s23  ;;  %2864 = vmatpush.msrb.mxu3 %v4167_v57 }
0x1e10   :  { %2865 = vmatpush.msrb.mxu3 %v4169_v58  ;;  %v2190_v58 = vld [vmem:[#allocation3 + $0x30] sm:$0xf] }
0x1e12   :  { %2866 = vmatpush.msrb.mxu3 %v4173_v59 }
0x1e14   :  { %2867 = vmatpush.msrb.mxu3 %v4177_v43 }
0x1e80   :  { %v2193_v19 = vpop.permute.xlu1 %2192 }
0x1e81   :  { %3151 = vmatmul.msk.f32.vlgmr.msrb.gmra.mxu2 %vm119_vm0, %v2193_v19 }
0x1e82   :  { %2796 = vmatpush.msrb.mxu2 %v4216_v2 }
0x1e84   :  { %2797 = vmatpush.msrb.mxu2 %v4224_v50 }
0x1e86   :  { %2798 = vmatpush.msrb.mxu2 %v4230_v32 }
0x1e88   :  { %2799 = vmatpush.msrb.mxu2 %v4238_v5 }
0x1e90   :  { %v2281_v25 = vpop.f32.mrf.mxu3 }
0x1e91   :  { %v2304_v57 = vadd.f32 %v2281_v25, %v4266_v18  ;;  %v2284_v59 = vadd.f32 %v2281_v25, %v2190_v58 }
0x1e93   :  { %2306 = vrot.lane.b32.xlu2 %v2304_v57, %s3596_s23  ;;  %v3154_v45 = vmul.f32 -1.442695, %v2284_v59 }
0x1e95   :  { %3346 = vpow2.f32 %v3154_v45 }
0x1e9b   :  { %v3347_v43 = vpop.eup %3346 }
0x1e9c   :  { %v2288_v47 = vadd.f32 1.0, %v3347_v43 }
0x1e9e   :  { %3348 = vrcp.f32 %v2288_v47  ;;  %v2300_v32 = vand.u32 2147483648, %v2288_v47  ;;  %vm2294_vm12 = vweird.f32 %v2288_v47  ;;  %v2298_v5 = vand.u32 2147483647, %v2288_v47 }
0x1ea0   :  { %v2301_v52 = vor.u32 1.1754944e-38, %v2300_v32  ;;  %vm2299_vm14 = vcmp.eq.f32.partialorder %v2298_v5, 8.507059e+37 }
0x1ea4   :  { %v3349_v49 = vpop.eup %3348 }
0x1ea5   :  { %v2290_v2 = vmul.f32 %v3349_v49, %v2288_v47  ;;  %vm2295_vm11 = vweird.f32 %v3349_v49 }
0x1ea6   :  { %vm2296_vm13 = vmor %vm2294_vm12, %vm2295_vm11 }
0x1ea7   :  { %v2291_v15 = vsub.f32 1.0, %v2290_v2 }
0x1ea9   :  { %v2292_v50 = vmul.f32 %v3349_v49, %v2291_v15 }
0x1eab   :  { %v2293_v51 = vadd.f32 %v3349_v49, %v2292_v50 }
0x1ead   :  { %v2297_v30 = vsel %vm2296_vm13, %v3349_v49, %v2293_v51 }
0x1eae   :  { %v2302_v56 = vsel %vm2299_vm14, %v2301_v52, %v2297_v30  ;;  %v2346_v52 = vld [vmem:[#allocation3 + $0x2c] sm:$0xf] }
0x1eed   :  { %v2307_v55 = vpop.permute.xlu2 %2306 }
0x1eee   :  { %v2309_v36 = vmul.f32 %v2307_v55, %v2302_v56 }
0x1ef0   :  { %2311 = vrot.lane.b32.xlu1 %v2309_v36, %s3596_s23 }
0x1f04   :  { %v2213_v62 = vpop.f32.mrf.mxu2 }
0x1f05   :  { %v2236_v38 = vadd.f32 %v2213_v62, %v4283_v54  ;;  %v2216_v40 = vadd.f32 %v2213_v62, %v2189_v0 }
0x1f07   :  { %2238 = vrot.lane.b32.xlu0 %v2236_v38, %s3596_s23  ;;  %v3152_v3 = vmul.f32 -1.442695, %v2216_v40 }
0x1f09   :  { %3350 = vpow2.f32 %v3152_v3 }
0x1f0f   :  { %v3351_v4 = vpop.eup %3350 }
0x1f10   :  { %v2220_v7 = vadd.f32 1.0, %v3351_v4 }
0x1f12   :  { %3352 = vrcp.f32 %v2220_v7  ;;  %v2232_v63 = vand.u32 2147483648, %v2220_v7  ;;  %vm2226_vm15 = vweird.f32 %v2220_v7  ;;  %v2230_v6 = vand.u32 2147483647, %v2220_v7 }
0x1f14   :  { %v2233_v8 = vor.u32 1.1754944e-38, %v2232_v63  ;;  %vm2231_vm3 = vcmp.eq.f32.partialorder %v2230_v6, 8.507059e+37 }
0x1f18   :  { %v3353_v10 = vpop.eup %3352 }
0x1f19   :  { %v2222_v17 = vmul.f32 %v3353_v10, %v2220_v7  ;;  %vm2227_vm10 = vweird.f32 %v3353_v10 }
0x1f1a   :  { %vm2228_vm2 = vmor %vm2226_vm15, %vm2227_vm10 }
0x1f1b   :  { %v2223_v24 = vsub.f32 1.0, %v2222_v17 }
0x1f1d   :  { %v2224_v20 = vmul.f32 %v3353_v10, %v2223_v24 }
0x1f1f   :  { %v2225_v16 = vadd.f32 %v3353_v10, %v2224_v20  ;;  %v2345_v20 = vld [vmem:[#allocation3 + $0x10] sm:$0xf] }
0x1f21   :  { %v2229_v23 = vsel %vm2228_vm2, %v3353_v10, %v2225_v16 }
0x1f22   :  { %v2234_v14 = vsel %vm2231_vm3, %v2233_v8, %v2229_v23 }
0x1f62   :  { %v2312_v9 = vpop.permute.xlu1 %2311 }
0x1f63   :  { %v2314_v12 = vadd.f32 %v2312_v9, %v2190_v58 }
0x1f65   :  { %3354 = vtanh.f32 %v2314_v12 }
0x1f6b   :  { %v3355_v61 = vpop.eup %3354 }
0x1f6c   :  { %v2316_v21 = vsub.f32 %v4393_v33, %v3355_v61 }
0x1f6e   :  { %2318 = vrot.lane.b32.xlu0 %v2316_v21, %s3599_s3 }
0x1f76   :  { %2340 = vperm.xlu0 %3202, %v3156_v60  }
0x1f79   :  { %v2239_v11 = vpop.permute.xlu0 %2238 }
0x1f7a   :  { %v2241_v28 = vmul.f32 %v2239_v11, %v2234_v14 }
0x1f7c   :  { %2243 = vrot.lane.b32.xlu2 %v2241_v28, %s3596_s23 }
0x1fd6   :  { %v2244_v1 = vpop.permute.xlu2 %2243 }
0x1fd7   :  { %v2246_v29 = vadd.f32 %v2244_v1, %v2189_v0 }
0x1fd9   :  { %3356 = vtanh.f32 %v2246_v29 }
0x1fdf   :  { %v3357_v26 = vpop.eup %3356 }
0x1fe0   :  { %v2319_v27 = vpop.permute.xlu0 %2318  ;;  %v2248_v34 = vsub.f32 %v4402_v42, %v3357_v26 }
0x1fe1   :  { %v2321_v35 = vmul.f32 %v2319_v27, %v2302_v56 }
0x1fe2   :  { %2250 = vrot.lane.b32.xlu1 %v2248_v34, %s3599_s3 }
0x1fe3   :  { %2323 = vrot.lane.b32.xlu2 %v2321_v35, %s3600_s11 }
0x1fe8   :  { %v4434_v57 = vpop.permute.xlu0 %2340 }
0x1feb   :  { %2332 = vperm.xlu2 %3203, %v3155_v41  }
0x203d   :  { %v2324_v44 = vpop.permute.xlu2 %2323 }
0x203e   :  { %v2326_v19 = vadd.f32 %v3355_v61, %v2324_v44 }
0x2040   :  { %v2337_v25 = vsub.f32 %v2326_v19, %v4393_v33 }
0x2042   :  { %v2343_v58 = vmul.f32 %v4434_v57, %v2337_v25 }
0x2044   :  { %v4438_v59 = vadd.f32 %v2343_v58, %v4393_v33 }
0x2045   :  { %v4445_v50 = vpop.permute.xlu2 %2332 }
0x2046   :  { %2416 = vrot.lane.b32.xlu0 %v4438_v59, %s3596_s23 }
0x2054   :  { %v2251_v45 = vpop.permute.xlu1 %2250 }
0x2055   :  { %v2253_v43 = vmul.f32 %v2251_v45, %v2234_v14 }
0x2057   :  { %2255 = vrot.lane.b32.xlu1 %v2253_v43, %s3600_s11 }
0x20b8   :  { %v2417_v47 = vpop.permute.xlu0 %2416 }
0x20b9   :  { %3159 = vmatmul.msk.f32.vlgmr.msrb.gmra.mxu1 %vm119_vm0, %v2417_v47 }
0x20c9   :  { %v2256_v49 = vpop.permute.xlu1 %2255 }
0x20ca   :  { %v2258_v2 = vadd.f32 %v3357_v26, %v2256_v49 }
0x20cc   :  { %v2329_v15 = vsub.f32 %v2258_v2, %v4402_v42 }
0x20ce   :  { %v2335_v51 = vmul.f32 %v4445_v50, %v2329_v15 }
0x20d0   :  { %v4449_v33 = vadd.f32 %v2335_v51, %v4402_v42 }
0x20d2   :  { %2348 = vrot.lane.b32.xlu1 %v4449_v33, %s3596_s23 }
0x2136   :  { %v2437_v32 = vpop.f32.mrf.mxu1 }
0x2137   :  { %v2460_v5 = vadd.f32 %v2437_v32, %v4266_v18  ;;  %v2440_v55 = vadd.f32 %v2437_v32, %v2346_v52 }
0x2139   :  { %2462 = vrot.lane.b32.xlu2 %v2460_v5, %s3596_s23  ;;  %v3160_v56 = vmul.f32 -1.442695, %v2440_v55 }
0x213b   :  { %3358 = vpow2.f32 %v3160_v56 }
0x2141   :  { %v3359_v36 = vpop.eup %3358 }
0x2142   :  { %v2444_v62 = vadd.f32 1.0, %v3359_v36 }
0x2144   :  { %v2349_v30 = vpop.permute.xlu1 %2348  ;;  %3360 = vrcp.f32 %v2444_v62  ;;  %v2456_v4 = vand.u32 2147483648, %v2444_v62  ;;  %vm2450_vm5 = vweird.f32 %v2444_v62  ;;  %v2454_v7 = vand.u32 2147483647, %v2444_v62 }
0x2145   :  { %3157 = vmatmul.msk.f32.vlgmr.msra.gmra.mxu0 %vm119_vm0, %v2349_v30 }
0x2146   :  { %v2457_v10 = vor.u32 1.1754944e-38, %v2456_v4  ;;  %vm2455_vm7 = vcmp.eq.f32.partialorder %v2454_v7, 8.507059e+37  ;;  %v2490_v4 = vld [vmem:[#allocation3 + $0x28] sm:$0xf] }
0x214a   :  { %v3361_v42 = vpop.eup %3360 }
0x214b   :  { %v2446_v38 = vmul.f32 %v3361_v42, %v2444_v62  ;;  %vm2451_vm4 = vweird.f32 %v3361_v42 }
0x214c   :  { %vm2452_vm6 = vmor %vm2450_vm5, %vm2451_vm4 }
0x214d   :  { %v2447_v0 = vsub.f32 1.0, %v2446_v38 }
0x214f   :  { %v2448_v40 = vmul.f32 %v3361_v42, %v2447_v0 }
0x2151   :  { %v2449_v3 = vadd.f32 %v3361_v42, %v2448_v40 }
0x2153   :  { %v2453_v9 = vsel %vm2452_vm6, %v3361_v42, %v2449_v3 }
0x2154   :  { %v2458_v17 = vsel %vm2455_vm7, %v2457_v10, %v2453_v9 }
0x2193   :  { %v2463_v12 = vpop.permute.xlu2 %2462 }
0x2194   :  { %v2465_v24 = vmul.f32 %v2463_v12, %v2458_v17 }
0x2196   :  { %2467 = vrot.lane.b32.xlu1 %v2465_v24, %s3596_s23 }
0x21c2   :  { %v2369_v61 = vpop.f32.mrf.mxu0 }
0x21c3   :  { %v2392_v21 = vadd.f32 %v2369_v61, %v4283_v54  ;;  %v2372_v16 = vadd.f32 %v2369_v61, %v2345_v20 }
0x21c5   :  { %2394 = vrot.lane.b32.xlu0 %v2392_v21, %s3596_s23  ;;  %v3158_v6 = vmul.f32 -1.442695, %v2372_v16 }
0x2208   :  { %v2468_v60 = vpop.permute.xlu1 %2467 }
0x2209   :  { %v2470_v63 = vadd.f32 %v2468_v60, %v2346_v52 }
0x220b   :  { %3362 = vtanh.f32 %v2470_v63 }
0x220c   :  { %3364 = vpow2.f32 %v3158_v6 }
0x2211   :  { %v3363_v23 = vpop.eup %3362 }
0x2212   :  { %v2472_v8 = vsub.f32 %v4438_v59, %v3363_v23  ;;  %v3365_v11 = vpop.eup %3364 }
0x2213   :  { %v2376_v14 = vadd.f32 1.0, %v3365_v11 }
0x2214   :  { %2474 = vrot.lane.b32.xlu0 %v2472_v8, %s3599_s3 }
0x2215   :  { %3366 = vrcp.f32 %v2376_v14  ;;  %v2388_v34 = vand.u32 2147483648, %v2376_v14  ;;  %vm2382_vm9 = vweird.f32 %v2376_v14  ;;  %v2386_v35 = vand.u32 2147483647, %v2376_v14 }
0x2217   :  { %v2389_v44 = vor.u32 1.1754944e-38, %v2388_v34  ;;  %vm2387_vm12 = vcmp.eq.f32.partialorder %v2386_v35, 8.507059e+37 }
0x221b   :  { %v3367_v28 = vpop.eup %3366 }
0x221c   :  { %v2378_v1 = vmul.f32 %v3367_v28, %v2376_v14  ;;  %vm2383_vm8 = vweird.f32 %v3367_v28  ;;  %v2489_v14 = vld [vmem:[#allocation3 + $0x14] sm:$0xf] }
0x221d   :  { %vm2384_vm11 = vmor %vm2382_vm9, %vm2383_vm8 }
0x221e   :  { %v2379_v29 = vsub.f32 1.0, %v2378_v1 }
0x2220   :  { %v2380_v26 = vmul.f32 %v3367_v28, %v2379_v29 }
0x2222   :  { %v2381_v27 = vadd.f32 %v3367_v28, %v2380_v26 }
0x2224   :  { %v2385_v41 = vsel %vm2384_vm11, %v3367_v28, %v2381_v27 }
0x2225   :  { %v2390_v25 = vsel %vm2387_vm12, %v2389_v44, %v2385_v41 }
0x2237   :  { %v2395_v19 = vpop.permute.xlu0 %2394 }
0x2238   :  { %v2397_v58 = vmul.f32 %v2395_v19, %v2390_v25 }
0x223a   :  { %2399 = vrot.lane.b32.xlu2 %v2397_v58, %s3596_s23 }
0x2286   :  { %v2475_v45 = vpop.permute.xlu0 %2474 }
0x2287   :  { %v2477_v43 = vmul.f32 %v2475_v45, %v2458_v17 }
0x2289   :  { %2479 = vrot.lane.b32.xlu2 %v2477_v43, %s3600_s11 }
0x2294   :  { %v2400_v47 = vpop.permute.xlu2 %2399 }
0x2295   :  { %v2402_v49 = vadd.f32 %v2400_v47, %v2345_v20 }
0x2297   :  { %3368 = vtanh.f32 %v2402_v49 }
0x229d   :  { %v3369_v2 = vpop.eup %3368 }
0x229e   :  { %v2404_v15 = vsub.f32 %v4449_v33, %v3369_v2 }
0x22a0   :  { %2406 = vrot.lane.b32.xlu1 %v2404_v15, %s3599_s3 }
0x22e3   :  { %v2480_v51 = vpop.permute.xlu2 %2479 }
0x22e4   :  { %v2482_v32 = vadd.f32 %v3363_v23, %v2480_v51 }
0x22e6   :  { %v2486_v5 = vsub.f32 %v2482_v32, %v4438_v59 }
0x22e8   :  { %v2487_v30 = vmul.f32 %v2486_v5, %v4445_v50 }
0x22ea   :  { %v4468_v52 = vadd.f32 %v2487_v30, %v4438_v59 }
0x22ec   :  { %2560 = vrot.lane.b32.xlu1 %v4468_v52, %s3596_s23 }
0x2312   :  { %v2407_v55 = vpop.permute.xlu1 %2406 }
0x2313   :  { %v2409_v56 = vmul.f32 %v2407_v55, %v2390_v25 }
0x2315   :  { %2411 = vrot.lane.b32.xlu0 %v2409_v56, %s3600_s11 }
0x235e   :  { %v2561_v36 = vpop.permute.xlu1 %2560 }
0x235f   :  { %3163 = vmatmul.msk.f32.vlgmr.msra.gmra.mxu3 %vm119_vm0, %v2561_v36 }
0x2387   :  { %v2412_v62 = vpop.permute.xlu0 %2411 }
0x2388   :  { %v2414_v42 = vadd.f32 %v3369_v2, %v2412_v62 }
0x238a   :  { %v2483_v38 = vsub.f32 %v2414_v42, %v4449_v33 }
0x238c   :  { %v2484_v0 = vmul.f32 %v2483_v38, %v4434_v57 }
0x238e   :  { %v4477_v50 = vadd.f32 %v2484_v0, %v4449_v33 }
0x2390   :  { %2492 = vrot.lane.b32.xlu2 %v4477_v50, %s3596_s23 }
0x23e2   :  { %v2581_v59 = vpop.f32.mrf.mxu3 }
0x23e3   :  { %v2604_v40 = vadd.f32 %v2581_v59, %v4266_v18  ;;  %v2584_v7 = vadd.f32 %v2581_v59, %v2490_v4 }
0x23e5   :  { %2606 = vrot.lane.b32.xlu0 %v2604_v40, %s3596_s23  ;;  %v3164_v9 = vmul.f32 -1.442695, %v2584_v7 }
0x23e7   :  { %3370 = vpow2.f32 %v3164_v9 }
0x23ea   :  { %v2493_v3 = vpop.permute.xlu2 %2492 }
0x23eb   :  { %3161 = vmatmul.msk.f32.vlgmr.msra.gmra.mxu2 %vm119_vm0, %v2493_v3 }
0x23ed   :  { %v3371_v10 = vpop.eup %3370 }
0x23ee   :  { %v2588_v57 = vadd.f32 1.0, %v3371_v10 }
0x23f0   :  { %3372 = vrcp.f32 %v2588_v57  ;;  %v2600_v21 = vand.u32 2147483648, %v2588_v57  ;;  %vm2594_vm14 = vweird.f32 %v2588_v57  ;;  %v2598_v20 = vand.u32 2147483647, %v2588_v57 }
0x23f2   :  { %v2601_v60 = vor.u32 1.1754944e-38, %v2600_v21  ;;  %vm2599_vm15 = vcmp.eq.f32.partialorder %v2598_v20, 8.507059e+37 }
0x23f6   :  { %v3373_v33 = vpop.eup %3372 }
0x23f7   :  { %v2590_v12 = vmul.f32 %v3373_v33, %v2588_v57  ;;  %vm2595_vm13 = vweird.f32 %v3373_v33 }
0x23f8   :  { %vm2596_vm10 = vmor %vm2594_vm14, %vm2595_vm13 }
0x23f9   :  { %v2591_v17 = vsub.f32 1.0, %v2590_v12 }
0x23fb   :  { %v2592_v24 = vmul.f32 %v3373_v33, %v2591_v17 }
0x23fd   :  { %v2593_v61 = vadd.f32 %v3373_v33, %v2592_v24  ;;  %v2634_v24 = vld [vmem:[#allocation3 + $0x24] sm:$0xf] }
0x23ff   :  { %v2597_v16 = vsel %vm2596_vm10, %v3373_v33, %v2593_v61 }
0x2400   :  { %v2602_v6 = vsel %vm2599_vm15, %v2601_v60, %v2597_v16 }
0x2457   :  { %v2607_v63 = vpop.permute.xlu0 %2606 }
0x2458   :  { %v2609_v23 = vmul.f32 %v2607_v63, %v2602_v6 }
0x245a   :  { %2611 = vrot.lane.b32.xlu2 %v2609_v23, %s3596_s23 }
0x246e   :  { %v2513_v8 = vpop.f32.mrf.mxu2 }
0x246f   :  { %v2536_v11 = vadd.f32 %v2513_v8, %v4283_v54  ;;  %v2516_v28 = vadd.f32 %v2513_v8, %v2489_v14 }
0x2471   :  { %2538 = vrot.lane.b32.xlu1 %v2536_v11, %s3596_s23  ;;  %v3162_v26 = vmul.f32 -1.442695, %v2516_v28 }
0x24b4   :  { %v2612_v1 = vpop.permute.xlu2 %2611 }
0x24b5   :  { %v2614_v29 = vadd.f32 %v2612_v1, %v2490_v4 }
0x24b7   :  { %3374 = vtanh.f32 %v2614_v29 }
0x24b8   :  { %3376 = vpow2.f32 %v3162_v26 }
0x24bd   :  { %v3375_v27 = vpop.eup %3374 }
0x24be   :  { %v2616_v34 = vsub.f32 %v4468_v52, %v3375_v27  ;;  %v3377_v35 = vpop.eup %3376 }
0x24bf   :  { %v2520_v41 = vadd.f32 1.0, %v3377_v35 }
0x24c0   :  { %2618 = vrot.lane.b32.xlu1 %v2616_v34, %s3599_s3  ;;  %v2633_v34 = vld [vmem:[#allocation3 + $0x18] sm:$0xf] }
0x24c1   :  { %3378 = vrcp.f32 %v2520_v41  ;;  %v2532_v43 = vand.u32 2147483648, %v2520_v41  ;;  %vm2526_vm3 = vweird.f32 %v2520_v41  ;;  %v2530_v47 = vand.u32 2147483647, %v2520_v41 }
0x24c3   :  { %v2533_v2 = vor.u32 1.1754944e-38, %v2532_v43  ;;  %vm2531_vm5 = vcmp.eq.f32.partialorder %v2530_v47, 8.507059e+37 }
0x24c7   :  { %v3379_v44 = vpop.eup %3378 }
0x24c8   :  { %v2522_v19 = vmul.f32 %v3379_v44, %v2520_v41  ;;  %vm2527_vm2 = vweird.f32 %v3379_v44 }
0x24c9   :  { %vm2528_vm4 = vmor %vm2526_vm3, %vm2527_vm2 }
0x24ca   :  { %v2523_v25 = vsub.f32 1.0, %v2522_v19 }
0x24cc   :  { %v2524_v58 = vmul.f32 %v3379_v44, %v2523_v25 }
0x24ce   :  { %v2525_v45 = vadd.f32 %v3379_v44, %v2524_v58 }
0x24d0   :  { %v2529_v49 = vsel %vm2528_vm4, %v3379_v44, %v2525_v45 }
0x24d1   :  { %v2534_v15 = vsel %vm2531_vm5, %v2533_v2, %v2529_v49 }
0x24e3   :  { %v2539_v51 = vpop.permute.xlu1 %2538 }
0x24e4   :  { %v2541_v32 = vmul.f32 %v2539_v51, %v2534_v15 }
0x24e6   :  { %2543 = vrot.lane.b32.xlu0 %v2541_v32, %s3596_s23 }
0x2532   :  { %v2619_v5 = vpop.permute.xlu1 %2618 }
0x2533   :  { %v2621_v30 = vmul.f32 %v2619_v5, %v2602_v6 }
0x2535   :  { %2623 = vrot.lane.b32.xlu0 %v2621_v30, %s3600_s11 }
0x2558   :  { %v2544_v55 = vpop.permute.xlu0 %2543 }
0x2559   :  { %v2546_v56 = vadd.f32 %v2544_v55, %v2489_v14 }
0x255b   :  { %3380 = vtanh.f32 %v2546_v56 }
0x2561   :  { %v3381_v36 = vpop.eup %3380 }
0x2562   :  { %v2548_v62 = vsub.f32 %v4477_v50, %v3381_v36 }
0x2564   :  { %2550 = vrot.lane.b32.xlu2 %v2548_v62, %s3599_s3 }
0x25a7   :  { %v2624_v42 = vpop.permute.xlu0 %2623 }
0x25a8   :  { %v2626_v38 = vadd.f32 %v3375_v27, %v2624_v42 }
0x25aa   :  { %v2630_v0 = vsub.f32 %v2626_v38, %v4468_v52 }
0x25ac   :  { %v2631_v59 = vmul.f32 %v2630_v0, %v4398_v39 }
0x25ae   :  { %v4496_v40 = vadd.f32 %v2631_v59, %v4468_v52 }
0x25b0   :  { %2704 = vrot.lane.b32.xlu2 %v4496_v40, %s3596_s23 }
0x25be   :  { %v2551_v3 = vpop.permute.xlu2 %2550 }
0x25bf   :  { %v2553_v4 = vmul.f32 %v2551_v3, %v2534_v15 }
0x25c1   :  { %2555 = vrot.lane.b32.xlu1 %v2553_v4, %s3600_s11 }
0x260a   :  { %v2705_v7 = vpop.permute.xlu2 %2704 }
0x260b   :  { %3167 = vmatmul.msk.f32.vlgmr.msra.gmra.mxu1 %vm119_vm0, %v2705_v7 }
0x2633   :  { %v2556_v9 = vpop.permute.xlu1 %2555 }
0x2634   :  { %v2558_v10 = vadd.f32 %v3381_v36, %v2556_v9 }
0x2636   :  { %v2627_v57 = vsub.f32 %v2558_v10, %v4477_v50 }
0x2638   :  { %v2628_v33 = vmul.f32 %v2627_v57, %v4389_v31 }
0x263a   :  { %v4505_v39 = vadd.f32 %v2628_v33, %v4477_v50 }
0x263c   :  { %2636 = vrot.lane.b32.xlu0 %v4505_v39, %s3596_s23 }
0x2688   :  { %v2725_v52 = vpop.f32.mrf.mxu1 }
0x2689   :  { %v2748_v12 = vadd.f32 %v2725_v52, %v4266_v18  ;;  %v2728_v61 = vadd.f32 %v2725_v52, %v2634_v24 }
0x268b   :  { %2750 = vrot.lane.b32.xlu1 %v2748_v12, %s3596_s23  ;;  %v3168_v21 = vmul.f32 -1.442695, %v2728_v61 }
0x268d   :  { %3382 = vpow2.f32 %v3168_v21 }
0x2693   :  { %v3383_v20 = vpop.eup %3382 }
0x2694   :  { %v2732_v31 = vadd.f32 1.0, %v3383_v20 }
0x2696   :  { %3384 = vrcp.f32 %v2732_v31  ;;  %v2744_v23 = vand.u32 2147483648, %v2732_v31  ;;  %vm2738_vm7 = vweird.f32 %v2732_v31  ;;  %v2742_v8 = vand.u32 2147483647, %v2732_v31 }
0x2698   :  { %v2745_v14 = vor.u32 1.1754944e-38, %v2744_v23  ;;  %vm2743_vm9 = vcmp.eq.f32.partialorder %v2742_v8, 8.507059e+37 }
0x269c   :  { %v3385_v50 = vpop.eup %3384 }
0x269d   :  { %v2734_v16 = vmul.f32 %v3385_v50, %v2732_v31  ;;  %vm2739_vm6 = vweird.f32 %v3385_v50 }
0x269e   :  { %vm2740_vm8 = vmor %vm2738_vm7, %vm2739_vm6 }
0x269f   :  { %v2735_v60 = vsub.f32 1.0, %v2734_v16  ;;  %v2778_v16 = vld [vmem:[#allocation3 + $0x20] sm:$0xf] }
0x26a1   :  { %v2736_v63 = vmul.f32 %v3385_v50, %v2735_v60 }
0x26a3   :  { %v2737_v6 = vadd.f32 %v3385_v50, %v2736_v63 }
0x26a5   :  { %v2741_v11 = vsel %vm2740_vm8, %v3385_v50, %v2737_v6  ;;  %vm2929_vm8 = vcmask 523264  }
0x26a6   :  { %v2746_v28 = vsel %vm2743_vm9, %v2745_v14, %v2741_v11  ;;  %vm2973_vm9 = vcmask 125952  }
0x26ae   :  { %v2637_v17 = vpop.permute.xlu0 %2636 }
0x26af   :  { %3165 = vmatmul.msk.f32.vlgmr.msrb.gmra.mxu0 %vm119_vm0, %v2637_v17 }
0x26fd   :  { %v2751_v1 = vpop.permute.xlu1 %2750 }
0x26fe   :  { %v2753_v29 = vmul.f32 %v2751_v1, %v2746_v28 }
0x2700   :  { %2755 = vrot.lane.b32.xlu0 %v2753_v29, %s3596_s23 }
0x272c   :  { %v2657_v26 = vpop.f32.mrf.mxu0 }
0x272d   :  { %v2680_v27 = vadd.f32 %v2657_v26, %v4283_v54  ;;  %v2660_v35 = vadd.f32 %v2657_v26, %v2633_v34 }
0x272f   :  { %2682 = vrot.lane.b32.xlu2 %v2680_v27, %s3596_s23  ;;  %v3166_v41 = vmul.f32 -1.442695, %v2660_v35 }
0x2731   :  { %3386 = vpow2.f32 %v3166_v41 }
0x2737   :  { %v3387_v44 = vpop.eup %3386 }
0x2738   :  { %v2664_v19 = vadd.f32 1.0, %v3387_v44  ;;  %v2777_v44 = vld [vmem:[#allocation3 + $0x1c] sm:$0xf] }
0x273a   :  { %3388 = vrcp.f32 %v2664_v19  ;;  %v2676_v32 = vand.u32 2147483648, %v2664_v19  ;;  %vm2670_vm12 = vweird.f32 %v2664_v19  ;;  %v2674_v5 = vand.u32 2147483647, %v2664_v19 }
0x273c   :  { %v2677_v55 = vor.u32 1.1754944e-38, %v2676_v32  ;;  %vm2675_vm14 = vcmp.eq.f32.partialorder %v2674_v5, 8.507059e+37 }
0x2740   :  { %v3389_v58 = vpop.eup %3388 }
0x2741   :  { %v2666_v43 = vmul.f32 %v3389_v58, %v2664_v19  ;;  %vm2671_vm11 = vweird.f32 %v3389_v58 }
0x2742   :  { %vm2672_vm13 = vmor %vm2670_vm12, %vm2671_vm11 }
0x2743   :  { %v2667_v47 = vsub.f32 1.0, %v2666_v43 }
0x2745   :  { %v2668_v15 = vmul.f32 %v3389_v58, %v2667_v47 }
0x2747   :  { %v2669_v51 = vadd.f32 %v3389_v58, %v2668_v15 }
0x2749   :  { %v2673_v30 = vsel %vm2672_vm13, %v3389_v58, %v2669_v51 }
0x274a   :  { %v2678_v36 = vsel %vm2675_vm14, %v2677_v55, %v2673_v30 }
0x2772   :  { %v2756_v25 = vpop.permute.xlu0 %2755 }
0x2773   :  { %v2758_v45 = vadd.f32 %v2756_v25, %v2634_v24 }
0x2775   :  { %3390 = vtanh.f32 %v2758_v45 }
0x277b   :  { %v3391_v49 = vpop.eup %3390 }
0x277c   :  { %v2760_v2 = vsub.f32 %v4496_v40, %v3391_v49 }
0x277e   :  { %2762 = vrot.lane.b32.xlu2 %v2760_v2, %s3599_s3 }
0x2789   :  { %v2683_v56 = vpop.permute.xlu2 %2682 }
0x278a   :  { %v2685_v62 = vmul.f32 %v2683_v56, %v2678_v36 }
0x278c   :  { %2687 = vrot.lane.b32.xlu1 %v2685_v62, %s3596_s23 }
0x27d8   :  { %v2763_v42 = vpop.permute.xlu2 %2762 }
0x27d9   :  { %v2765_v38 = vmul.f32 %v2763_v42, %v2746_v28 }
0x27db   :  { %2767 = vrot.lane.b32.xlu1 %v2765_v38, %s3600_s11 }
0x27fe   :  { %v2688_v0 = vpop.permute.xlu1 %2687 }
0x27ff   :  { %v2690_v59 = vadd.f32 %v2688_v0, %v2633_v34 }
0x2801   :  { %3392 = vtanh.f32 %v2690_v59 }
0x2807   :  { %v3393_v3 = vpop.eup %3392 }
0x2808   :  { %v2692_v4 = vsub.f32 %v4505_v39, %v3393_v3 }
0x280a   :  { %2694 = vrot.lane.b32.xlu0 %v2692_v4, %s3599_s3 }
0x284d   :  { %v2768_v7 = vpop.permute.xlu1 %2767 }
0x284e   :  { %v2770_v9 = vadd.f32 %v3391_v49, %v2768_v7 }
0x2850   :  { %v2774_v10 = vsub.f32 %v2770_v9, %v4496_v40 }
0x2852   :  { %v2775_v57 = vmul.f32 %v2774_v10, %v4352_v22 }
0x2854   :  { %v4524_v33 = vadd.f32 %v2775_v57, %v4496_v40 }
0x2856   :  { %2848 = vrot.lane.b32.xlu0 %v4524_v33, %s3596_s23 }
0x287c   :  { %v2695_v52 = vpop.permute.xlu0 %2694 }
0x287d   :  { %v2697_v12 = vmul.f32 %v2695_v52, %v2678_v36 }
0x287f   :  { %2699 = vrot.lane.b32.xlu2 %v2697_v12, %s3600_s11 }
0x28c8   :  { %v2849_v17 = vpop.permute.xlu0 %2848 }
0x28c9   :  { %3171 = vmatmul.msk.f32.vlgmr.msrb.gmra.mxu3 %vm119_vm0, %v2849_v17 }
0x28d9   :  { %v2700_v24 = vpop.permute.xlu2 %2699 }
0x28da   :  { %v2702_v61 = vadd.f32 %v3393_v3, %v2700_v24 }
0x28dc   :  { %v2771_v21 = vsub.f32 %v2702_v61, %v4505_v39 }
0x28de   :  { %v2772_v20 = vmul.f32 %v2771_v21, %v4343_v13  ;;  %v2948_v21 = vld [vmem:[%s4631_s10 + $0x78] sm:$0xff] }
0x28df   :  { %2953 = vmatpush.msra.mxu0 %v2948_v21 }
0x28e0   :  { %v4533_v22 = vadd.f32 %v2772_v20, %v4505_v39  ;;  %v2944_v20 = vld [vmem:[%s4631_s10 + $0x58] sm:$0xff] }
0x28e2   :  { %2780 = vrot.lane.b32.xlu1 %v4533_v22, %s3596_s23 }
0x294c   :  { %v2869_v40 = vpop.f32.mrf.mxu3 }
0x294d   :  { %v2892_v31 = vadd.f32 %v2869_v40, %v4266_v18  ;;  %v2872_v60 = vadd.f32 %v2869_v40, %v2778_v16  ;;  %v2943_v40 = vld [vmem:[%s4631_s10 + $0x50] sm:$0xff] }
0x294f   :  { %2894 = vrot.lane.b32.xlu2 %v2892_v31, %s3596_s23  ;;  %v3172_v63 = vmul.f32 -1.442695, %v2872_v60  ;;  %v2942_v31 = vld [vmem:[%s4631_s10 + $0x48] sm:$0xff]  ;;  %v2939_v60 = vld [vmem:[%s4631_s10 + $0x30] sm:$0xff] }
0x2951   :  { %3394 = vpow2.f32 %v3172_v63  ;;  %v2938_v63 = vld [vmem:[%s4631_s10 + $0x28] sm:$0xff] }
0x2954   :  { %v2781_v50 = vpop.permute.xlu1 %2780 }
0x2955   :  { %3169 = vmatmul.msk.f32.vlgmr.msrb.gmra.mxu2 %vm119_vm0, %v2781_v50  ;;  %v2941_v50 = vld [vmem:[%s4631_s10 + $0x40] sm:$0xff] }
0x2957   :  { %v3395_v6 = vpop.eup %3394 }
0x2958   :  { %v2876_v13 = vadd.f32 1.0, %v3395_v6  ;;  %v2937_v6 = vld [vmem:[%s4631_s10 + $0x20] sm:$0xff] }
0x295a   :  { %3396 = vrcp.f32 %v2876_v13  ;;  %v2888_v28 = vand.u32 2147483648, %v2876_v13  ;;  %vm2882_vm15 = vweird.f32 %v2876_v13  ;;  %v2886_v18 = vand.u32 2147483647, %v2876_v13 }
0x295c   :  { %v2889_v29 = vor.u32 1.1754944e-38, %v2888_v28  ;;  %vm2887_vm3 = vcmp.eq.f32.partialorder %v2886_v18, 8.507059e+37 }
0x2960   :  { %v3397_v39 = vpop.eup %3396 }
0x2961   :  { %v2878_v23 = vmul.f32 %v3397_v39, %v2876_v13  ;;  %vm2883_vm10 = vweird.f32 %v3397_v39  ;;  %v2936_v13 = vld [vmem:[%s4631_s10 + $0x18] sm:$0xff] }
0x2962   :  { %vm2884_vm2 = vmor %vm2882_vm15, %vm2883_vm10 }
0x2963   :  { %v2879_v8 = vsub.f32 1.0, %v2878_v23  ;;  %v2934_v23 = vld [vmem:[%s4631_s10 + $0x8] sm:$0xff] }
0x2965   :  { %v2880_v11 = vmul.f32 %v3397_v39, %v2879_v8  ;;  %v2933_v8 = vld [vmem:[%s4631_s10] sm:$0xff] }
0x2967   :  { %v2881_v14 = vadd.f32 %v3397_v39, %v2880_v11 }
0x2969   :  { %v2885_v1 = vsel %vm2884_vm2, %v3397_v39, %v2881_v14  ;;  %v2935_v39 = vld [vmem:[%s4631_s10 + $0x10] sm:$0xff] }
0x296a   :  { %v2890_v27 = vsel %vm2887_vm3, %v2889_v29, %v2885_v1 }
0x29a9   :  { %v2895_v26 = vpop.permute.xlu2 %2894 }
0x29aa   :  { %v2897_v34 = vmul.f32 %v2895_v26, %v2890_v27 }
0x29ac   :  { %2899 = vrot.lane.b32.xlu1 %v2897_v34, %s3596_s23 }
0x29d8   :  { %v2801_v35 = vpop.f32.mrf.mxu2 }
0x29d9   :  { %v2824_v41 = vadd.f32 %v2801_v35, %v4283_v54  ;;  %v2804_v19 = vadd.f32 %v2801_v35, %v2777_v44 }
0x29db   :  { %2826 = vrot.lane.b32.xlu0 %v2824_v41, %s3596_s23  ;;  %v3170_v45 = vmul.f32 -1.442695, %v2804_v19  ;;  %v3213_v41 = vld [vmem:[#allocation11] ss:$0 sm:$0xff] }
0x2a1e   :  { %v2900_v25 = vpop.permute.xlu1 %2899 }
0x2a1f   :  { %v2902_v58 = vadd.f32 %v2900_v25, %v2778_v16  ;;  %v2940_v16 = vld [vmem:[%s4631_s10 + $0x38] sm:$0xff] }
0x2a21   :  { %3398 = vtanh.f32 %v2902_v58 }
0x2a22   :  { %3400 = vpow2.f32 %v3170_v45 }
0x2a27   :  { %v3399_v43 = vpop.eup %3398 }
0x2a28   :  { %v2904_v47 = vsub.f32 %v4524_v33, %v3399_v43  ;;  %v3401_v49 = vpop.eup %3400 }
0x2a29   :  { %v2808_v2 = vadd.f32 1.0, %v3401_v49 }
0x2a2a   :  { %2906 = vrot.lane.b32.xlu0 %v2904_v47, %s3599_s3 }
0x2a2b   :  { %3402 = vrcp.f32 %v2808_v2  ;;  %v2820_v30 = vand.u32 2147483648, %v2808_v2  ;;  %vm2814_vm5 = vweird.f32 %v2808_v2  ;;  %v2818_v55 = vand.u32 2147483647, %v2808_v2 }
0x2a2d   :  { %v2821_v36 = vor.u32 1.1754944e-38, %v2820_v30  ;;  %vm2819_vm7 = vcmp.eq.f32.partialorder %v2818_v55, 8.507059e+37 }
0x2a31   :  { %v3403_v15 = vpop.eup %3402 }
0x2a32   :  { %v2810_v51 = vmul.f32 %v3403_v15, %v2808_v2  ;;  %vm2815_vm4 = vweird.f32 %v3403_v15 }
0x2a33   :  { %vm2816_vm6 = vmor %vm2814_vm5, %vm2815_vm4 }
0x2a34   :  { %v2811_v54 = vsub.f32 1.0, %v2810_v51 }
0x2a36   :  { %v2812_v32 = vmul.f32 %v3403_v15, %v2811_v54 }
0x2a38   :  { %v2813_v5 = vadd.f32 %v3403_v15, %v2812_v32 }
0x2a3a   :  { %v2817_v56 = vsel %vm2816_vm6, %v3403_v15, %v2813_v5 }
0x2a3b   :  { %v2822_v42 = vsel %vm2819_vm7, %v2821_v36, %v2817_v56 }
0x2a4d   :  { %v2827_v62 = vpop.permute.xlu0 %2826 }
0x2a4e   :  { %v2829_v38 = vmul.f32 %v2827_v62, %v2822_v42 }
0x2a50   :  { %2831 = vrot.lane.b32.xlu2 %v2829_v38, %s3596_s23 }
0x2a9c   :  { %v2907_v0 = vpop.permute.xlu0 %2906 }
0x2a9d   :  { %v2909_v59 = vmul.f32 %v2907_v0, %v2890_v27 }
0x2a9f   :  { %2911 = vrot.lane.b32.xlu2 %v2909_v59, %s3600_s11 }
0x2aaa   :  { %v2832_v3 = vpop.permute.xlu2 %2831 }
0x2aab   :  { %v2834_v4 = vadd.f32 %v2832_v3, %v2777_v44 }
0x2aad   :  { %3404 = vtanh.f32 %v2834_v4 }
0x2ab3   :  { %v3405_v7 = vpop.eup %3404 }
0x2ab4   :  { %v2836_v9 = vsub.f32 %v4533_v22, %v3405_v7 }
0x2ab6   :  { %2838 = vrot.lane.b32.xlu1 %v2836_v9, %s3599_s3 }
0x2abe   :  { %2921 = vrot.lane.b32.xlu1 %v4161_v53, %s3599_s3  ;;  %v2947_v53 = vld [vmem:[%s4631_s10 + $0x70] sm:$0xff] }
0x2abf   :  { %2954 = vmatpush.msra.mxu0 %v2947_v53 }
0x2af9   :  { %v2912_v10 = vpop.permute.xlu2 %2911 }
0x2afa   :  { %v2914_v57 = vadd.f32 %v3399_v43, %v2912_v10 }
0x2afc   :  { %v2918_v52 = vsub.f32 %v2914_v57, %v4524_v33 }
0x2afe   :  { %v2919_v12 = vmul.f32 %v2918_v52, %v4307_v37  ;;  %v2946_v37 = vld [vmem:[%s4631_s10 + $0x68] sm:$0xff] }
0x2aff   :  { %2955 = vmatpush.msra.mxu0 %v2946_v37 }
0x2b00   :  { %v2920_v17 = vadd.f32 %v2919_v12, %v4524_v33  ;;  %v2945_v33 = vld [vmem:[%s4631_s10 + $0x60] sm:$0xff]  ;;  %s3601_s10 = smov [#allocation14]  }
0x2b01   :  { %2956 = vmatpush.msra.mxu0 %v2945_v33  ;;  %s3012_s20 = sshll.u32 %s3601_s10, 4  ;;  %s3013_s20 = int_to_ptr.vmem [resolvable:$true] %s3012_s20 }
0x2b02   :  { %2925 = vrot.lane.b32.xlu2 %v2920_v17, %s3600_s11 }
0x2b03   :  { %2957 = vmatpush.msra.mxu0 %v2944_v20 }
0x2b05   :  { %2958 = vmatpush.msra.mxu0 %v2943_v40 }
0x2b07   :  { %2959 = vmatpush.msra.mxu0 %v2942_v31 }
0x2b09   :  { %2960 = vmatpush.msra.mxu0 %v2941_v50 }
0x2b0b   :  { %2961 = vmatpush.msra.mxu0 %v2940_v16 }
0x2b0d   :  { %2962 = vmatpush.msra.mxu0 %v2939_v60 }
0x2b0f   :  { %2963 = vmatpush.msra.mxu0 %v2938_v63 }
0x2b11   :  { %2964 = vmatpush.msra.mxu0 %v2937_v6 }
0x2b13   :  { %2965 = vmatpush.msra.mxu0 %v2936_v13 }
0x2b15   :  { %2966 = vmatpush.msra.mxu0 %v2935_v39 }
0x2b17   :  { %2967 = vmatpush.msra.mxu0 %v2934_v23 }
0x2b19   :  { %2968 = vmatpush.msra.mxu0 %v2933_v8 }
0x2b28   :  { %v2839_v24 = vpop.permute.xlu1 %2838 }
0x2b29   :  { %v2841_v61 = vmul.f32 %v2839_v24, %v2822_v42 }
0x2b2b   :  { %2843 = vrot.lane.b32.xlu0 %v2841_v61, %s3600_s11  ;;  %s3014_s11 = sshll.u32 %s4634_s13, 4  ;;  %s3603_s13 = smov 112   ;;  %s3015_s11 = int_to_ptr.hbm [resolvable:$true] %s3014_s11 }
0x2b30   :  { %v2922_v18 = vpop.permute.xlu1 %2921 }
0x2b31   :  { %v2928_v26 = vsel %vm119_vm0, %v4220_v46, %v2922_v18 }
0x2b5c   :  { %v2926_v27 = vpop.permute.xlu2 %2925 }
0x2b9d   :  { %v2844_v11 = vpop.permute.xlu0 %2843 }
0x2b9e   :  { %v2846_v14 = vadd.f32 %v3405_v7, %v2844_v11 }
0x2ba0   :  { %v2915_v28 = vsub.f32 %v2846_v14, %v4533_v22 }
0x2ba2   :  { %v2916_v1 = vmul.f32 %v2915_v28, %v4300_v48 }
0x2ba4   :  { %v2917_v29 = vadd.f32 %v2916_v1, %v4533_v22 }
0x2ba6   :  { %v2930_v34 = vsel %vm2929_vm8, %v2928_v26, %v2917_v29 }
0x2ba7   :  { %v2931_v35 = vsel %vm161_vm1, %v2930_v34, %v2926_v27 }
0x2ba8   :  { %2969 = vmatmul.f32.vlgmr.msra.gmra.mxu0 %v2931_v35  ;;  %2932 = vst [vmem:[#allocation13] sm:$0xf] %v2931_v35 }
0x2ba9   :  { %3006 = dma.vmem_to_hbm [thread:$0]  %s3002_s26, 64, %s3004_s7, [#allocation7]  }
0x2c25   :  { %v2970_v44 = vpop.f32.mrf.mxu0 }
0x2c26   :  { %v2971_v19 = vadd.f32 %v3213_v41, %v2970_v44 }
0x2c28   :  { %v2976_v25 = vand.u32 2147483647, %v2971_v19  ;;  %2974 = vst.msk [vmem:[#allocation14] sm:$0xf] %vm2973_vm9, %v2971_v19  ;;  %v2975_v51 = vmax.f32 %v2971_v19, 0.0 }
0x2c29   :  { %3017 = dma.vmem_to_hbm [thread:$0]  %s3013_s20, 64, %s3015_s11, [#allocation15]  }
0x2c2a   :  { %v2977_v48 = vsub.f32 0.0, %v2976_v25 }
0x2c2c   :  { %v2978_v58 = vmul.f32 1.442695, %v2977_v48 }
0x2c2e   :  { %3406 = vpow2.f32 %v2978_v58 }
0x2c34   :  { %v3407_v22 = vpop.eup %3406 }
0x2c35   :  { %v2980_v45 = vadd.f32 1.0, %v3407_v22  ;;  %v2983_v43 = vmul.f32 -0.5, %v3407_v22  ;;  %v2986_v47 = vand.u32 2147483647, %v3407_v22 }
0x2c37   :  { %3408 = vlog2.f32 %v2980_v45  ;;  %v2984_v46 = vadd.f32 1.0, %v2983_v43  ;;  %vm2987_vm0 = vcmp.lt.f32.partialorder %v2986_v47, 0.0004427343 }
0x2c39   :  { %v2985_v15 = vmul.f32 %v3407_v22, %v2984_v46 }
0x2c3d   :  { %v3409_v49 = vpop.eup %3408 }
0x2c3e   :  { %v2982_v2 = vmul.f32 0.6931472, %v3409_v49 }
0x2c40   :  { %v2988_v54 = vsel %vm2987_vm0, %v2985_v15, %v2982_v2 }
0x2c41   :  { %v2989_v32 = vadd.f32 %v2988_v54, %v2975_v51 }
0x2c43   :  { %v2990_v5 = vadd.f32 1e-06, %v2989_v32 }
0x2c45   :  { %2992 = vrot.lane.b32.xlu0 %v2990_v5, %s3603_s13 }
0x2cb7   :  { %v2993_v30 = vpop.permute.xlu0 %2992 }
0x2cb8   :  { %2995 = vst.msk [vmem:[#allocation16] sm:$0xf] %vm2973_vm9, %v2993_v30 }
0x2cb9   :  { %3028 = dma.vmem_to_hbm [thread:$0]  %s3024_s27, 64, %s3026_s29, [#allocation15]  }
0x2cba   :  { %3584 = dma.done.wait [#allocation7], 64  }
0x2cbb   :  { %3585 = vsyncadd [#allocation7], 4294967232 }
0x2cbc   :  { %3586 = dma.done.wait [#allocation15], 128  }
0x2cbd   :  { %3587 = vsyncadd [#allocation15], 4294967168 }
0x2cbe   :  { %3041 = vsyncpa [#allocation6], 1 }
0x2cbf   :  { %3042 = vsyncpa [#allocation9], 1 }
0x2cc0   :  { %3043 = vsyncpa [#allocation12], 1 }
0x2cc1   :  { %3044 = vsyncpa [#allocation7], 1 }
0x2cc2   :  { %3045 = vsyncpa [#allocation15], 1 }

</bundles_post_ra>
